<compile_context>
chip_gen: v5e
topology: v5e:2x2
jax: 0.10.0
libtpu: 0.0.40
codegen_flags: <defaults>
</compile_context>

<pallas_src>
import jax
import jax.numpy as jnp
from jax.experimental import pallas as pl
from jax.experimental.pallas import tpu as pltpu

NEG_SLOPE = 0.01   # torch.nn.LeakyReLU default negative_slope
BN_EPS = 1e-5      # torch.nn.BatchNorm1d default eps

D_IN, D_H1, D_H2, D_OUT = 500, 1000, 500, 1
P_H1, P_H2, P_OUT = 1024, 512, 128   # lane-padded output widths of the three layers
TB_MAX = 512                         # max batch-tile rows (keeps VMEM use ~13 MiB)


def _round_up(n, m):
    return ((n + m - 1) // m) * m


# -----------------------------------------------------------------------------
# Kernel
# -----------------------------------------------------------------------------
def _mlp_kernel(x_ref, w1_ref, b1_ref, w2_ref, b2_ref, w3_ref, b3_ref, o_ref):
    # x_ref: (TB, 500) f32; cast to bf16 in-kernel (no separate XLA pad/cast pass).
    x = x_ref[...].astype(jnp.bfloat16)

    # Linear(500,1000) + folded BatchNorm1d(1000) -> LeakyReLU
    h = jnp.dot(x, w1_ref[...], preferred_element_type=jnp.float32) + b1_ref[...]
    h = jnp.maximum(h, NEG_SLOPE * h)
    # Dropout(0.5): identity in eval mode.
    # TODO(synk): training-mode dropout (random mask) not implemented; eval semantics used.
    h = h.astype(jnp.bfloat16)

    # Linear(1000,500) + folded BatchNorm1d(500) -> LeakyReLU (kept in f32)
    h2 = jnp.dot(h, w2_ref[...], preferred_element_type=jnp.float32) + b2_ref[...]
    h2 = jnp.maximum(h2, NEG_SLOPE * h2)
    # Dropout(0.5): identity in eval mode.

    # Linear(500,1): VPU multiply + cross-lane sum (XLU) instead of an MXU dot padded
    # to N=128.  Broadcast-add the 128-lane bias row so the output store is a
    # lane-dense, unmasked 128-wide write (host slices lane 0).
    y = jnp.sum(h2 * w3_ref[...], axis=-1, keepdims=True)      # (TB, 1) f32
    o_ref[...] = y + b3_ref[...]                                # -> (TB, 128) f32


# -----------------------------------------------------------------------------
# One-time host-side parameter prep (fold BN, transpose, pad, cast to bf16)
# -----------------------------------------------------------------------------
def _fold_bn(gamma, beta, mean, var):
    scale = gamma / jnp.sqrt(var + BN_EPS)
    shift = beta - mean * scale
    return scale, shift


def prepare_params(params):
    """Fold BatchNorm into the Linear layers, transpose to (in,out), zero-pad the
    *output* dims to lane multiples and cast matmul weights to bf16.  Call once."""
    s1, t1 = _fold_bn(params["bn1_gamma"], params["bn1_beta"],
                      params["bn1_mean"], params["bn1_var"])
    s2, t2 = _fold_bn(params["bn2_gamma"], params["bn2_beta"],
                      params["bn2_mean"], params["bn2_var"])

    # PyTorch Linear stores weight as (out, in); transpose to (in, out) for x @ W.
    w1 = params["w1"].T * s1[None, :]          # (500, 1000), BN scale folded per column
    b1 = params["b1"] * s1 + t1
    w2 = params["w2"].T * s2[None, :]          # (1000, 500)
    b2 = params["b2"] * s2 + t2
    w3 = params["w3"]                          # (1, 500) row vector for the VPU layer
    b3 = params["b3"]                          # (1,)

    def pad2(a, rows, cols, dtype):
        return jnp.pad(a, ((0, rows - a.shape[0]), (0, cols - a.shape[1]))).astype(dtype)

    def pad_row(v, cols):
        return jnp.pad(v, (0, cols - v.shape[0])).reshape(1, cols).astype(jnp.float32)

    return dict(
        w1=pad2(w1, D_IN, P_H1, jnp.bfloat16),    # (500, 1024) bf16 (K kept at 500)
        b1=pad_row(b1, P_H1),                     # (1, 1024) f32 (BN folded)
        w2=pad2(w2, P_H1, P_H2, jnp.bfloat16),    # (1024, 512) bf16
        b2=pad_row(b2, P_H2),                     # (1, 512) f32 (BN folded)
        w3=pad2(w3, 1, P_H2, jnp.float32),        # (1, 512) f32 row (VPU layer 3)
        b3=jnp.full((1, P_OUT), params["b3"][0], jnp.float32),  # bias on all 128 lanes
    )


# -----------------------------------------------------------------------------
# Forward
# -----------------------------------------------------------------------------
def _choose_tiles(B):
    """Adaptive batch tiling (B is static under jit):
       - tile rows are multiples of 16 (native bf16 sublane tile),
       - tiles grow up to TB_MAX to amortize per-grid-step overhead,
       - >= 2 tiles once the batch reaches 256 rows so the 'parallel' axis can
         shard across both v7x TensorCores,
       - padding bounded to < 16 rows per tile (no padding to a fixed TB)."""
    bp_min = _round_up(max(B, 1), 16)
    n = pl.cdiv(bp_min, TB_MAX)
    if bp_min >= 256:
        n = max(n, 2)
    tb = _round_up(pl.cdiv(bp_min, n), 16)
    return tb, n, tb * n


@jax.jit
def energy_reg_net_forward(x, prepped):
    """x: (B, 500) float32 -> (B, 1) float32. `prepped` = prepare_params(params)."""
    B = x.shape[0]
    TB, n_tiles, Bp = _choose_tiles(B)

    # Only per-call host work: pad the batch rows (< 16 extra rows per tile).
    xp = jnp.pad(x.astype(jnp.float32), ((0, Bp - B), (0, 0)))

    resident = lambda i: (0, 0)   # weights/biases stay VMEM-resident across the grid

    out = pl.pallas_call(
        _mlp_kernel,
        out_shape=jax.ShapeDtypeStruct((Bp, P_OUT), jnp.float32),
        grid=(n_tiles,),
        in_specs=[
            pl.BlockSpec((TB, D_IN), lambda i: (i, 0)),    # x: batch-tiled, f32
            pl.BlockSpec((D_IN, P_H1), resident),          # w1 bf16
            pl.BlockSpec((1, P_H1), resident),             # b1 f32 (BN folded)
            pl.BlockSpec((P_H1, P_H2), resident),          # w2 bf16
            pl.BlockSpec((1, P_H2), resident),             # b2 f32 (BN folded)
            pl.BlockSpec((1, P_H2), resident),             # w3 row f32
            pl.BlockSpec((1, P_OUT), resident),            # b3 f32 (broadcast row)
        ],
        out_specs=pl.BlockSpec((TB, P_OUT), lambda i: (i, 0)),
        compiler_params=pltpu.CompilerParams(
            dimension_semantics=("parallel",),             # shard batch tiles across TCs
            vmem_limit_bytes=32 * 1024 * 1024,             # v5e scoped default is only 16 MiB
        ),
    )(xp, prepped["w1"], prepped["b1"], prepped["w2"], prepped["b2"],
      prepped["w3"], prepped["b3"])

    return out[:B, :D_OUT]


# -----------------------------------------------------------------------------
# Synthetic parameters + references
# -----------------------------------------------------------------------------
def _init_params(key):
    """Deterministic synthetic parameters matching energyRegNet.__init__ shapes."""
    ks = jax.random.split(key, 12)

    def lin(kw, kb, out_f, in_f):
        bound = 1.0 / jnp.sqrt(jnp.float32(in_f))
        w = jax.random.uniform(kw, (out_f, in_f), jnp.float32, -bound, bound)
        b = jax.random.uniform(kb, (out_f,), jnp.float32, -bound, bound)
        return w, b

    w1, b1 = lin(ks[0], ks[1], D_H1, D_IN)
    w2, b2 = lin(ks[2], ks[3], D_H2, D_H1)
    w3, b3 = lin(ks[4], ks[5], D_OUT, D_H2)

    return dict(
        w1=w1, b1=b1, w2=w2, b2=b2, w3=w3, b3=b3,
        bn1_gamma=1.0 + 0.1 * jax.random.normal(ks[6], (D_H1,), jnp.float32),
        bn1_beta=0.1 * jax.random.normal(ks[7], (D_H1,), jnp.float32),
        bn1_mean=0.05 * jax.random.normal(ks[8], (D_H1,), jnp.float32),
        bn1_var=1.0 + 0.1 * jax.random.uniform(ks[9], (D_H1,), jnp.float32),
        bn2_gamma=1.0 + 0.1 * jax.random.normal(ks[10], (D_H2,), jnp.float32),
        bn2_beta=0.1 * jax.random.normal(ks[11], (D_H2,), jnp.float32),
        bn2_mean=jnp.zeros((D_H2,), jnp.float32),
        bn2_var=jnp.ones((D_H2,), jnp.float32),
    )


def _leaky(v):
    return jnp.where(v >= 0, v, NEG_SLOPE * v)


def _reference_f32(x, params):
    s1, t1 = _fold_bn(params["bn1_gamma"], params["bn1_beta"],
                      params["bn1_mean"], params["bn1_var"])
    s2, t2 = _fold_bn(params["bn2_gamma"], params["bn2_beta"],
                      params["bn2_mean"], params["bn2_var"])
    h = _leaky((x @ params["w1"].T + params["b1"]) * s1 + t1)
    h = _leaky((h @ params["w2"].T + params["b2"]) * s2 + t2)
    return h @ params["w3"].T + params["b3"]


def _reference_bf16(x, params):
    """Emulates the kernel's rounding: bf16 inputs to the two MXU matmuls with f32
    accumulation, f32 bias/LeakyReLU, BN folded into W/b, final layer in pure f32."""
    def bf(a):
        return a.astype(jnp.bfloat16).astype(jnp.float32)

    s1, t1 = _fold_bn(params["bn1_gamma"], params["bn1_beta"],
                      params["bn1_mean"], params["bn1_var"])
    s2, t2 = _fold_bn(params["bn2_gamma"], params["bn2_beta"],
                      params["bn2_mean"], params["bn2_var"])
    w1 = bf(params["w1"].T * s1[None, :]); b1 = params["b1"] * s1 + t1
    w2 = bf(params["w2"].T * s2[None, :]); b2 = params["b2"] * s2 + t2
    h = _leaky(bf(x) @ w1 + b1)
    h2 = _leaky(bf(h) @ w2 + b2)
    # Final Linear(500,1) stays in f32 in the kernel (VPU multiply + reduction).
    return jnp.sum(h2 * params["w3"], axis=-1, keepdims=True) + params["b3"]


if __name__ == "__main__":
    key = jax.random.PRNGKey(0)
    k_x, k_x2, k_p = jax.random.split(key, 3)
    params = _init_params(k_p)
    prepped = prepare_params(params)          # one-time host-side prep

    # Small batch: exercises row padding (12 -> 16) and the single-tile path.
    B = 12
    x = jax.random.normal(k_x, (B, D_IN), jnp.float32)
    out = jax.block_until_ready(energy_reg_net_forward(x, prepped))
    assert out.shape == (B, D_OUT)
    ref_bf16 = _reference_bf16(x, params)
    assert jnp.allclose(out, ref_bf16, atol=2e-3, rtol=2e-3), (out, ref_bf16)
    ref_f32 = _reference_f32(x, params)
    assert jnp.allclose(out, ref_f32, atol=5e-2, rtol=5e-2), (out, ref_f32)

    # Medium batch: exercises the adaptive multi-tile grid (B=300 -> 2 tiles of 160).
    B2 = 300
    x2 = jax.random.normal(k_x2, (B2, D_IN), jnp.float32)
    out2 = jax.block_until_ready(energy_reg_net_forward(x2, prepped))
    assert out2.shape == (B2, D_OUT)
    ref2 = _reference_bf16(x2, params)
    assert jnp.allclose(out2, ref2, atol=2e-3, rtol=2e-3), (out2, ref2)

    print("KERNEL_OK")
</pallas_src>

<mosaic_0001>
module attributes {stable_mosaic.version = 11 : i64} {
  func.func @_mlp_kernel(%arg0: i32, %arg1: memref<16x500xf32, #tpu.memory_space<vmem>>, %arg2: memref<500x1024xbf16, #tpu.memory_space<vmem>>, %arg3: memref<1x1024xf32, #tpu.memory_space<vmem>>, %arg4: memref<1024x512xbf16, #tpu.memory_space<vmem>>, %arg5: memref<1x512xf32, #tpu.memory_space<vmem>>, %arg6: memref<1x512xf32, #tpu.memory_space<vmem>>, %arg7: memref<1x128xf32, #tpu.memory_space<vmem>>, %arg8: memref<16x128xf32, #tpu.memory_space<vmem>>) attributes {dimension_semantics = [#tpu.dimension_semantics<parallel>], iteration_bounds = array<i64: 1>, scalar_prefetch = 0 : i64, scratch_operands = 0 : i64, tpu.core_type = #tpu.core_type<tc>, window_params = [{transform_indices = @transform_0, window_bounds = array<i64: 16, 500>}, {pipeline_mode = #tpu.pipeline_mode<synchronous>, transform_indices = @transform_1, window_bounds = array<i64: 500, 1024>}, {pipeline_mode = #tpu.pipeline_mode<synchronous>, transform_indices = @transform_2, window_bounds = array<i64: 1, 1024>}, {pipeline_mode = #tpu.pipeline_mode<synchronous>, transform_indices = @transform_3, window_bounds = array<i64: 1024, 512>}, {pipeline_mode = #tpu.pipeline_mode<synchronous>, transform_indices = @transform_4, window_bounds = array<i64: 1, 512>}, {pipeline_mode = #tpu.pipeline_mode<synchronous>, transform_indices = @transform_5, window_bounds = array<i64: 1, 512>}, {pipeline_mode = #tpu.pipeline_mode<synchronous>, transform_indices = @transform_6, window_bounds = array<i64: 1, 128>}, {transform_indices = @transform_7, window_bounds = array<i64: 16, 128>}]} {
    %c0 = arith.constant 0 : index
    %c0_0 = arith.constant 0 : index
    %0 = vector.load %arg1[%c0, %c0_0] : memref<16x500xf32, #tpu.memory_space<vmem>>, vector<16x500xf32>
    %1 = arith.truncf %0 : vector<16x500xf32> to vector<16x500xbf16>
    %c0_1 = arith.constant 0 : index
    %c0_2 = arith.constant 0 : index
    %2 = vector.load %arg2[%c0_1, %c0_2] : memref<500x1024xbf16, #tpu.memory_space<vmem>>, vector<500x1024xbf16>
    %cst = arith.constant dense<0.000000e+00> : vector<16x1024xf32>
    %3 = tpu.matmul %1, %2, %cst {dimension_numbers = #tpu.dot_dimension_numbers<[1], [0], [0], [1], [0, 0, 1, 1], [], []>} : vector<16x500xbf16>, vector<500x1024xbf16>, vector<16x1024xf32> -> vector<16x1024xf32>
    %c0_3 = arith.constant 0 : index
    %c0_4 = arith.constant 0 : index
    %4 = vector.load %arg3[%c0_3, %c0_4] : memref<1x1024xf32, #tpu.memory_space<vmem>>, vector<1x1024xf32>
    %5 = vector.broadcast %4 : vector<1x1024xf32> to vector<16x1024xf32>
    %6 = arith.addf %3, %5 : vector<16x1024xf32>
    %cst_5 = arith.constant 0.00999999977 : f32
    %7 = vector.broadcast %cst_5 : f32 to vector<16x1024xf32>
    %8 = arith.mulf %7, %6 : vector<16x1024xf32>
    %9 = arith.maximumf %6, %8 : vector<16x1024xf32>
    %10 = arith.truncf %9 : vector<16x1024xf32> to vector<16x1024xbf16>
    %c0_6 = arith.constant 0 : index
    %c0_7 = arith.constant 0 : index
    %11 = vector.load %arg4[%c0_6, %c0_7] : memref<1024x512xbf16, #tpu.memory_space<vmem>>, vector<1024x512xbf16>
    %cst_8 = arith.constant dense<0.000000e+00> : vector<16x512xf32>
    %12 = tpu.matmul %10, %11, %cst_8 {dimension_numbers = #tpu.dot_dimension_numbers<[1], [0], [0], [1], [0, 0, 1, 1], [], []>} : vector<16x1024xbf16>, vector<1024x512xbf16>, vector<16x512xf32> -> vector<16x512xf32>
    %c0_9 = arith.constant 0 : index
    %c0_10 = arith.constant 0 : index
    %13 = vector.load %arg5[%c0_9, %c0_10] : memref<1x512xf32, #tpu.memory_space<vmem>>, vector<1x512xf32>
    %14 = vector.broadcast %13 : vector<1x512xf32> to vector<16x512xf32>
    %15 = arith.addf %12, %14 : vector<16x512xf32>
    %cst_11 = arith.constant 0.00999999977 : f32
    %16 = vector.broadcast %cst_11 : f32 to vector<16x512xf32>
    %17 = arith.mulf %16, %15 : vector<16x512xf32>
    %18 = arith.maximumf %15, %17 : vector<16x512xf32>
    %c0_12 = arith.constant 0 : index
    %c0_13 = arith.constant 0 : index
    %19 = vector.load %arg6[%c0_12, %c0_13] : memref<1x512xf32, #tpu.memory_space<vmem>>, vector<1x512xf32>
    %20 = vector.broadcast %19 : vector<1x512xf32> to vector<16x512xf32>
    %21 = arith.mulf %18, %20 : vector<16x512xf32>
    %cst_14 = arith.constant dense<0.000000e+00> : vector<16xf32>
    %22 = vector.multi_reduction <add>, %21, %cst_14 [1] : vector<16x512xf32> to vector<16xf32>
    %23 = vector.shape_cast %22 : vector<16xf32> to vector<16x1xf32>
    %c0_15 = arith.constant 0 : index
    %c0_16 = arith.constant 0 : index
    %24 = vector.load %arg7[%c0_15, %c0_16] : memref<1x128xf32, #tpu.memory_space<vmem>>, vector<1x128xf32>
    %25 = vector.broadcast %23 : vector<16x1xf32> to vector<16x128xf32>
    %26 = vector.broadcast %24 : vector<1x128xf32> to vector<16x128xf32>
    %27 = arith.addf %25, %26 : vector<16x128xf32>
    %c0_17 = arith.constant 0 : index
    %c0_18 = arith.constant 0 : index
    %28 = vector.load %arg8[%c0_17, %c0_18] : memref<16x128xf32, #tpu.memory_space<vmem>>, vector<16x128xf32>
    tpu.vector_store %arg8[%c0_17, %c0_18], %27 {strides = array<i32>} : memref<16x128xf32, #tpu.memory_space<vmem>>, vector<16x128xf32>,
    return
  }
  func.func @transform_0(%arg0: i32) -> (i32, i32) {
    %c0_i32 = arith.constant 0 : i32
    %c0_i32_0 = arith.constant 0 : i32
    return %arg0, %c0_i32 : i32, i32
  }
  func.func @transform_1(%arg0: i32) -> (i32, i32) {
    %c0_i32 = arith.constant 0 : i32
    %c0_i32_0 = arith.constant 0 : i32
    %c0_i32_1 = arith.constant 0 : i32
    return %c0_i32, %c0_i32_0 : i32, i32
  }
  func.func @transform_2(%arg0: i32) -> (i32, i32) {
    %c0_i32 = arith.constant 0 : i32
    %c0_i32_0 = arith.constant 0 : i32
    %c0_i32_1 = arith.constant 0 : i32
    return %c0_i32, %c0_i32_0 : i32, i32
  }
  func.func @transform_3(%arg0: i32) -> (i32, i32) {
    %c0_i32 = arith.constant 0 : i32
    %c0_i32_0 = arith.constant 0 : i32
    %c0_i32_1 = arith.constant 0 : i32
    return %c0_i32, %c0_i32_0 : i32, i32
  }
  func.func @transform_4(%arg0: i32) -> (i32, i32) {
    %c0_i32 = arith.constant 0 : i32
    %c0_i32_0 = arith.constant 0 : i32
    %c0_i32_1 = arith.constant 0 : i32
    return %c0_i32, %c0_i32_0 : i32, i32
  }
  func.func @transform_5(%arg0: i32) -> (i32, i32) {
    %c0_i32 = arith.constant 0 : i32
    %c0_i32_0 = arith.constant 0 : i32
    %c0_i32_1 = arith.constant 0 : i32
    return %c0_i32, %c0_i32_0 : i32, i32
  }
  func.func @transform_6(%arg0: i32) -> (i32, i32) {
    %c0_i32 = arith.constant 0 : i32
    %c0_i32_0 = arith.constant 0 : i32
    %c0_i32_1 = arith.constant 0 : i32
    return %c0_i32, %c0_i32_0 : i32, i32
  }
  func.func @transform_7(%arg0: i32) -> (i32, i32) {
    %c0_i32 = arith.constant 0 : i32
    %c0_i32_0 = arith.constant 0 : i32
    return %arg0, %c0_i32 : i32, i32
  }
}

</mosaic_0001>

<bundles_post_ra>
// kernel: energy_reg_net_forward.1
= control target key start
LH: loop header
LB: loop body
LE: loop exit
PB: predicated region body
PF: predicated region fallthrough
CT: control target
= control target key end

     0   :  { %12 = vsyncpa [#allocation3], 0  ;;  %s7137_s0 = inlined_call_operand.vmem [shape: f32[16,500], index: 0, kind: input, shape index: {}]   ;;  %s7138_s1 = inlined_call_operand.hbm [shape: bf16[500,1024], index: 1, kind: input, shape index: {}]   ;;  %s7139_s2 = inlined_call_operand.vmem [shape: f32[1,1024], index: 2, kind: input, shape index: {}]   ;;  %s7140_s3 = inlined_call_operand.hbm [shape: bf16[1024,512], index: 3, kind: input, shape index: {}]   ;;  %s7141_s4 = inlined_call_operand.vmem [shape: f32[1,512], index: 4, kind: input, shape index: {}]   ;;  %s7142_s5 = inlined_call_operand.vmem [shape: f32[1,512], index: 5, kind: input, shape index: {}]   ;;  %s7143_s6 = inlined_call_operand.vmem [shape: f32[1,128], index: 6, kind: input, shape index: {}]   ;;  %s7144_s7 = inlined_call_operand.vmem [shape: f32[16,128], index: 7, kind: output, shape index: {}]  }
   0x1   :  { %s20_s26 = sshll.u32 %s7138_s1, 4  ;;  %s21_s26 = int_to_ptr.hbm [resolvable:$true] %s20_s26 }
   0x2   :  { %13 = vsyncpa [#allocation5], 0  ;;  %s6758_s27 = smov [#allocation2]   ;;  %s35_s8 = sshll.u32 %s7140_s3, 4  ;;  %s36_s8 = int_to_ptr.hbm [resolvable:$true] %s35_s8 }
   0x3   :  { %s22_s28 = sshll.u32 %s6758_s27, 4  ;;  %s6759_s9 = smov 512   ;;  %s23_s28 = int_to_ptr.vmem [resolvable:$true] %s22_s28 }
   0x4   :  { %s6760_s10 = smov 32   ;;  %s6761_s11 = smov [#allocation4]  }
   0x5   :  { %28 = dma.hbm_to_vmem [thread:$0]  %s21_s26, 32256, %s23_s28, [#allocation3], %s6759_s9, %s6759_s9, %s6760_s10  }
   0x6   :  { %s37_s12 = sshll.u32 %s6761_s11, 4  ;;  %s6762_s13 = smov 256   ;;  %s38_s12 = int_to_ptr.vmem [resolvable:$true] %s37_s12 }
   0x7   :  { %s6763_s14 = smov 16  }
   0x8   :  { %43 = dma.hbm_to_vmem [thread:$0]  %s36_s8, 32768, %s38_s12, [#allocation5], %s6762_s13, %s6762_s13, %s6763_s14  }
   0x9   :  { %6754 = dma.done.wait [#allocation3], 32256  }
   0xa   :  { %6755 = vsyncadd [#allocation3], 4294935040 }
   0xb   :  { %6756 = dma.done.wait [#allocation5], 32768  }
   0xc   :  { %6757 = vsyncadd [#allocation5], 4294934528  ;;  %vm1604_vm0 = vcmask 1041408   ;;  %v4395_v0 = vld [vmem:[#allocation2 + $0x1c0] sm:$0xf]  ;;  %vm1600_vm1 = vcmask 949248  }
   0xd   :  { %v6253_v1 = vld [vmem:[#allocation2 + $0x1dc] sm:$0xf0] }
   0xe   :  { %v4651_v2 = vld [vmem:[#allocation2 + $0x3c0] sm:$0xf]  ;;  %v4396_v3 = vor.u32 %v6253_v1, %v4395_v0 }
   0xf   :  { %v6317_v4 = vld [vmem:[#allocation2 + $0x3dc] sm:$0xf0] }
  0x10   :  { %v4907_v5 = vld [vmem:[#allocation2 + $0x5c0] sm:$0xf]  ;;  %v4652_v7 = vor.u32 %v6317_v4, %v4651_v2  ;;  %1629 = vmatpush.bf16.msra.mxu0 %v4396_v3 }
  0x11   :  { %v6381_v6 = vld [vmem:[#allocation2 + $0x5dc] sm:$0xf0] }
  0x12   :  { %v4908_v8 = vor.u32 %v6381_v6, %v4907_v5  ;;  %v6810_v9 = vld [vmem:[#allocation2 + $0x7c0] sm:$0x33]  ;;  %1643 = vmatpush.bf16.msra.mxu1 %v4652_v7 }
  0x13   :  { %v4363_v10 = vld [vmem:[#allocation2 + $0x180] sm:$0xf]  ;;  %v1088_v12 = vunpack.c.l.b16 %v6810_v9 }
  0x14   :  { %v6245_v11 = vld [vmem:[#allocation2 + $0x19c] sm:$0xf0]  ;;  %1657 = vmatpush.bf16.msra.mxu2 %v4908_v8 }
  0x15   :  { %v4364_v13 = vor.u32 %v6245_v11, %v4363_v10  ;;  %v4619_v14 = vld [vmem:[#allocation2 + $0x380] sm:$0xf]  ;;  %v1344_v21 = vpack.c.b16 %v1088_v12, %v1088_v12 }
  0x16   :  { %v6309_v15 = vld [vmem:[#allocation2 + $0x39c] sm:$0xf0] }
  0x17   :  { %v4875_v16 = vld [vmem:[#allocation2 + $0x580] sm:$0xf]  ;;  %v4620_v17 = vor.u32 %v6309_v15, %v4619_v14  ;;  %v1606_v29 = vsel %vm1604_vm0, %v1344_v21, 0  ;;  %1630 = vmatpush.bf16.msra.mxu0 %v4364_v13 }
  0x18   :  { %v6373_v18 = vld [vmem:[#allocation2 + $0x59c] sm:$0xf0]  ;;  %1671 = vmatpush.bf16.msra.mxu3 %v1606_v29  ;;  %v6313_v29 = vld [vmem:[#allocation2 + $0x3c4] sm:$0xf] }
  0x19   :  { %v5131_v19 = vld [vmem:[#allocation2 + $0x780] sm:$0xf]  ;;  %v4876_v22 = vor.u32 %v6373_v18, %v4875_v16  ;;  %1644 = vmatpush.bf16.msra.mxu1 %v4620_v17 }
  0x1a   :  { %v6437_v20 = vld [vmem:[#allocation2 + $0x79c] sm:$0xf0] }
  0x1b   :  { %v4331_v23 = vld [vmem:[#allocation2 + $0x140] sm:$0xf]  ;;  %v5132_v31 = vor.u32 %v6437_v20, %v5131_v19  ;;  %1658 = vmatpush.bf16.msra.mxu2 %v4876_v22 }
  0x1c   :  { %v6237_v24 = vld [vmem:[#allocation2 + $0x15c] sm:$0xf0] }
  0x1d   :  { %v4587_v25 = vld [vmem:[#allocation2 + $0x340] sm:$0xf]  ;;  %v4332_v30 = vor.u32 %v6237_v24, %v4331_v23  ;;  %1672 = vmatpush.bf16.msra.mxu3 %v5132_v31 }
  0x1e   :  { %v6301_v26 = vld [vmem:[#allocation2 + $0x35c] sm:$0xf0] }
  0x1f   :  { %v4843_v27 = vld [vmem:[#allocation2 + $0x540] sm:$0xf]  ;;  %v4588_v32 = vor.u32 %v6301_v26, %v4587_v25  ;;  %1631 = vmatpush.bf16.msra.mxu0 %v4332_v30  ;;  %v1089_v30 = vunpack.c.h.b16 %v6810_v9  ;;  %v6305_v9 = vld [vmem:[#allocation2 + $0x384] sm:$0xf] }
  0x20   :  { %v6365_v28 = vld [vmem:[#allocation2 + $0x55c] sm:$0xf0] }
  0x21   :  { %v5099_v33 = vld [vmem:[#allocation2 + $0x740] sm:$0xf]  ;;  %v4844_v36 = vor.u32 %v6365_v28, %v4843_v27  ;;  %1645 = vmatpush.bf16.msra.mxu1 %v4588_v32  ;;  %v6249_v27 = vld [vmem:[#allocation2 + $0x1c4] sm:$0xf] }
  0x22   :  { %v4299_v34 = vld [vmem:[#allocation2 + $0x100] sm:$0xf]  ;;  %v4397_v28 = vld [vmem:[#allocation2 + $0x1e0] sm:$0xf0] }
  0x23   :  { %v6229_v35 = vld [vmem:[#allocation2 + $0x11c] sm:$0xf0]  ;;  %1659 = vmatpush.bf16.msra.mxu2 %v4844_v36  ;;  %v4653_v32 = vld [vmem:[#allocation2 + $0x3e0] sm:$0xf0] }
  0x24   :  { %v6429_v37 = vld [vmem:[#allocation2 + $0x75c] sm:$0xf0]  ;;  %v4300_v42 = vor.u32 %v6229_v35, %v4299_v34  ;;  %v4909_v34 = vld [vmem:[#allocation2 + $0x5e0] sm:$0xf0] }
  0x25   :  { %v4555_v38 = vld [vmem:[#allocation2 + $0x300] sm:$0xf]  ;;  %v5100_v43 = vor.u32 %v6429_v37, %v5099_v33  ;;  %v6377_v33 = vld [vmem:[#allocation2 + $0x5c4] sm:$0xf] }
  0x26   :  { %v6293_v39 = vld [vmem:[#allocation2 + $0x31c] sm:$0xf0]  ;;  %1632 = vmatpush.bf16.msra.mxu0 %v4300_v42  ;;  %v4912_v42 = vor.u32 %v6377_v33, %v4909_v34  ;;  %v6345_v33 = vld [vmem:[#allocation2 + $0x4c4] sm:$0xf] }
  0x27   :  { %v4811_v40 = vld [vmem:[#allocation2 + $0x500] sm:$0xf]  ;;  %v4556_v44 = vor.u32 %v6293_v39, %v4555_v38  ;;  %1673 = vmatpush.bf16.msra.mxu3 %v5100_v43  ;;  %v4400_v38 = vor.u32 %v6249_v27, %v4397_v28  ;;  %v1345_v43 = vpack.c.b16 %v1089_v30, %v1089_v30  ;;  %v4269_v30 = vld [vmem:[#allocation2 + $0xe0] sm:$0xf0] }
  0x28   :  { %v6357_v41 = vld [vmem:[#allocation2 + $0x51c] sm:$0xf0]  ;;  %v4781_v34 = vld [vmem:[#allocation2 + $0x4e0] sm:$0xf0] }
  0x29   :  { %v5067_v45 = vld [vmem:[#allocation2 + $0x700] sm:$0xf]  ;;  %v4812_v48 = vor.u32 %v6357_v41, %v4811_v40  ;;  %1646 = vmatpush.bf16.msra.mxu1 %v4556_v44  ;;  %v4656_v41 = vor.u32 %v6313_v29, %v4653_v32  ;;  %v6241_v44 = vld [vmem:[#allocation2 + $0x184] sm:$0xf] }
  0x2a   :  { %v4267_v46 = vld [vmem:[#allocation2 + $0xc0] sm:$0xf]  ;;  %v6217_v29 = vld [vmem:[#allocation2 + $0xc4] sm:$0xf] }
  0x2b   :  { %v6221_v47 = vld [vmem:[#allocation2 + $0xdc] sm:$0xf0]  ;;  %1660 = vmatpush.bf16.msra.mxu2 %v4812_v48  ;;  %v4877_v48 = vld [vmem:[#allocation2 + $0x5a0] sm:$0xf0] }
  0x2c   :  { %v6421_v49 = vld [vmem:[#allocation2 + $0x71c] sm:$0xf0]  ;;  %v4268_v54 = vor.u32 %v6221_v47, %v4267_v46  ;;  %v4621_v46 = vld [vmem:[#allocation2 + $0x3a0] sm:$0xf0] }
  0x2d   :  { %v4523_v50 = vld [vmem:[#allocation2 + $0x2c0] sm:$0xf]  ;;  %v5068_v55 = vor.u32 %v6421_v49, %v5067_v45  ;;  %v4365_v45 = vld [vmem:[#allocation2 + $0x1a0] sm:$0xf0] }
  0x2e   :  { %v6285_v51 = vld [vmem:[#allocation2 + $0x2dc] sm:$0xf0]  ;;  %1633 = vmatpush.bf16.msra.mxu0 %v4268_v54  ;;  %v6369_v47 = vld [vmem:[#allocation2 + $0x584] sm:$0xf] }
  0x2f   :  { %v4779_v52 = vld [vmem:[#allocation2 + $0x4c0] sm:$0xf]  ;;  %v4524_v56 = vor.u32 %v6285_v51, %v4523_v50  ;;  %1674 = vmatpush.bf16.msra.mxu3 %v5068_v55  ;;  %v6433_v50 = vld [vmem:[#allocation2 + $0x784] sm:$0xf] }
  0x30   :  { %v6349_v53 = vld [vmem:[#allocation2 + $0x4dc] sm:$0xf0]  ;;  %v5133_v51 = vld [vmem:[#allocation2 + $0x7a0] sm:$0xf0] }
  0x31   :  { %v5035_v57 = vld [vmem:[#allocation2 + $0x6c0] sm:$0xf]  ;;  %v4780_v60 = vor.u32 %v6349_v53, %v4779_v52  ;;  %1647 = vmatpush.bf16.msra.mxu1 %v4524_v56  ;;  %v4368_v52 = vor.u32 %v6241_v44, %v4365_v45  ;;  %v6233_v53 = vld [vmem:[#allocation2 + $0x144] sm:$0xf]  ;;  %v1609_v56 = vsel %vm1604_vm0, %v1345_v43, 0 }
  0x32   :  { %v4235_v58 = vld [vmem:[#allocation2 + $0x80] sm:$0xf]  ;;  %v4333_v54 = vld [vmem:[#allocation2 + $0x160] sm:$0xf0] }
  0x33   :  { %v6213_v59 = vld [vmem:[#allocation2 + $0x9c] sm:$0xf0]  ;;  %1661 = vmatpush.bf16.msra.mxu2 %v4780_v60  ;;  %v6297_v55 = vld [vmem:[#allocation2 + $0x344] sm:$0xf]  ;;  %v60_v60 = vld [vmem:[%s7137_s0 + $0x10] sm:$0xff] }
  0x34   :  { %v6413_v61 = vld [vmem:[#allocation2 + $0x6dc] sm:$0xf0]  ;;  %v4236_v2 = vor.u32 %v6213_v59, %v4235_v58  ;;  %v4880_v58 = vor.u32 %v6369_v47, %v4877_v48  ;;  %v4589_v59 = vld [vmem:[#allocation2 + $0x360] sm:$0xf0] }
  0x35   :  { %v4491_v62 = vld [vmem:[#allocation2 + $0x280] sm:$0xf]  ;;  %v5036_v3 = vor.u32 %v6413_v61, %v5035_v57  ;;  %v4624_v57 = vor.u32 %v6305_v9, %v4621_v46  ;;  %v64_v61 = vld [vmem:[%s7137_s0 + $0x30] sm:$0xff]  ;;  %v4525_v32 = vld [vmem:[#allocation2 + $0x2e0] sm:$0xf0] }
  0x36   :  { %v6277_v63 = vld [vmem:[#allocation2 + $0x29c] sm:$0xf0]  ;;  %1634 = vmatpush.bf16.msra.mxu0 %v4236_v2  ;;  %v5101_v2 = vld [vmem:[#allocation2 + $0x760] sm:$0xf0] }
  0x37   :  { %v4747_v0 = vld [vmem:[#allocation2 + $0x480] sm:$0xf]  ;;  %v4492_v4 = vor.u32 %v6277_v63, %v4491_v62  ;;  %1675 = vmatpush.bf16.msra.mxu3 %v5036_v3  ;;  %v6361_v62 = vld [vmem:[#allocation2 + $0x544] sm:$0xf] }
  0x38   :  { %v6341_v1 = vld [vmem:[#allocation2 + $0x49c] sm:$0xf0]  ;;  %v4845_v63 = vld [vmem:[#allocation2 + $0x560] sm:$0xf0] }
  0x39   :  { %v5003_v5 = vld [vmem:[#allocation2 + $0x680] sm:$0xf]  ;;  %v4748_v8 = vor.u32 %v6341_v1, %v4747_v0  ;;  %1648 = vmatpush.bf16.msra.mxu1 %v4492_v4  ;;  %v6822_v0 = vpack.c.bf16 %v64_v61, %v60_v60  ;;  %v6425_v1 = vld [vmem:[#allocation2 + $0x744] sm:$0xf] }
  0x3a   :  { %v4203_v6 = vld [vmem:[#allocation2 + $0x40] sm:$0xf]  ;;  %v6225_v3 = vld [vmem:[#allocation2 + $0x104] sm:$0xf] }
  0x3b   :  { %v6205_v7 = vld [vmem:[#allocation2 + $0x5c] sm:$0xf0]  ;;  %1662 = vmatpush.bf16.msra.mxu2 %v4748_v8  ;;  %v4301_v4 = vld [vmem:[#allocation2 + $0x120] sm:$0xf0]  ;;  %v4592_v8 = vor.u32 %v6297_v55, %v4589_v59 }
  0x3c   :  { %v6405_v10 = vld [vmem:[#allocation2 + $0x69c] sm:$0xf0]  ;;  %v4204_v15 = vor.u32 %v6205_v7, %v4203_v6  ;;  %v5136_v6 = vor.u32 %v6433_v50, %v5133_v51  ;;  %v4336_v7 = vor.u32 %v6233_v53, %v4333_v54  ;;  %v6273_v43 = vld [vmem:[#allocation2 + $0x284] sm:$0xf] }
  0x3d   :  { %v4459_v11 = vld [vmem:[#allocation2 + $0x240] sm:$0xf]  ;;  %v5004_v18 = vor.u32 %v6405_v10, %v5003_v5  ;;  %v4493_v44 = vld [vmem:[#allocation2 + $0x2a0] sm:$0xf0] }
  0x3e   :  { %v6269_v12 = vld [vmem:[#allocation2 + $0x25c] sm:$0xf0]  ;;  %1635 = vmatpush.bf16.msra.mxu0 %v4204_v15  ;;  %v4557_v15 = vld [vmem:[#allocation2 + $0x320] sm:$0xf0]  ;;  %v4496_v50 = vor.u32 %v6273_v43, %v4493_v44  ;;  %v6238_v43 = vld [vmem:[#allocation2 + $0x164] sm:$0xf0] }
  0x3f   :  { %v4715_v13 = vld [vmem:[#allocation2 + $0x440] sm:$0xf]  ;;  %v4460_v19 = vor.u32 %v6269_v12, %v4459_v11  ;;  %1676 = vmatpush.bf16.msra.mxu3 %v5004_v18  ;;  %v61_v11 = vld [vmem:[%s7137_s0 + $0x18] sm:$0xff]  ;;  %v59_v18 = vld [vmem:[%s7137_s0 + $0x8] sm:$0xff] }
  0x40   :  { %v6333_v14 = vld [vmem:[#allocation2 + $0x45c] sm:$0xf0]  ;;  %v65_v12 = vld [vmem:[%s7137_s0 + $0x38] sm:$0xff]  ;;  %v6337_v45 = vld [vmem:[#allocation2 + $0x484] sm:$0xf] }
  0x41   :  { %v4971_v16 = vld [vmem:[#allocation2 + $0x640] sm:$0xf]  ;;  %v4716_v23 = vor.u32 %v6333_v14, %v4715_v13  ;;  %1649 = vmatpush.bf16.msra.mxu1 %v4460_v19  ;;  %v4848_v13 = vor.u32 %v6361_v62, %v4845_v63  ;;  %v6289_v14 = vld [vmem:[#allocation2 + $0x304] sm:$0xf]  ;;  %v4595_v44 = vld [vmem:[#allocation2 + $0x348] sm:$0xf] }
  0x42   :  { %v6397_v17 = vld [vmem:[#allocation2 + $0x65c] sm:$0xf0]  ;;  %v6353_v19 = vld [vmem:[#allocation2 + $0x504] sm:$0xf]  ;;  %v4560_v27 = vor.u32 %v6289_v14, %v4557_v15 }
  0x43   :  { %v4171_v20 = vld [vmem:[#allocation2] sm:$0xf]  ;;  %v4972_v35 = vor.u32 %v6397_v17, %v4971_v16  ;;  %1663 = vmatpush.bf16.msra.mxu2 %v4716_v23  ;;  %v6838_v17 = vpack.c.bf16 %v65_v12, %v61_v11  ;;  %v5104_v23 = vor.u32 %v6425_v1, %v5101_v2  ;;  %v4749_v9 = vld [vmem:[#allocation2 + $0x4a0] sm:$0xf0]  ;;  %v6254_v11 = vld [vmem:[#allocation2 + $0x1e4] sm:$0xf0] }
  0x44   :  { %v6197_v21 = vld [vmem:[#allocation2 + $0x1c] sm:$0xf0]  ;;  %v6401_v48 = vld [vmem:[#allocation2 + $0x684] sm:$0xf]  ;;  %v4752_v51 = vor.u32 %v6337_v45, %v4749_v9  ;;  %v4659_v12 = vld [vmem:[#allocation2 + $0x3c8] sm:$0xf] }
  0x45   :  { %v4427_v22 = vld [vmem:[#allocation2 + $0x200] sm:$0xf]  ;;  %v4172_v31 = vor.u32 %v6197_v21, %v4171_v20  ;;  %1677 = vmatpush.bf16.msra.mxu3 %v4972_v35  ;;  %v4813_v20 = vld [vmem:[#allocation2 + $0x520] sm:$0xf0]  ;;  %v63_v21 = vld [vmem:[%s7137_s0 + $0x28] sm:$0xff] }
  0x46   :  { %v6261_v24 = vld [vmem:[#allocation2 + $0x21c] sm:$0xf0]  ;;  %v4816_v28 = vor.u32 %v6353_v19, %v4813_v20  ;;  %v4205_v53 = vld [vmem:[#allocation2 + $0x60] sm:$0xf0]  ;;  %v6382_v19 = vld [vmem:[#allocation2 + $0x5e4] sm:$0xf0] }
  0x47   :  { %v4683_v25 = vld [vmem:[#allocation2 + $0x400] sm:$0xf]  ;;  %v4428_v36 = vor.u32 %v6261_v24, %v4427_v22  ;;  %1636 = vmatpush.bf16.msra.mxu0 %v4172_v31  ;;  %v6850_v22 = vpack.c.bf16 %v63_v21, %v59_v18  ;;  %v4304_v24 = vor.u32 %v6225_v3, %v4301_v4  ;;  %v6281_v31 = vld [vmem:[#allocation2 + $0x2c4] sm:$0xf]  ;;  %v4915_v18 = vld [vmem:[#allocation2 + $0x5c8] sm:$0xf] }
  0x48   :  { %v6325_v26 = vld [vmem:[#allocation2 + $0x41c] sm:$0xf0]  ;;  %v6265_v54 = vld [vmem:[#allocation2 + $0x244] sm:$0xf]  ;;  %v6302_v45 = vld [vmem:[#allocation2 + $0x364] sm:$0xf0] }
  0x49   :  { %v4684_v37 = vor.u32 %v6325_v26, %v4683_v25  ;;  %v4939_v39 = vld [vmem:[#allocation2 + $0x600] sm:$0xf]  ;;  %1650 = vmatpush.bf16.msra.mxu1 %v4428_v36  ;;  %v6417_v25 = vld [vmem:[#allocation2 + $0x704] sm:$0xf]  ;;  %v4272_v36 = vor.u32 %v6217_v29, %v4269_v30  ;;  %v4916_v29 = vor.u32 %v6382_v19, %v4915_v18  ;;  %v6246_v30 = vld [vmem:[#allocation2 + $0x1a4] sm:$0xf0] }
  0x4a   :  { %v6389_v40 = vld [vmem:[#allocation2 + $0x61c] sm:$0xf0]  ;;  %v5069_v26 = vld [vmem:[#allocation2 + $0x720] sm:$0xf0]  ;;  %v4851_v9 = vld [vmem:[#allocation2 + $0x548] sm:$0xf] }
  0x4b   :  { %v4940_v49 = vor.u32 %v6389_v40, %v4939_v39  ;;  %1664 = vmatpush.bf16.msra.mxu2 %v4684_v37  ;;  %1685 = vmatpush.bf16.msrb.mxu0 %v4400_v38  ;;  %v58_v5 = vld [vmem:[%s7137_s0] sm:$0xff]  ;;  %v5072_v35 = vor.u32 %v6417_v25, %v5069_v26  ;;  %v4528_v39 = vor.u32 %v6281_v31, %v4525_v32  ;;  %v4627_v31 = vld [vmem:[#allocation2 + $0x388] sm:$0xf] }
  0x4c   :  { %v62_v10 = vld [vmem:[%s7137_s0 + $0x20] sm:$0xff]  ;;  %1651 = vmatmul.bf16.vlgmr.msra.gmra.mxu1 %v6850_v22  ;;  %v4784_v40 = vor.u32 %v6345_v33, %v4781_v34  ;;  %v6310_v32 = vld [vmem:[#allocation2 + $0x3a4] sm:$0xf0] }
  0x4d   :  { %1699 = vmatpush.bf16.msrb.mxu1 %v4656_v41  ;;  %1678 = vmatpush.bf16.msra.mxu3 %v4940_v49  ;;  %v6836_v16 = vpack.c.bf16 %v62_v10, %v58_v5  ;;  %v6409_v37 = vld [vmem:[#allocation2 + $0x6c4] sm:$0xf]  ;;  %v4883_v34 = vld [vmem:[#allocation2 + $0x588] sm:$0xf] }
  0x4e   :  { %1665 = vmatmul.bf16.vlgmr.msra.gmra.mxu2 %v6822_v0  ;;  %v5037_v38 = vld [vmem:[#allocation2 + $0x6e0] sm:$0xf0]  ;;  %v6214_v19 = vld [vmem:[#allocation2 + $0xa4] sm:$0xf0] }
  0x4f   :  { %1713 = vmatpush.bf16.msrb.mxu2 %v4912_v42  ;;  %1686 = vmatpush.bf16.msrb.mxu0 %v4368_v52  ;;  %v6209_v41 = vld [vmem:[#allocation2 + $0x84] sm:$0xf]  ;;  %v5040_v46 = vor.u32 %v6409_v37, %v5037_v38 }
  0x50   :  { %1637 = vmatmul.bf16.vlgmr.msra.gmra.mxu0 %v6836_v16  ;;  %5161 = vmatmul.msk.bf16.vlgmr.msra.gmra.mxu3 %vm1600_vm1, %v6838_v17  ;;  %v4237_v42 = vld [vmem:[#allocation2 + $0xa0] sm:$0xf0] }
  0x51   :  { %1727 = vmatpush.bf16.msrb.mxu3 %v1609_v56  ;;  %1700 = vmatpush.bf16.msrb.mxu1 %v4624_v57  ;;  %v4240_v47 = vor.u32 %v6209_v41, %v4237_v42  ;;  %v5005_v49 = vld [vmem:[#allocation2 + $0x6a0] sm:$0xf0]  ;;  %v4339_v41 = vld [vmem:[#allocation2 + $0x148] sm:$0xf] }
  0x52   :  { %v6201_v52 = vld [vmem:[#allocation2 + $0x44] sm:$0xf]  ;;  %v5008_v59 = vor.u32 %v6401_v48, %v5005_v49  ;;  %v4340_v48 = vor.u32 %v6238_v43, %v4339_v41  ;;  %v4596_v49 = vor.u32 %v6302_v45, %v4595_v44  ;;  %v6198_v43 = vld [vmem:[#allocation2 + $0x24] sm:$0xf0] }
  0x53   :  { %1714 = vmatpush.bf16.msrb.mxu2 %v4880_v58  ;;  %1687 = vmatpush.bf16.msrb.mxu0 %v4336_v7  ;;  %v4461_v55 = vld [vmem:[#allocation2 + $0x260] sm:$0xf0]  ;;  %v6853_v58 = vld [vmem:[#allocation2 + $0x7c8] sm:$0x33]  ;;  %v4208_v60 = vor.u32 %v6201_v52, %v4205_v53 }
  0x54   :  { %v6329_v56 = vld [vmem:[#allocation2 + $0x444] sm:$0xf]  ;;  %v4464_v1 = vor.u32 %v6265_v54, %v4461_v55  ;;  %v1090_v10 = vunpack.c.l.b16 %v6853_v58  ;;  %v4307_v52 = vld [vmem:[#allocation2 + $0x108] sm:$0xf] }
  0x55   :  { %1728 = vmatpush.bf16.msrb.mxu3 %v5136_v6  ;;  %1701 = vmatpush.bf16.msrb.mxu1 %v4592_v8  ;;  %v4717_v57 = vld [vmem:[#allocation2 + $0x460] sm:$0xf0]  ;;  %v4403_v8 = vld [vmem:[#allocation2 + $0x1c8] sm:$0xf] }
  0x56   :  { %v6393_v61 = vld [vmem:[#allocation2 + $0x644] sm:$0xf]  ;;  %v4720_v2 = vor.u32 %v6329_v56, %v4717_v57  ;;  %v4404_v25 = vor.u32 %v6254_v11, %v4403_v8  ;;  %v6230_v54 = vld [vmem:[#allocation2 + $0x124] sm:$0xf0] }
  0x57   :  { %1715 = vmatpush.bf16.msrb.mxu2 %v4848_v13  ;;  %1688 = vmatpush.bf16.msrb.mxu0 %v4304_v24  ;;  %v4973_v62 = vld [vmem:[#allocation2 + $0x660] sm:$0xf0]  ;;  %v6318_v13 = vld [vmem:[#allocation2 + $0x3e4] sm:$0xf0] }
  0x58   :  { %v6193_v63 = vld [vmem:[#allocation2 + $0x4] sm:$0xf]  ;;  %v4976_v14 = vor.u32 %v6393_v61, %v4973_v62  ;;  %v4660_v26 = vor.u32 %v6318_v13, %v4659_v12  ;;  %v4563_v55 = vld [vmem:[#allocation2 + $0x308] sm:$0xf]  ;;  %v4308_v61 = vor.u32 %v6230_v54, %v4307_v52  ;;  %v6378_v54 = vld [vmem:[#allocation2 + $0x5cc] sm:$0xf] }
  0x59   :  { %1729 = vmatpush.bf16.msrb.mxu3 %v5104_v23  ;;  %1702 = vmatpush.bf16.msrb.mxu1 %v4560_v27  ;;  %v4173_v3 = vld [vmem:[#allocation2 + $0x20] sm:$0xf0]  ;;  %v1346_v27 = vpack.c.b16 %v1090_v10, %v1090_v10  ;;  %v6294_v56 = vld [vmem:[#allocation2 + $0x324] sm:$0xf0] }
  0x5a   :  { %v6257_v4 = vld [vmem:[#allocation2 + $0x204] sm:$0xf]  ;;  %v4176_v15 = vor.u32 %v6193_v63, %v4173_v3  ;;  %v4819_v57 = vld [vmem:[#allocation2 + $0x508] sm:$0xf]  ;;  %v4564_v62 = vor.u32 %v6294_v56, %v4563_v55  ;;  %v4917_v55 = vld [vmem:[#allocation2 + $0x5e8] sm:$0xf0] }
  0x5b   :  { %1716 = vmatpush.bf16.msrb.mxu2 %v4816_v28  ;;  %1689 = vmatpush.bf16.msrb.mxu0 %v4272_v36  ;;  %v4429_v5 = vld [vmem:[#allocation2 + $0x220] sm:$0xf0]  ;;  %v4371_v28 = vld [vmem:[#allocation2 + $0x188] sm:$0xf]  ;;  %v1612_v37 = vsel %vm1604_vm0, %v1346_v27, 0 }
  0x5c   :  { %v6321_v6 = vld [vmem:[#allocation2 + $0x404] sm:$0xf]  ;;  %v4432_v20 = vor.u32 %v6257_v4, %v4429_v5  ;;  %v5139_v36 = vld [vmem:[#allocation2 + $0x788] sm:$0xf]  ;;  %v4372_v38 = vor.u32 %v6246_v30, %v4371_v28 }
  0x5d   :  { %1730 = vmatpush.bf16.msrb.mxu3 %v5072_v35  ;;  %1703 = vmatpush.bf16.msrb.mxu1 %v4528_v39  ;;  %v4685_v7 = vld [vmem:[#allocation2 + $0x420] sm:$0xf0]  ;;  %v6374_v35 = vld [vmem:[#allocation2 + $0x5a4] sm:$0xf0]  ;;  %v4628_v39 = vor.u32 %v6310_v32, %v4627_v31 }
  0x5e   :  { %v4688_v21 = vor.u32 %v6321_v6, %v4685_v7  ;;  %v6385_v23 = vld [vmem:[#allocation2 + $0x604] sm:$0xf]  ;;  %v4884_v42 = vor.u32 %v6374_v35, %v4883_v34  ;;  %v5075_v63 = vld [vmem:[#allocation2 + $0x708] sm:$0xf] }
  0x5f   :  { %1717 = vmatpush.bf16.msrb.mxu2 %v4784_v40  ;;  %1690 = vmatpush.bf16.msrb.mxu0 %v4240_v47  ;;  %v4941_v24 = vld [vmem:[#allocation2 + $0x620] sm:$0xf0]  ;;  %v6438_v40 = vld [vmem:[#allocation2 + $0x7a4] sm:$0xf0] }
  0x60   :  { %v4944_v33 = vor.u32 %v6385_v23, %v4941_v24  ;;  %v5140_v47 = vor.u32 %v6438_v40, %v5139_v36  ;;  %v6222_v4 = vld [vmem:[#allocation2 + $0xe4] sm:$0xf0] }
  0x61   :  { %1731 = vmatpush.bf16.msrb.mxu3 %v5040_v46  ;;  %1704 = vmatpush.bf16.msrb.mxu1 %v4496_v50  ;;  %v6366_v46 = vld [vmem:[#allocation2 + $0x564] sm:$0xf0] }
  0x62   :  { %v5107_v50 = vld [vmem:[#allocation2 + $0x748] sm:$0xf]  ;;  %v4852_v53 = vor.u32 %v6366_v46, %v4851_v9 }
  0x63   :  { %1718 = vmatpush.bf16.msrb.mxu2 %v4752_v51  ;;  %1691 = vmatpush.bf16.msrb.mxu0 %v4208_v60  ;;  %v6430_v51 = vld [vmem:[#allocation2 + $0x764] sm:$0xf0] }
  0x64   :  { %v5108_v60 = vor.u32 %v6430_v51, %v5107_v50  ;;  %v4531_v5 = vld [vmem:[#allocation2 + $0x2c8] sm:$0xf]  ;;  %v4405_v50 = vld [vmem:[#allocation2 + $0x1e8] sm:$0xf0] }
  0x65   :  { %1732 = vmatpush.bf16.msrb.mxu3 %v5008_v59  ;;  %1705 = vmatpush.bf16.msrb.mxu1 %v4464_v1  ;;  %v6358_v59 = vld [vmem:[#allocation2 + $0x524] sm:$0xf0]  ;;  %v6314_v51 = vld [vmem:[#allocation2 + $0x3cc] sm:$0xf] }
  0x66   :  { %v6422_v1 = vld [vmem:[#allocation2 + $0x724] sm:$0xf0]  ;;  %v4820_v3 = vor.u32 %v6358_v59, %v4819_v57 }
  0x67   :  { %1719 = vmatpush.bf16.msrb.mxu2 %v4720_v2  ;;  %1692 = vmatpush.bf16.msrb.mxu0 %v4176_v15  ;;  %v4275_v2 = vld [vmem:[#allocation2 + $0xc8] sm:$0xf]  ;;  %v5076_v10 = vor.u32 %v6422_v1, %v5075_v63 }
  0x68   :  { %v6286_v6 = vld [vmem:[#allocation2 + $0x2e4] sm:$0xf0]  ;;  %v4276_v11 = vor.u32 %v6222_v4, %v4275_v2  ;;  %v6242_v2 = vld [vmem:[#allocation2 + $0x18c] sm:$0xf] }
  0x69   :  { %1733 = vmatpush.bf16.msrb.mxu3 %v4976_v14  ;;  %1706 = vmatpush.bf16.msrb.mxu1 %v4432_v20  ;;  %v4787_v7 = vld [vmem:[#allocation2 + $0x4c8] sm:$0xf]  ;;  %v4532_v12 = vor.u32 %v6286_v6, %v4531_v5  ;;  %v6306_v4 = vld [vmem:[#allocation2 + $0x38c] sm:$0xf] }
  0x6a   :  { %1693 = vmatmul.bf16.vlgmr.msrb.gmra.mxu0 %v6836_v16  ;;  %v6350_v8 = vld [vmem:[#allocation2 + $0x4e4] sm:$0xf0]  ;;  %v4629_v6 = vld [vmem:[#allocation2 + $0x3a8] sm:$0xf0] }
  0x6b   :  { %1720 = vmatpush.bf16.msrb.mxu2 %v4688_v21  ;;  %1741 = vmatpush.bf16.msra.mxu0 %v4404_v25  ;;  %v5043_v13 = vld [vmem:[#allocation2 + $0x6c8] sm:$0xf]  ;;  %v4788_v18 = vor.u32 %v6350_v8, %v4787_v7  ;;  %v6370_v7 = vld [vmem:[#allocation2 + $0x58c] sm:$0xf] }
  0x6c   :  { %1707 = vmatmul.bf16.vlgmr.msrb.gmra.mxu1 %v6850_v22  ;;  %v6414_v14 = vld [vmem:[#allocation2 + $0x6e4] sm:$0xf0]  ;;  %v4885_v8 = vld [vmem:[#allocation2 + $0x5a8] sm:$0xf0] }
  0x6d   :  { %1755 = vmatpush.bf16.msra.mxu1 %v4660_v26  ;;  %1734 = vmatpush.bf16.msrb.mxu3 %v4944_v33  ;;  %v4243_v15 = vld [vmem:[#allocation2 + $0x88] sm:$0xf]  ;;  %v5044_v25 = vor.u32 %v6414_v14, %v5043_v13  ;;  %v5141_v13 = vld [vmem:[#allocation2 + $0x7a8] sm:$0xf0]  ;;  %v4632_v14 = vor.u32 %v6306_v4, %v4629_v6 }
  0x6e   :  { %1721 = vmatmul.bf16.vlgmr.msrb.gmra.mxu2 %v6822_v0  ;;  %v4499_v20 = vld [vmem:[#allocation2 + $0x288] sm:$0xf]  ;;  %v4244_v26 = vor.u32 %v6214_v19, %v4243_v15  ;;  %v4888_v15 = vor.u32 %v6370_v7, %v4885_v8  ;;  %v4341_v19 = vld [vmem:[#allocation2 + $0x168] sm:$0xf0] }
  0x6f   :  { %1769 = vmatpush.bf16.msra.mxu2 %v4916_v29  ;;  %1742 = vmatpush.bf16.msra.mxu0 %v4372_v38  ;;  %v6278_v21 = vld [vmem:[#allocation2 + $0x2a4] sm:$0xf0]  ;;  %v4213_v4 = vld [vmem:[#allocation2 + $0x68] sm:$0xf0] }
  0x70   :  { %5162 = vmatmul.msk.bf16.vlgmr.msrb.gmra.mxu3 %vm1600_vm1, %v6838_v17  ;;  %v4755_v23 = vld [vmem:[#allocation2 + $0x488] sm:$0xf]  ;;  %v4500_v27 = vor.u32 %v6278_v21, %v4499_v20  ;;  %v6298_v20 = vld [vmem:[#allocation2 + $0x34c] sm:$0xf] }
  0x71   :  { %1783 = vmatpush.bf16.msra.mxu3 %v1612_v37  ;;  %1756 = vmatpush.bf16.msra.mxu1 %v4628_v39  ;;  %v6342_v24 = vld [vmem:[#allocation2 + $0x4a4] sm:$0xf0]  ;;  %v4597_v21 = vld [vmem:[#allocation2 + $0x368] sm:$0xf0] }
  0x72   :  { %v5011_v28 = vld [vmem:[#allocation2 + $0x688] sm:$0xf]  ;;  %v4756_v31 = vor.u32 %v6342_v24, %v4755_v23  ;;  %v6362_v23 = vld [vmem:[#allocation2 + $0x54c] sm:$0xf] }
  0x73   :  { %1770 = vmatpush.bf16.msra.mxu2 %v4884_v42  ;;  %1743 = vmatpush.bf16.msra.mxu0 %v4340_v48  ;;  %v6406_v29 = vld [vmem:[#allocation2 + $0x6a4] sm:$0xf0]  ;;  %v1091_v48 = vunpack.c.h.b16 %v6853_v58  ;;  %v4920_v58 = vor.u32 %v6378_v54, %v4917_v55  ;;  %v4853_v24 = vld [vmem:[#allocation2 + $0x568] sm:$0xf0] }
  0x74   :  { %v4211_v30 = vld [vmem:[#allocation2 + $0x48] sm:$0xf]  ;;  %v5012_v37 = vor.u32 %v6406_v29, %v5011_v28  ;;  %v5109_v28 = vld [vmem:[#allocation2 + $0x768] sm:$0xf0]  ;;  %v4600_v29 = vor.u32 %v6298_v20, %v4597_v21 }
  0x75   :  { %1784 = vmatpush.bf16.msra.mxu3 %v5140_v47  ;;  %1757 = vmatpush.bf16.msra.mxu1 %v4596_v49  ;;  %v6206_v32 = vld [vmem:[#allocation2 + $0x64] sm:$0xf0]  ;;  %v6250_v49 = vld [vmem:[#allocation2 + $0x1cc] sm:$0xf]  ;;  %v1347_v63 = vpack.c.b16 %v1091_v48, %v1091_v48 }
  0x76   :  { %v4467_v33 = vld [vmem:[#allocation2 + $0x248] sm:$0xf]  ;;  %v4212_v40 = vor.u32 %v6206_v32, %v4211_v30  ;;  %v4856_v30 = vor.u32 %v6362_v23, %v4853_v24  ;;  %v4309_v32 = vld [vmem:[#allocation2 + $0x128] sm:$0xf0] }
  0x77   :  { %1771 = vmatpush.bf16.msra.mxu2 %v4852_v53  ;;  %1744 = vmatpush.bf16.msra.mxu0 %v4308_v61  ;;  %v6270_v34 = vld [vmem:[#allocation2 + $0x264] sm:$0xf0]  ;;  %v4661_v53 = vld [vmem:[#allocation2 + $0x3e8] sm:$0xf0] }
  0x78   :  { %v4723_v35 = vld [vmem:[#allocation2 + $0x448] sm:$0xf]  ;;  %v4468_v41 = vor.u32 %v6270_v34, %v4467_v33  ;;  %v4664_v1 = vor.u32 %v6314_v51, %v4661_v53  ;;  %v6290_v33 = vld [vmem:[#allocation2 + $0x30c] sm:$0xf] }
  0x79   :  { %1785 = vmatpush.bf16.msra.mxu3 %v5108_v60  ;;  %1758 = vmatpush.bf16.msra.mxu1 %v4564_v62  ;;  %v6334_v36 = vld [vmem:[#allocation2 + $0x464] sm:$0xf0]  ;;  %v4408_v62 = vor.u32 %v6250_v49, %v4405_v50  ;;  %v4565_v34 = vld [vmem:[#allocation2 + $0x328] sm:$0xf0] }
  0x7a   :  { %v4979_v38 = vld [vmem:[#allocation2 + $0x648] sm:$0xf]  ;;  %v4724_v45 = vor.u32 %v6334_v36, %v4723_v35  ;;  %v6354_v35 = vld [vmem:[#allocation2 + $0x50c] sm:$0xf] }
  0x7b   :  { %1772 = vmatpush.bf16.msra.mxu2 %v4820_v3  ;;  %1745 = vmatpush.bf16.msra.mxu0 %v4276_v11  ;;  %v6398_v39 = vld [vmem:[#allocation2 + $0x664] sm:$0xf0]  ;;  %v4373_v3 = vld [vmem:[#allocation2 + $0x1a8] sm:$0xf0] }
  0x7c   :  { %v4179_v42 = vld [vmem:[#allocation2 + $0x8] sm:$0xf]  ;;  %v4980_v52 = vor.u32 %v6398_v39, %v4979_v38  ;;  %v4376_v11 = vor.u32 %v6242_v2, %v4373_v3  ;;  %v4821_v36 = vld [vmem:[#allocation2 + $0x528] sm:$0xf0] }
  0x7d   :  { %1786 = vmatpush.bf16.msra.mxu3 %v5076_v10  ;;  %1759 = vmatpush.bf16.msra.mxu1 %v4532_v12  ;;  %v4435_v44 = vld [vmem:[#allocation2 + $0x208] sm:$0xf]  ;;  %v4180_v56 = vor.u32 %v6198_v43, %v4179_v42  ;;  %v1615_v10 = vsel %vm1604_vm0, %v1347_v63, 0  ;;  %v6434_v12 = vld [vmem:[#allocation2 + $0x78c] sm:$0xf]  ;;  %v4824_v42 = vor.u32 %v6354_v35, %v4821_v36 }
  0x7e   :  { %v6262_v9 = vld [vmem:[#allocation2 + $0x224] sm:$0xf0]  ;;  %v6418_v39 = vld [vmem:[#allocation2 + $0x70c] sm:$0xf] }
  0x7f   :  { %1773 = vmatpush.bf16.msra.mxu2 %v4788_v18  ;;  %1746 = vmatpush.bf16.msra.mxu0 %v4244_v26  ;;  %v4691_v46 = vld [vmem:[#allocation2 + $0x408] sm:$0xf]  ;;  %v4436_v57 = vor.u32 %v6262_v9, %v4435_v44  ;;  %v6234_v18 = vld [vmem:[#allocation2 + $0x14c] sm:$0xf] }
  0x80   :  { %v6326_v47 = vld [vmem:[#allocation2 + $0x424] sm:$0xf0]  ;;  %v4344_v26 = vor.u32 %v6234_v18, %v4341_v19  ;;  %v6218_v43 = vld [vmem:[#allocation2 + $0xcc] sm:$0xf] }
  0x81   :  { %1787 = vmatpush.bf16.msra.mxu3 %v5044_v25  ;;  %1760 = vmatpush.bf16.msra.mxu1 %v4500_v27  ;;  %v4947_v59 = vld [vmem:[#allocation2 + $0x608] sm:$0xf]  ;;  %v4692_v61 = vor.u32 %v6326_v47, %v4691_v46  ;;  %v5144_v25 = vor.u32 %v6434_v12, %v5141_v13  ;;  %v6426_v27 = vld [vmem:[#allocation2 + $0x74c] sm:$0xf] }
  0x82   :  { %v6390_v60 = vld [vmem:[#allocation2 + $0x624] sm:$0xf0]  ;;  %v4277_v44 = vld [vmem:[#allocation2 + $0xe8] sm:$0xf0] }
  0x83   :  { %1774 = vmatpush.bf16.msra.mxu2 %v4756_v31  ;;  %1747 = vmatpush.bf16.msra.mxu0 %v4212_v40  ;;  %v4948_v5 = vor.u32 %v6390_v60, %v4947_v59  ;;  %v6226_v31 = vld [vmem:[#allocation2 + $0x10c] sm:$0xf]  ;;  %v4280_v49 = vor.u32 %v6218_v43, %v4277_v44 }
  0x84   :  { %v4312_v38 = vor.u32 %v6226_v31, %v4309_v32  ;;  %v5077_v40 = vld [vmem:[#allocation2 + $0x728] sm:$0xf0]  ;;  %v6319_v31 = vld [vmem:[#allocation2 + $0x3ec] sm:$0xf0] }
  0x85   :  { %1788 = vmatpush.bf16.msra.mxu3 %v5012_v37  ;;  %1761 = vmatpush.bf16.msra.mxu1 %v4468_v41  ;;  %v5112_v37 = vor.u32 %v6426_v27, %v5109_v28  ;;  %v4568_v41 = vor.u32 %v6290_v33, %v4565_v34  ;;  %v4533_v9 = vld [vmem:[#allocation2 + $0x2e8] sm:$0xf0]  ;;  %v5080_v48 = vor.u32 %v6418_v39, %v5077_v40  ;;  %v4411_v27 = vld [vmem:[#allocation2 + $0x1d0] sm:$0xf] }
  0x86   :  { %v6346_v46 = vld [vmem:[#allocation2 + $0x4cc] sm:$0xf]  ;;  %v6255_v28 = vld [vmem:[#allocation2 + $0x1ec] sm:$0xf0] }
  0x87   :  { %1775 = vmatpush.bf16.msra.mxu2 %v4724_v45  ;;  %1748 = vmatpush.bf16.msra.mxu0 %v4180_v56  ;;  %v6282_v45 = vld [vmem:[#allocation2 + $0x2cc] sm:$0xf]  ;;  %v4923_v32 = vld [vmem:[#allocation2 + $0x5d0] sm:$0xf]  ;;  %v4412_v40 = vor.u32 %v6255_v28, %v4411_v27 }
  0x88   :  { %v4789_v47 = vld [vmem:[#allocation2 + $0x4e8] sm:$0xf0]  ;;  %v6383_v34 = vld [vmem:[#allocation2 + $0x5ec] sm:$0xf0] }
  0x89   :  { %1789 = vmatpush.bf16.msra.mxu3 %v4980_v52  ;;  %1762 = vmatpush.bf16.msra.mxu1 %v4436_v57  ;;  %v6410_v50 = vld [vmem:[#allocation2 + $0x6cc] sm:$0xf]  ;;  %v4536_v52 = vor.u32 %v6282_v45, %v4533_v9  ;;  %v4792_v53 = vor.u32 %v6346_v46, %v4789_v47  ;;  %v4924_v43 = vor.u32 %v6383_v34, %v4923_v32  ;;  %v6247_v45 = vld [vmem:[#allocation2 + $0x1ac] sm:$0xf0] }
  0x8a   :  { %1749 = vmatmul.bf16.vlgmr.msra.gmra.mxu0 %v6836_v16  ;;  %v5045_v51 = vld [vmem:[#allocation2 + $0x6e8] sm:$0xf0]  ;;  %v4635_v9 = vld [vmem:[#allocation2 + $0x390] sm:$0xf] }
  0x8b   :  { %1776 = vmatpush.bf16.msra.mxu2 %v4692_v61  ;;  %1797 = vmatpush.bf16.msrb.mxu0 %v4408_v62  ;;  %v6210_v54 = vld [vmem:[#allocation2 + $0x8c] sm:$0xf]  ;;  %v5048_v61 = vor.u32 %v6410_v50, %v5045_v51  ;;  %v6311_v46 = vld [vmem:[#allocation2 + $0x3ac] sm:$0xf0] }
  0x8c   :  { %1763 = vmatmul.bf16.vlgmr.msra.gmra.mxu1 %v6850_v22  ;;  %v4245_v55 = vld [vmem:[#allocation2 + $0xa8] sm:$0xf0]  ;;  %v4891_v47 = vld [vmem:[#allocation2 + $0x590] sm:$0xf] }
  0x8d   :  { %1811 = vmatpush.bf16.msrb.mxu1 %v4664_v1  ;;  %1790 = vmatpush.bf16.msra.mxu3 %v4948_v5  ;;  %v6274_v56 = vld [vmem:[#allocation2 + $0x28c] sm:$0xf]  ;;  %v4248_v62 = vor.u32 %v6210_v54, %v4245_v55  ;;  %v5147_v50 = vld [vmem:[#allocation2 + $0x790] sm:$0xf] }
  0x8e   :  { %1777 = vmatmul.bf16.vlgmr.msra.gmra.mxu2 %v6822_v0  ;;  %v4501_v57 = vld [vmem:[#allocation2 + $0x2a8] sm:$0xf0]  ;;  %v6439_v51 = vld [vmem:[#allocation2 + $0x7ac] sm:$0xf0] }
  0x8f   :  { %1825 = vmatpush.bf16.msrb.mxu2 %v4920_v58  ;;  %1798 = vmatpush.bf16.msrb.mxu0 %v4376_v11  ;;  %v6338_v59 = vld [vmem:[#allocation2 + $0x48c] sm:$0xf]  ;;  %v4504_v2 = vor.u32 %v6274_v56, %v4501_v57  ;;  %v4347_v54 = vld [vmem:[#allocation2 + $0x150] sm:$0xf] }
  0x90   :  { %5163 = vmatmul.msk.bf16.vlgmr.msra.gmra.mxu3 %vm1600_vm1, %v6838_v17  ;;  %v4757_v60 = vld [vmem:[#allocation2 + $0x4a8] sm:$0xf0]  ;;  %v6239_v56 = vld [vmem:[#allocation2 + $0x16c] sm:$0xf0] }
  0x91   :  { %1839 = vmatpush.bf16.msrb.mxu3 %v1615_v10  ;;  %1812 = vmatpush.bf16.msrb.mxu1 %v4632_v14  ;;  %v6402_v63 = vld [vmem:[#allocation2 + $0x68c] sm:$0xf]  ;;  %v4760_v3 = vor.u32 %v6338_v59, %v4757_v60  ;;  %v6869_v10 = vld [vmem:[#allocation2 + $0x7d0] sm:$0x33]  ;;  %v5148_v60 = vor.u32 %v6439_v51, %v5147_v50 }
  0x92   :  { %v5013_v1 = vld [vmem:[#allocation2 + $0x6a8] sm:$0xf0]  ;;  %v4603_v57 = vld [vmem:[#allocation2 + $0x350] sm:$0xf] }
  0x93   :  { %1826 = vmatpush.bf16.msrb.mxu2 %v4888_v15  ;;  %1799 = vmatpush.bf16.msrb.mxu0 %v4344_v26  ;;  %v6202_v58 = vld [vmem:[#allocation2 + $0x4c] sm:$0xf]  ;;  %v5016_v11 = vor.u32 %v6402_v63, %v5013_v1  ;;  %v6303_v59 = vld [vmem:[#allocation2 + $0x36c] sm:$0xf0] }
  0x94   :  { %v6266_v5 = vld [vmem:[#allocation2 + $0x24c] sm:$0xf]  ;;  %v4216_v13 = vor.u32 %v6202_v58, %v4213_v4  ;;  %v5115_v63 = vld [vmem:[#allocation2 + $0x750] sm:$0xf]  ;;  %v4348_v58 = vor.u32 %v6239_v56, %v4347_v54 }
  0x95   :  { %1840 = vmatpush.bf16.msrb.mxu3 %v5144_v25  ;;  %1813 = vmatpush.bf16.msrb.mxu1 %v4600_v29  ;;  %v4469_v6 = vld [vmem:[#allocation2 + $0x268] sm:$0xf0]  ;;  %v1092_v25 = vunpack.c.l.b16 %v6869_v10  ;;  %v6431_v1 = vld [vmem:[#allocation2 + $0x76c] sm:$0xf0] }
  0x96   :  { %v6330_v7 = vld [vmem:[#allocation2 + $0x44c] sm:$0xf]  ;;  %v4472_v19 = vor.u32 %v6266_v5, %v4469_v6  ;;  %v6231_v5 = vld [vmem:[#allocation2 + $0x12c] sm:$0xf0] }
  0x97   :  { %1827 = vmatpush.bf16.msrb.mxu2 %v4856_v30  ;;  %1800 = vmatpush.bf16.msrb.mxu0 %v4312_v38  ;;  %v4725_v8 = vld [vmem:[#allocation2 + $0x468] sm:$0xf0]  ;;  %v4667_v30 = vld [vmem:[#allocation2 + $0x3d0] sm:$0xf]  ;;  %v1348_v39 = vpack.c.b16 %v1092_v25, %v1092_v25 }
  0x98   :  { %v6394_v12 = vld [vmem:[#allocation2 + $0x64c] sm:$0xf]  ;;  %v4728_v20 = vor.u32 %v6330_v7, %v4725_v8  ;;  %v4571_v6 = vld [vmem:[#allocation2 + $0x310] sm:$0xf]  ;;  %v5116_v8 = vor.u32 %v6431_v1, %v5115_v63  ;;  %v1093_v63 = vunpack.c.h.b16 %v6869_v10 }
  0x99   :  { %1841 = vmatpush.bf16.msrb.mxu3 %v5112_v37  ;;  %1814 = vmatpush.bf16.msrb.mxu1 %v4568_v41  ;;  %v4981_v14 = vld [vmem:[#allocation2 + $0x668] sm:$0xf0]  ;;  %v4668_v41 = vor.u32 %v6319_v31, %v4667_v30  ;;  %v6295_v7 = vld [vmem:[#allocation2 + $0x32c] sm:$0xf0] }
  0x9a   :  { %v6194_v15 = vld [vmem:[#allocation2 + $0xc] sm:$0xf]  ;;  %v4984_v29 = vor.u32 %v6394_v12, %v4981_v14  ;;  %v6359_v12 = vld [vmem:[#allocation2 + $0x52c] sm:$0xf0] }
  0x9b   :  { %1828 = vmatpush.bf16.msrb.mxu2 %v4824_v42  ;;  %1801 = vmatpush.bf16.msrb.mxu0 %v4280_v49  ;;  %v4181_v18 = vld [vmem:[#allocation2 + $0x28] sm:$0xf0]  ;;  %v4379_v42 = vld [vmem:[#allocation2 + $0x190] sm:$0xf]  ;;  %v1618_v49 = vsel %vm1604_vm0, %v1348_v39, 0 }
  0x9c   :  { %v6258_v21 = vld [vmem:[#allocation2 + $0x20c] sm:$0xf]  ;;  %v4184_v33 = vor.u32 %v6194_v15, %v4181_v18  ;;  %v6423_v14 = vld [vmem:[#allocation2 + $0x72c] sm:$0xf0]  ;;  %v4572_v18 = vor.u32 %v6295_v7, %v4571_v6  ;;  %v4925_v6 = vld [vmem:[#allocation2 + $0x5f0] sm:$0xf0] }
  0x9d   :  { %1842 = vmatpush.bf16.msrb.mxu3 %v5080_v48  ;;  %1815 = vmatpush.bf16.msrb.mxu1 %v4536_v52  ;;  %v4437_v23 = vld [vmem:[#allocation2 + $0x228] sm:$0xf0]  ;;  %v6375_v48 = vld [vmem:[#allocation2 + $0x5ac] sm:$0xf0]  ;;  %v4380_v52 = vor.u32 %v6247_v45, %v4379_v42 }
  0x9e   :  { %v6322_v24 = vld [vmem:[#allocation2 + $0x40c] sm:$0xf]  ;;  %v4440_v37 = vor.u32 %v6258_v21, %v4437_v23  ;;  %v4892_v55 = vor.u32 %v6375_v48, %v4891_v47  ;;  %v6223_v21 = vld [vmem:[#allocation2 + $0xec] sm:$0xf0] }
  0x9f   :  { %1829 = vmatpush.bf16.msrb.mxu2 %v4792_v53  ;;  %1802 = vmatpush.bf16.msrb.mxu0 %v4248_v62  ;;  %v4693_v26 = vld [vmem:[#allocation2 + $0x428] sm:$0xf0]  ;;  %v4636_v53 = vor.u32 %v6311_v46, %v4635_v9  ;;  %v6367_v62 = vld [vmem:[#allocation2 + $0x56c] sm:$0xf0] }
  0xa0   :  { %v6386_v35 = vld [vmem:[#allocation2 + $0x60c] sm:$0xf]  ;;  %v4696_v38 = vor.u32 %v6322_v24, %v4693_v26  ;;  %v4539_v23 = vld [vmem:[#allocation2 + $0x2d0] sm:$0xf] }
  0xa1   :  { %1843 = vmatpush.bf16.msrb.mxu3 %v5048_v61  ;;  %1816 = vmatpush.bf16.msrb.mxu1 %v4504_v2  ;;  %v4949_v36 = vld [vmem:[#allocation2 + $0x628] sm:$0xf0]  ;;  %v4859_v61 = vld [vmem:[#allocation2 + $0x550] sm:$0xf]  ;;  %v4604_v2 = vor.u32 %v6303_v59, %v4603_v57 }
  0xa2   :  { %v4952_v44 = vor.u32 %v6386_v35, %v4949_v36  ;;  %v4860_v4 = vor.u32 %v6367_v62, %v4859_v61  ;;  %v6287_v24 = vld [vmem:[#allocation2 + $0x2ec] sm:$0xf0] }
  0xa3   :  { %1830 = vmatpush.bf16.msrb.mxu2 %v4760_v3  ;;  %1803 = vmatpush.bf16.msrb.mxu0 %v4216_v13  ;;  %v4315_v3 = vld [vmem:[#allocation2 + $0x110] sm:$0xf]  ;;  %v4540_v31 = vor.u32 %v6287_v24, %v4539_v23  ;;  %v4637_v24 = vld [vmem:[#allocation2 + $0x3b0] sm:$0xf0] }
  0xa4   :  { %v5083_v13 = vld [vmem:[#allocation2 + $0x710] sm:$0xf]  ;;  %v4316_v15 = vor.u32 %v6231_v5, %v4315_v3  ;;  %v6315_v3 = vld [vmem:[#allocation2 + $0x3d4] sm:$0xf] }
  0xa5   :  { %1844 = vmatpush.bf16.msrb.mxu3 %v5016_v11  ;;  %1817 = vmatpush.bf16.msrb.mxu1 %v4472_v19  ;;  %v4827_v11 = vld [vmem:[#allocation2 + $0x510] sm:$0xf]  ;;  %v5084_v25 = vor.u32 %v6423_v14, %v5083_v13  ;;  %v6379_v5 = vld [vmem:[#allocation2 + $0x5d4] sm:$0xf] }
  0xa6   :  { %v4283_v19 = vld [vmem:[#allocation2 + $0xd0] sm:$0xf] }
  0xa7   :  { %1831 = vmatpush.bf16.msrb.mxu2 %v4728_v20  ;;  %1804 = vmatpush.bf16.msrb.mxu0 %v4184_v33  ;;  %v4828_v20 = vor.u32 %v6359_v12, %v4827_v11  ;;  %v4795_v26 = vld [vmem:[#allocation2 + $0x4d0] sm:$0xf]  ;;  %v4284_v30 = vor.u32 %v6223_v21, %v4283_v19  ;;  %v6243_v19 = vld [vmem:[#allocation2 + $0x194] sm:$0xf] }
  0xa8   :  { %v6351_v27 = vld [vmem:[#allocation2 + $0x4ec] sm:$0xf0]  ;;  %v6307_v21 = vld [vmem:[#allocation2 + $0x394] sm:$0xf] }
  0xa9   :  { %1845 = vmatpush.bf16.msrb.mxu3 %v4984_v29  ;;  %1818 = vmatpush.bf16.msrb.mxu1 %v4440_v37  ;;  %v5051_v28 = vld [vmem:[#allocation2 + $0x6d0] sm:$0xf]  ;;  %v4796_v33 = vor.u32 %v6351_v27, %v4795_v26  ;;  %v4893_v26 = vld [vmem:[#allocation2 + $0x5b0] sm:$0xf0] }
  0xaa   :  { %1805 = vmatmul.bf16.vlgmr.msrb.gmra.mxu0 %v6836_v16  ;;  %v6415_v29 = vld [vmem:[#allocation2 + $0x6ec] sm:$0xf0] }
  0xab   :  { %1832 = vmatpush.bf16.msrb.mxu2 %v4696_v38  ;;  %1853 = vmatpush.bf16.msra.mxu0 %v4412_v40  ;;  %v4251_v32 = vld [vmem:[#allocation2 + $0x90] sm:$0xf]  ;;  %v5052_v37 = vor.u32 %v6415_v29, %v5051_v28  ;;  %v6435_v29 = vld [vmem:[#allocation2 + $0x794] sm:$0xf] }
  0xac   :  { %1819 = vmatmul.bf16.vlgmr.msrb.gmra.mxu1 %v6850_v22  ;;  %v6215_v34 = vld [vmem:[#allocation2 + $0xac] sm:$0xf0] }
  0xad   :  { %1867 = vmatpush.bf16.msra.mxu1 %v4668_v41  ;;  %1846 = vmatpush.bf16.msrb.mxu3 %v4952_v44  ;;  %v4507_v35 = vld [vmem:[#allocation2 + $0x290] sm:$0xf]  ;;  %v4252_v42 = vor.u32 %v6215_v34, %v4251_v32  ;;  %v4349_v34 = vld [vmem:[#allocation2 + $0x170] sm:$0xf0] }
  0xae   :  { %1833 = vmatmul.bf16.vlgmr.msrb.gmra.mxu2 %v6822_v0  ;;  %v6279_v36 = vld [vmem:[#allocation2 + $0x2ac] sm:$0xf0] }
  0xaf   :  { %1881 = vmatpush.bf16.msra.mxu2 %v4924_v43  ;;  %1854 = vmatpush.bf16.msra.mxu0 %v4380_v52  ;;  %v4763_v38 = vld [vmem:[#allocation2 + $0x490] sm:$0xf]  ;;  %v4508_v43 = vor.u32 %v6279_v36, %v4507_v35  ;;  %v6299_v35 = vld [vmem:[#allocation2 + $0x354] sm:$0xf] }
  0xb0   :  { %5164 = vmatmul.msk.bf16.vlgmr.msrb.gmra.mxu3 %vm1600_vm1, %v6838_v17  ;;  %v6343_v39 = vld [vmem:[#allocation2 + $0x4ac] sm:$0xf0]  ;;  %v4605_v36 = vld [vmem:[#allocation2 + $0x370] sm:$0xf0] }
  0xb1   :  { %1895 = vmatpush.bf16.msra.mxu3 %v1618_v49  ;;  %1868 = vmatpush.bf16.msra.mxu1 %v4636_v53  ;;  %v5019_v40 = vld [vmem:[#allocation2 + $0x690] sm:$0xf]  ;;  %v4764_v45 = vor.u32 %v6343_v39, %v4763_v38  ;;  %v4861_v38 = vld [vmem:[#allocation2 + $0x570] sm:$0xf0] }
  0xb2   :  { %v6407_v41 = vld [vmem:[#allocation2 + $0x6ac] sm:$0xf0] }
  0xb3   :  { %1882 = vmatpush.bf16.msra.mxu2 %v4892_v55  ;;  %1855 = vmatpush.bf16.msra.mxu0 %v4348_v58  ;;  %v4219_v44 = vld [vmem:[#allocation2 + $0x50] sm:$0xf]  ;;  %v5020_v48 = vor.u32 %v6407_v41, %v5019_v40  ;;  %v6251_v58 = vld [vmem:[#allocation2 + $0x1d4] sm:$0xf] }
  0xb4   :  { %v6207_v9 = vld [vmem:[#allocation2 + $0x6c] sm:$0xf0]  ;;  %v6427_v41 = vld [vmem:[#allocation2 + $0x754] sm:$0xf] }
  0xb5   :  { %1896 = vmatpush.bf16.msra.mxu3 %v5148_v60  ;;  %1869 = vmatpush.bf16.msra.mxu1 %v4604_v2  ;;  %v4475_v46 = vld [vmem:[#allocation2 + $0x250] sm:$0xf]  ;;  %v4220_v53 = vor.u32 %v6207_v9, %v4219_v44  ;;  %v4413_v2 = vld [vmem:[#allocation2 + $0x1f0] sm:$0xf0] }
  0xb6   :  { %v6271_v47 = vld [vmem:[#allocation2 + $0x26c] sm:$0xf0]  ;;  %v4416_v14 = vor.u32 %v6251_v58, %v4413_v2  ;;  %v4317_v9 = vld [vmem:[#allocation2 + $0x130] sm:$0xf0] }
  0xb7   :  { %1883 = vmatpush.bf16.msra.mxu2 %v4860_v4  ;;  %1856 = vmatpush.bf16.msra.mxu0 %v4316_v15  ;;  %v4731_v49 = vld [vmem:[#allocation2 + $0x450] sm:$0xf]  ;;  %v4476_v54 = vor.u32 %v6271_v47, %v4475_v46  ;;  %v4669_v4 = vld [vmem:[#allocation2 + $0x3f0] sm:$0xf0]  ;;  %v1349_v15 = vpack.c.b16 %v1093_v63, %v1093_v63 }
  0xb8   :  { %v6335_v50 = vld [vmem:[#allocation2 + $0x46c] sm:$0xf0]  ;;  %v4672_v10 = vor.u32 %v6315_v3, %v4669_v4  ;;  %v6291_v46 = vld [vmem:[#allocation2 + $0x314] sm:$0xf] }
  0xb9   :  { %1897 = vmatpush.bf16.msra.mxu3 %v5116_v8  ;;  %1870 = vmatpush.bf16.msra.mxu1 %v4572_v18  ;;  %v4987_v51 = vld [vmem:[#allocation2 + $0x650] sm:$0xf]  ;;  %v4732_v59 = vor.u32 %v6335_v50, %v4731_v49  ;;  %v4928_v18 = vor.u32 %v6379_v5, %v4925_v6  ;;  %v1621_v27 = vsel %vm1604_vm0, %v1349_v15, 0  ;;  %v4573_v47 = vld [vmem:[#allocation2 + $0x330] sm:$0xf0] }
  0xba   :  { %v6399_v52 = vld [vmem:[#allocation2 + $0x66c] sm:$0xf0]  ;;  %v4829_v49 = vld [vmem:[#allocation2 + $0x530] sm:$0xf0] }
  0xbb   :  { %1884 = vmatpush.bf16.msra.mxu2 %v4828_v20  ;;  %1857 = vmatpush.bf16.msra.mxu0 %v4284_v30  ;;  %v4187_v55 = vld [vmem:[#allocation2 + $0x10] sm:$0xf]  ;;  %v4988_v1 = vor.u32 %v6399_v52, %v4987_v51  ;;  %v4381_v20 = vld [vmem:[#allocation2 + $0x1b0] sm:$0xf0] }
  0xbc   :  { %v6199_v56 = vld [vmem:[#allocation2 + $0x2c] sm:$0xf0]  ;;  %v4384_v28 = vor.u32 %v6243_v19, %v4381_v20  ;;  %v5149_v30 = vld [vmem:[#allocation2 + $0x7b0] sm:$0xf0] }
  0xbd   :  { %1898 = vmatpush.bf16.msra.mxu3 %v5084_v25  ;;  %1871 = vmatpush.bf16.msra.mxu1 %v4540_v31  ;;  %v4443_v57 = vld [vmem:[#allocation2 + $0x210] sm:$0xf]  ;;  %v4188_v7 = vor.u32 %v6199_v56, %v4187_v55  ;;  %v6371_v25 = vld [vmem:[#allocation2 + $0x594] sm:$0xf]  ;;  %v4640_v31 = vor.u32 %v6307_v21, %v4637_v24  ;;  %v5152_v39 = vor.u32 %v6435_v29, %v5149_v30 }
  0xbe   :  { %v6263_v60 = vld [vmem:[#allocation2 + $0x22c] sm:$0xf0]  ;;  %v4896_v32 = vor.u32 %v6371_v25, %v4893_v26  ;;  %v6419_v52 = vld [vmem:[#allocation2 + $0x714] sm:$0xf] }
  0xbf   :  { %1885 = vmatpush.bf16.msra.mxu2 %v4796_v33  ;;  %1858 = vmatpush.bf16.msra.mxu0 %v4252_v42  ;;  %v4699_v61 = vld [vmem:[#allocation2 + $0x410] sm:$0xf]  ;;  %v4444_v8 = vor.u32 %v6263_v60, %v4443_v57  ;;  %v6235_v33 = vld [vmem:[#allocation2 + $0x154] sm:$0xf] }
  0xc0   :  { %v6327_v62 = vld [vmem:[#allocation2 + $0x42c] sm:$0xf0]  ;;  %v4352_v40 = vor.u32 %v6235_v33, %v4349_v34  ;;  %v5117_v42 = vld [vmem:[#allocation2 + $0x770] sm:$0xf0] }
  0xc1   :  { %1899 = vmatpush.bf16.msra.mxu3 %v5052_v37  ;;  %1872 = vmatpush.bf16.msra.mxu1 %v4508_v43  ;;  %v4955_v11 = vld [vmem:[#allocation2 + $0x610] sm:$0xf]  ;;  %v4700_v13 = vor.u32 %v6327_v62, %v4699_v61  ;;  %v6363_v37 = vld [vmem:[#allocation2 + $0x554] sm:$0xf]  ;;  %v4608_v43 = vor.u32 %v6299_v35, %v4605_v36  ;;  %v5120_v50 = vor.u32 %v6427_v41, %v5117_v42  ;;  %v4419_v41 = vld [vmem:[#allocation2 + $0x1d8] sm:$0xf] }
  0xc2   :  { %v6391_v12 = vld [vmem:[#allocation2 + $0x62c] sm:$0xf0]  ;;  %v4864_v44 = vor.u32 %v6363_v37, %v4861_v38  ;;  %v6219_v56 = vld [vmem:[#allocation2 + $0xd4] sm:$0xf]  ;;  %v6256_v42 = vld [vmem:[#allocation2 + $0x1f4] sm:$0xf0] }
  0xc3   :  { %1886 = vmatpush.bf16.msra.mxu2 %v4764_v45  ;;  %1859 = vmatpush.bf16.msra.mxu0 %v4220_v53  ;;  %v4956_v23 = vor.u32 %v6391_v12, %v4955_v11  ;;  %v6227_v45 = vld [vmem:[#allocation2 + $0x114] sm:$0xf] }
  0xc4   :  { %v4320_v51 = vor.u32 %v6227_v45, %v4317_v9  ;;  %v5085_v53 = vld [vmem:[#allocation2 + $0x730] sm:$0xf0]  ;;  %v6320_v45 = vld [vmem:[#allocation2 + $0x3f4] sm:$0xf0] }
  0xc5   :  { %1900 = vmatpush.bf16.msra.mxu3 %v5020_v48  ;;  %1873 = vmatpush.bf16.msra.mxu1 %v4476_v54  ;;  %v6355_v48 = vld [vmem:[#allocation2 + $0x514] sm:$0xf]  ;;  %v4576_v54 = vor.u32 %v6291_v46, %v4573_v47  ;;  %v5088_v63 = vor.u32 %v6419_v52, %v5085_v53  ;;  %v4931_v9 = vld [vmem:[#allocation2 + $0x5d8] sm:$0xf]  ;;  %v4420_v53 = vor.u32 %v6256_v42, %v4419_v41 }
  0xc6   :  { %v4832_v55 = vor.u32 %v6355_v48, %v4829_v49  ;;  %v4285_v57 = vld [vmem:[#allocation2 + $0xf0] sm:$0xf0]  ;;  %v6384_v47 = vld [vmem:[#allocation2 + $0x5f4] sm:$0xf0] }
  0xc7   :  { %1887 = vmatpush.bf16.msra.mxu2 %v4732_v59  ;;  %1860 = vmatpush.bf16.msra.mxu0 %v4188_v7  ;;  %v6283_v59 = vld [vmem:[#allocation2 + $0x2d4] sm:$0xf]  ;;  %v6352_v41 = vld [vmem:[#allocation2 + $0x4f4] sm:$0xf0] }
  0xc8   :  { %v4541_v60 = vld [vmem:[#allocation2 + $0x2f0] sm:$0xf0]  ;;  %v5059_v42 = vld [vmem:[#allocation2 + $0x6d8] sm:$0xf] }
  0xc9   :  { %1901 = vmatpush.bf16.msra.mxu3 %v4988_v1  ;;  %1874 = vmatpush.bf16.msra.mxu1 %v4444_v8  ;;  %v6347_v61 = vld [vmem:[#allocation2 + $0x4d4] sm:$0xf]  ;;  %v4288_v1 = vor.u32 %v6219_v56, %v4285_v57  ;;  %v4544_v3 = vor.u32 %v6283_v59, %v4541_v60  ;;  %v4932_v56 = vor.u32 %v6384_v47, %v4931_v9  ;;  %v6248_v59 = vld [vmem:[#allocation2 + $0x1b4] sm:$0xf0]  ;;  %v6896_v47 = vpop.f32.mrf.mxu1 }
  0xca   :  { %1861 = vmatmul.bf16.vlgmr.msra.gmra.mxu0 %v6836_v16  ;;  %v4797_v62 = vld [vmem:[#allocation2 + $0x4f0] sm:$0xf0]  ;;  %v4643_v60 = vld [vmem:[#allocation2 + $0x398] sm:$0xf] }
  0xcb   :  { %1888 = vmatpush.bf16.msra.mxu2 %v4700_v13  ;;  %1909 = vmatpush.bf16.msrb.mxu0 %v4416_v14  ;;  %v6411_v58 = vld [vmem:[#allocation2 + $0x6d4] sm:$0xf]  ;;  %v4800_v4 = vor.u32 %v6347_v61, %v4797_v62  ;;  %v6312_v61 = vld [vmem:[#allocation2 + $0x3b4] sm:$0xf0] }
  0xcc   :  { %1875 = vmatmul.bf16.vlgmr.msra.gmra.mxu1 %v6850_v22  ;;  %v5053_v2 = vld [vmem:[#allocation2 + $0x6f0] sm:$0xf0]  ;;  %v4899_v62 = vld [vmem:[#allocation2 + $0x598] sm:$0xf] }
  0xcd   :  { %1923 = vmatpush.bf16.msrb.mxu1 %v4672_v10  ;;  %1902 = vmatpush.bf16.msra.mxu3 %v4956_v23  ;;  %v6211_v5 = vld [vmem:[#allocation2 + $0x94] sm:$0xf]  ;;  %v5056_v13 = vor.u32 %v6411_v58, %v5053_v2  ;;  %v5155_v58 = vld [vmem:[#allocation2 + $0x798] sm:$0xf] }
  0xce   :  { %1889 = vmatmul.bf16.vlgmr.msra.gmra.mxu2 %v6822_v0  ;;  %v4253_v6 = vld [vmem:[#allocation2 + $0xb0] sm:$0xf0]  ;;  %v6440_v2 = vld [vmem:[#allocation2 + $0x7b4] sm:$0xf0] }
  0xcf   :  { %1937 = vmatpush.bf16.msrb.mxu2 %v4928_v18  ;;  %1910 = vmatpush.bf16.msrb.mxu0 %v4384_v28  ;;  %v6275_v7 = vld [vmem:[#allocation2 + $0x294] sm:$0xf]  ;;  %v4256_v14 = vor.u32 %v6211_v5, %v4253_v6  ;;  %v4355_v5 = vld [vmem:[#allocation2 + $0x158] sm:$0xf] }
  0xd0   :  { %5165 = vmatmul.msk.bf16.vlgmr.msra.gmra.mxu3 %vm1600_vm1, %v6838_v17  ;;  %v4509_v8 = vld [vmem:[#allocation2 + $0x2b0] sm:$0xf0]  ;;  %v4259_v9 = vld [vmem:[#allocation2 + $0x98] sm:$0xf] }
  0xd1   :  { %1951 = vmatpush.bf16.msrb.mxu3 %v1621_v27  ;;  %1924 = vmatpush.bf16.msrb.mxu1 %v4640_v31  ;;  %v6339_v11 = vld [vmem:[#allocation2 + $0x494] sm:$0xf]  ;;  %v4512_v19 = vor.u32 %v6275_v7, %v4509_v8  ;;  %v6885_v27 = vld [vmem:[#allocation2 + $0x7d8] sm:$0x33] }
  0xd2   :  { %v4765_v12 = vld [vmem:[#allocation2 + $0x4b0] sm:$0xf0]  ;;  %v6240_v7 = vld [vmem:[#allocation2 + $0x174] sm:$0xf0] }
  0xd3   :  { %1938 = vmatpush.bf16.msrb.mxu2 %v4896_v32  ;;  %1911 = vmatpush.bf16.msrb.mxu0 %v4352_v40  ;;  %v6403_v15 = vld [vmem:[#allocation2 + $0x694] sm:$0xf]  ;;  %v4768_v20 = vor.u32 %v6339_v11, %v4765_v12  ;;  %v4611_v8 = vld [vmem:[#allocation2 + $0x358] sm:$0xf]  ;;  %v5156_v12 = vor.u32 %v6440_v2, %v5155_v58  ;;  %v6898_v58 = vpop.f32.mrf.mxu2 }
  0xd4   :  { %v5021_v10 = vld [vmem:[#allocation2 + $0x6b0] sm:$0xf0]  ;;  %v6304_v11 = vld [vmem:[#allocation2 + $0x374] sm:$0xf0] }
  0xd5   :  { %1952 = vmatpush.bf16.msrb.mxu3 %v5152_v39  ;;  %1925 = vmatpush.bf16.msrb.mxu1 %v4608_v43  ;;  %v6203_v18 = vld [vmem:[#allocation2 + $0x54] sm:$0xf]  ;;  %v5024_v28 = vor.u32 %v6403_v15, %v5021_v10  ;;  %v1094_v39 = vunpack.c.l.b16 %v6885_v27  ;;  %v5123_v15 = vld [vmem:[#allocation2 + $0x758] sm:$0xf] }
  0xd6   :  { %v4221_v21 = vld [vmem:[#allocation2 + $0x70] sm:$0xf0]  ;;  %v6432_v10 = vld [vmem:[#allocation2 + $0x774] sm:$0xf0] }
  0xd7   :  { %1939 = vmatpush.bf16.msrb.mxu2 %v4864_v44  ;;  %1912 = vmatpush.bf16.msrb.mxu0 %v4320_v51  ;;  %v6267_v23 = vld [vmem:[#allocation2 + $0x254] sm:$0xf]  ;;  %v4224_v30 = vor.u32 %v6203_v18, %v4221_v21  ;;  %v4675_v44 = vld [vmem:[#allocation2 + $0x3d8] sm:$0xf]  ;;  %v1350_v52 = vpack.c.b16 %v1094_v39, %v1094_v39  ;;  %v4356_v18 = vor.u32 %v6240_v7, %v4355_v5  ;;  %v6900_v7 = vpop.f32.mrf.mxu3 }
  0xd8   :  { %v4477_v24 = vld [vmem:[#allocation2 + $0x270] sm:$0xf0]  ;;  %v4995_v5 = vld [vmem:[#allocation2 + $0x658] sm:$0xf] }
  0xd9   :  { %1953 = vmatpush.bf16.msrb.mxu3 %v5120_v50  ;;  %1926 = vmatpush.bf16.msrb.mxu1 %v4576_v54  ;;  %v6331_v25 = vld [vmem:[#allocation2 + $0x454] sm:$0xf]  ;;  %v4480_v34 = vor.u32 %v6267_v23, %v4477_v24  ;;  %v4676_v54 = vor.u32 %v6320_v45, %v4675_v44  ;;  %v6232_v23 = vld [vmem:[#allocation2 + $0x134] sm:$0xf0] }
  0xda   :  { %v4733_v26 = vld [vmem:[#allocation2 + $0x470] sm:$0xf0]  ;;  %v4579_v24 = vld [vmem:[#allocation2 + $0x318] sm:$0xf] }
  0xdb   :  { %1940 = vmatpush.bf16.msrb.mxu2 %v4832_v55  ;;  %1913 = vmatpush.bf16.msrb.mxu0 %v4288_v1  ;;  %v6395_v29 = vld [vmem:[#allocation2 + $0x654] sm:$0xf]  ;;  %v4736_v35 = vor.u32 %v6331_v25, %v4733_v26  ;;  %v4387_v55 = vld [vmem:[#allocation2 + $0x198] sm:$0xf]  ;;  %v1624_v1 = vsel %vm1604_vm0, %v1350_v52, 0  ;;  %v5124_v26 = vor.u32 %v6432_v10, %v5123_v15 }
  0xdc   :  { %v4989_v31 = vld [vmem:[#allocation2 + $0x670] sm:$0xf0]  ;;  %v6296_v25 = vld [vmem:[#allocation2 + $0x334] sm:$0xf0] }
  0xdd   :  { %1954 = vmatpush.bf16.msrb.mxu3 %v5088_v63  ;;  %1927 = vmatpush.bf16.msrb.mxu1 %v4544_v3  ;;  %v6195_v32 = vld [vmem:[#allocation2 + $0x14] sm:$0xf]  ;;  %v4992_v43 = vor.u32 %v6395_v29, %v4989_v31  ;;  %v6376_v63 = vld [vmem:[#allocation2 + $0x5b4] sm:$0xf0]  ;;  %v4388_v3 = vor.u32 %v6248_v59, %v4387_v55 }
  0xde   :  { %v4189_v33 = vld [vmem:[#allocation2 + $0x30] sm:$0xf0]  ;;  %v4900_v6 = vor.u32 %v6376_v63, %v4899_v62  ;;  %v6360_v29 = vld [vmem:[#allocation2 + $0x534] sm:$0xf0] }
  0xdf   :  { %1941 = vmatpush.bf16.msrb.mxu2 %v4800_v4  ;;  %1914 = vmatpush.bf16.msrb.mxu0 %v4256_v14  ;;  %v6259_v36 = vld [vmem:[#allocation2 + $0x214] sm:$0xf]  ;;  %v4192_v46 = vor.u32 %v6195_v32, %v4189_v33  ;;  %v4644_v4 = vor.u32 %v6312_v61, %v4643_v60  ;;  %v6368_v14 = vld [vmem:[#allocation2 + $0x574] sm:$0xf0]  ;;  %v4580_v33 = vor.u32 %v6296_v25, %v4579_v24  ;;  %v4421_v24 = vld [vmem:[#allocation2 + $0x1f8] sm:$0xf0] }
  0xe0   :  { %v4445_v37 = vld [vmem:[#allocation2 + $0x230] sm:$0xf0]  ;;  %v6424_v31 = vld [vmem:[#allocation2 + $0x734] sm:$0xf0]  ;;  %v6316_v25 = vld [vmem:[#allocation2 + $0x3dc] sm:$0xf] }
  0xe1   :  { %1955 = vmatpush.bf16.msrb.mxu3 %v5056_v13  ;;  %1928 = vmatpush.bf16.msrb.mxu1 %v4512_v19  ;;  %v6323_v38 = vld [vmem:[#allocation2 + $0x414] sm:$0xf]  ;;  %v4448_v50 = vor.u32 %v6259_v36, %v4445_v37  ;;  %v4867_v13 = vld [vmem:[#allocation2 + $0x558] sm:$0xf]  ;;  %v4612_v19 = vor.u32 %v6304_v11, %v4611_v8 }
  0xe2   :  { %v4701_v40 = vld [vmem:[#allocation2 + $0x430] sm:$0xf0]  ;;  %v4868_v21 = vor.u32 %v6368_v14, %v4867_v13  ;;  %v6224_v36 = vld [vmem:[#allocation2 + $0xf4] sm:$0xf0] }
  0xe3   :  { %1942 = vmatpush.bf16.msrb.mxu2 %v4768_v20  ;;  %1915 = vmatpush.bf16.msrb.mxu0 %v4224_v30  ;;  %v6387_v48 = vld [vmem:[#allocation2 + $0x614] sm:$0xf]  ;;  %v4704_v51 = vor.u32 %v6323_v38, %v4701_v40  ;;  %v4323_v20 = vld [vmem:[#allocation2 + $0x118] sm:$0xf] }
  0xe4   :  { %v4957_v49 = vld [vmem:[#allocation2 + $0x630] sm:$0xf0]  ;;  %v5091_v30 = vld [vmem:[#allocation2 + $0x718] sm:$0xf]  ;;  %v4324_v32 = vor.u32 %v6232_v23, %v4323_v20  ;;  %v1095_v20 = vunpack.c.h.b16 %v6885_v27  ;;  %v6252_v23 = vld [vmem:[#allocation2 + $0x1dc] sm:$0xf] }
  0xe5   :  { %1956 = vmatpush.bf16.msrb.mxu3 %v5024_v28  ;;  %1929 = vmatpush.bf16.msrb.mxu1 %v4480_v34  ;;  %v4960_v57 = vor.u32 %v6387_v48, %v4957_v49  ;;  %v4835_v28 = vld [vmem:[#allocation2 + $0x518] sm:$0xf]  ;;  %v5092_v39 = vor.u32 %v6424_v31, %v5091_v30  ;;  %v6380_v30 = vld [vmem:[#allocation2 + $0x5dc] sm:$0xf] }
  0xe6   :  { %v4291_v34 = vld [vmem:[#allocation2 + $0xd8] sm:$0xf]  ;;  %v4933_v31 = vld [vmem:[#allocation2 + $0x5f8] sm:$0xf0] }
  0xe7   :  { %1943 = vmatpush.bf16.msrb.mxu2 %v4736_v35  ;;  %1916 = vmatpush.bf16.msrb.mxu0 %v4192_v46  ;;  %v4836_v35 = vor.u32 %v6360_v29, %v4835_v28  ;;  %v4547_v37 = vld [vmem:[#allocation2 + $0x2d8] sm:$0xf]  ;;  %v4292_v44 = vor.u32 %v6224_v36, %v4291_v34  ;;  %v6894_v46 = vpop.f32.mrf.mxu0  ;;  %v6905_v28 = vpop.f32.mrf.mxu1  ;;  %v4677_v29 = vld [vmem:[#allocation2 + $0x3f8] sm:$0xf0]  ;;  %v4424_v36 = vor.u32 %v6252_v23, %v4421_v24 }
  0xe8   :  { %v6288_v38 = vld [vmem:[#allocation2 + $0x2f4] sm:$0xf0]  ;;  %v5093_v23 = vld [vmem:[#allocation2 + $0x738] sm:$0xf0] }
  0xe9   :  { %1957 = vmatpush.bf16.msrb.mxu3 %v4992_v43  ;;  %1930 = vmatpush.bf16.msrb.mxu1 %v4448_v50  ;;  %v4803_v40 = vld [vmem:[#allocation2 + $0x4d8] sm:$0xf]  ;;  %v4548_v45 = vor.u32 %v6288_v38, %v4547_v37  ;;  %v1351_v37 = vpack.c.b16 %v1095_v20, %v1095_v20  ;;  %v4680_v38 = vor.u32 %v6316_v25, %v4677_v29 }
  0xea   :  { %1917 = vmatmul.bf16.vlgmr.msrb.gmra.mxu0 %v6836_v16  ;;  %v6416_v43 = vld [vmem:[#allocation2 + $0x6f4] sm:$0xf0]  ;;  %v4804_v48 = vor.u32 %v6352_v41, %v4803_v40  ;;  %v6244_v40 = vld [vmem:[#allocation2 + $0x19c] sm:$0xf] }
  0xeb   :  { %1944 = vmatpush.bf16.msrb.mxu2 %v4704_v51  ;;  %1965 = vmatpush.bf16.msra.mxu0 %v4420_v53  ;;  %v6216_v49 = vld [vmem:[#allocation2 + $0xb4] sm:$0xf0]  ;;  %v5060_v52 = vor.u32 %v6416_v43, %v5059_v42  ;;  %v4389_v41 = vld [vmem:[#allocation2 + $0x1b8] sm:$0xf0] }
  0xec   :  { %1931 = vmatmul.bf16.vlgmr.msrb.gmra.mxu1 %v6850_v22  ;;  %v4515_v50 = vld [vmem:[#allocation2 + $0x298] sm:$0xf]  ;;  %v6308_v42 = vld [vmem:[#allocation2 + $0x39c] sm:$0xf] }
  0xed   :  { %1979 = vmatpush.bf16.msra.mxu1 %v4676_v54  ;;  %1958 = vmatpush.bf16.msrb.mxu3 %v4960_v57  ;;  %v6280_v51 = vld [vmem:[#allocation2 + $0x2b4] sm:$0xf0]  ;;  %v4260_v57 = vor.u32 %v6216_v49, %v4259_v9  ;;  %v4901_v9 = vld [vmem:[#allocation2 + $0x5b8] sm:$0xf0]  ;;  %v1627_v49 = vsel %vm1604_vm0, %v1351_v37, 0 }
  0xee   :  { %1945 = vmatmul.bf16.vlgmr.msrb.gmra.mxu2 %v6822_v0  ;;  %v4771_v53 = vld [vmem:[#allocation2 + $0x498] sm:$0xf]  ;;  %v4516_v59 = vor.u32 %v6280_v51, %v4515_v50  ;;  %v4392_v50 = vor.u32 %v6244_v40, %v4389_v41  ;;  %v6436_v51 = vld [vmem:[#allocation2 + $0x79c] sm:$0xf] }
  0xef   :  { %1993 = vmatpush.bf16.msra.mxu2 %v4932_v56  ;;  %1966 = vmatpush.bf16.msra.mxu0 %v4388_v3  ;;  %v6344_v54 = vld [vmem:[#allocation2 + $0x4b4] sm:$0xf0]  ;;  %v5061_v40 = vld [vmem:[#allocation2 + $0x6f8] sm:$0xf0] }
  0xf0   :  { %5166 = vmatmul.msk.bf16.vlgmr.msrb.gmra.mxu3 %vm1600_vm1, %v6838_v17  ;;  %v5027_v55 = vld [vmem:[#allocation2 + $0x698] sm:$0xf]  ;;  %v4772_v61 = vor.u32 %v6344_v54, %v4771_v53  ;;  %v6910_v53 = vpop.f32.mrf.mxu3 }
  0xf1   :  { %2007 = vmatpush.bf16.msra.mxu3 %v1624_v1  ;;  %1980 = vmatpush.bf16.msra.mxu1 %v4644_v4  ;;  %v6408_v56 = vld [vmem:[#allocation2 + $0x6b4] sm:$0xf0] }
  0xf2   :  { %v4227_v60 = vld [vmem:[#allocation2 + $0x58] sm:$0xf]  ;;  %v5028_v2 = vor.u32 %v6408_v56, %v5027_v55  ;;  %v6236_v56 = vld [vmem:[#allocation2 + $0x15c] sm:$0xf] }
  0xf3   :  { %1994 = vmatpush.bf16.msra.mxu2 %v4900_v6  ;;  %1967 = vmatpush.bf16.msra.mxu0 %v4356_v18  ;;  %v6208_v62 = vld [vmem:[#allocation2 + $0x74] sm:$0xf0] }
  0xf4   :  { %v4483_v63 = vld [vmem:[#allocation2 + $0x258] sm:$0xf]  ;;  %v4228_v8 = vor.u32 %v6208_v62, %v4227_v60  ;;  %v4613_v62 = vld [vmem:[#allocation2 + $0x378] sm:$0xf0] }
  0xf5   :  { %2008 = vmatpush.bf16.msra.mxu3 %v5156_v12  ;;  %1981 = vmatpush.bf16.msra.mxu1 %v4612_v19  ;;  %v6272_v1 = vld [vmem:[#allocation2 + $0x274] sm:$0xf0] }
  0xf6   :  { %v4739_v3 = vld [vmem:[#allocation2 + $0x458] sm:$0xf]  ;;  %v4484_v11 = vor.u32 %v6272_v1, %v4483_v63  ;;  %v6364_v63 = vld [vmem:[#allocation2 + $0x55c] sm:$0xf] }
  0xf7   :  { %1995 = vmatpush.bf16.msra.mxu2 %v4868_v21  ;;  %1968 = vmatpush.bf16.msra.mxu0 %v4324_v32  ;;  %v6336_v4 = vld [vmem:[#allocation2 + $0x474] sm:$0xf0]  ;;  %v4869_v1 = vld [vmem:[#allocation2 + $0x578] sm:$0xf0] }
  0xf8   :  { %v6400_v6 = vld [vmem:[#allocation2 + $0x674] sm:$0xf0]  ;;  %v4740_v15 = vor.u32 %v6336_v4, %v4739_v3  ;;  %v6428_v4 = vld [vmem:[#allocation2 + $0x75c] sm:$0xf]  ;;  %v6923_v24 = vpop.f32.mrf.mxu3 }
  0xf9   :  { %2009 = vmatpush.bf16.msra.mxu3 %v5124_v26  ;;  %1982 = vmatpush.bf16.msra.mxu1 %v4580_v33  ;;  %v4195_v12 = vld [vmem:[#allocation2 + $0x18] sm:$0xf]  ;;  %v4996_v21 = vor.u32 %v6400_v6, %v4995_v5  ;;  %v6903_v26 = vpop.f32.mrf.mxu0  ;;  %v5125_v5 = vld [vmem:[#allocation2 + $0x778] sm:$0xf0] }
  0xfa   :  { %v6200_v13 = vld [vmem:[#allocation2 + $0x34] sm:$0xf0] }
  0xfb   :  { %1996 = vmatpush.bf16.msra.mxu2 %v4836_v35  ;;  %1969 = vmatpush.bf16.msra.mxu0 %v4292_v44  ;;  %v4451_v14 = vld [vmem:[#allocation2 + $0x218] sm:$0xf]  ;;  %v4196_v32 = vor.u32 %v6200_v13, %v4195_v12  ;;  %v4645_v44 = vld [vmem:[#allocation2 + $0x3b8] sm:$0xf0] }
  0xfc   :  { %v6264_v10 = vld [vmem:[#allocation2 + $0x234] sm:$0xf0]  ;;  %v4648_v54 = vor.u32 %v6308_v42, %v4645_v44  ;;  %v4325_v12 = vld [vmem:[#allocation2 + $0x138] sm:$0xf0] }
  0xfd   :  { %2010 = vmatpush.bf16.msra.mxu3 %v5092_v39  ;;  %1983 = vmatpush.bf16.msra.mxu1 %v4548_v45  ;;  %v4707_v18 = vld [vmem:[#allocation2 + $0x418] sm:$0xf]  ;;  %v4452_v33 = vor.u32 %v6264_v10, %v4451_v14  ;;  %v4936_v39 = vor.u32 %v6380_v30, %v4933_v31  ;;  %v6372_v45 = vld [vmem:[#allocation2 + $0x59c] sm:$0xf] }
  0xfe   :  { %v6328_v19 = vld [vmem:[#allocation2 + $0x434] sm:$0xf0]  ;;  %v4904_v55 = vor.u32 %v6372_v45, %v4901_v9  ;;  %v6292_v13 = vld [vmem:[#allocation2 + $0x31c] sm:$0xf] }
  0xff   :  { %1997 = vmatpush.bf16.msra.mxu2 %v4804_v48  ;;  %1970 = vmatpush.bf16.msra.mxu0 %v4260_v57  ;;  %v4963_v34 = vld [vmem:[#allocation2 + $0x618] sm:$0xf]  ;;  %v4708_v27 = vor.u32 %v6328_v19, %v4707_v18  ;;  %v6907_v48 = vpop.f32.mrf.mxu2  ;;  %v4357_v57 = vld [vmem:[#allocation2 + $0x178] sm:$0xf0]  ;;  %v5128_v19 = vor.u32 %v6428_v4, %v5125_v5  ;;  %v6934_v5 = vld [vmem:[%s7139_s2] sm:$0xff] }
 0x100   :  { %v6392_v35 = vld [vmem:[#allocation2 + $0x634] sm:$0xf0]  ;;  %v4360_v3 = vor.u32 %v6236_v56, %v4357_v57  ;;  %v4581_v14 = vld [vmem:[#allocation2 + $0x338] sm:$0xf0] }
 0x101   :  { %2011 = vmatpush.bf16.msra.mxu3 %v5060_v52  ;;  %1984 = vmatpush.bf16.msra.mxu1 %v4516_v59  ;;  %v4964_v43 = vor.u32 %v6392_v35, %v4963_v34  ;;  %v5157_v52 = vld [vmem:[#allocation2 + $0x7b8] sm:$0xf0]  ;;  %v6912_v60 = vpop.f32.mrf.mxu0  ;;  %v4584_v25 = vor.u32 %v6292_v13, %v4581_v14 }
 0x102   :  { %v6300_v59 = vld [vmem:[#allocation2 + $0x35c] sm:$0xf] }
 0x103   :  { %1998 = vmatpush.bf16.msra.mxu2 %v4772_v61  ;;  %1971 = vmatpush.bf16.msra.mxu0 %v4228_v8  ;;  %v6914_v61 = vpop.f32.mrf.mxu1  ;;  %v4616_v6 = vor.u32 %v6300_v59, %v4613_v62  ;;  %v4872_v8 = vor.u32 %v6364_v63, %v4869_v1  ;;  %v4837_v10 = vld [vmem:[#allocation2 + $0x538] sm:$0xf0] }
 0x104   :  { %v6220_v30 = vld [vmem:[#allocation2 + $0xdc] sm:$0xf] }
 0x105   :  { %2012 = vmatpush.bf16.msra.mxu3 %v5028_v2  ;;  %1985 = vmatpush.bf16.msra.mxu1 %v4484_v11  ;;  %v5160_v2 = vor.u32 %v6436_v51, %v5157_v52  ;;  %v6228_v11 = vld [vmem:[#allocation2 + $0x11c] sm:$0xf] }
 0x106   :  { %v4328_v20 = vor.u32 %v6228_v11, %v4325_v12  ;;  %v4293_v31 = vld [vmem:[#allocation2 + $0xf8] sm:$0xf0] }
 0x107   :  { %1999 = vmatpush.bf16.msra.mxu2 %v4740_v15  ;;  %1972 = vmatpush.bf16.msra.mxu0 %v4196_v32  ;;  %v6356_v15 = vld [vmem:[#allocation2 + $0x51c] sm:$0xf]  ;;  %v6921_v18 = vpop.f32.mrf.mxu2 }
 0x108   :  { %v4840_v29 = vor.u32 %v6356_v15, %v4837_v10  ;;  %v6284_v32 = vld [vmem:[#allocation2 + $0x2dc] sm:$0xf] }
 0x109   :  { %2013 = vmatpush.bf16.msra.mxu3 %v4996_v21  ;;  %1986 = vmatpush.bf16.msra.mxu1 %v4452_v33  ;;  %v6420_v21 = vld [vmem:[#allocation2 + $0x71c] sm:$0xf] }
 0x10a   :  { %1973 = vmatmul.bf16.vlgmr.msra.gmra.mxu0 %v6836_v16  ;;  %v4549_v33 = vld [vmem:[#allocation2 + $0x2f8] sm:$0xf0] }
 0x10b   :  { %2000 = vmatpush.bf16.msra.mxu2 %v4708_v27  ;;  %2021 = vmatpush.bf16.msrb.mxu0 %v4424_v36  ;;  %v6348_v34 = vld [vmem:[#allocation2 + $0x4dc] sm:$0xf]  ;;  %v5096_v27 = vor.u32 %v6420_v21, %v5093_v23  ;;  %v6925_v36 = vpop.f32.mrf.mxu0  ;;  %v6927_v37 = vpop.f32.mrf.mxu1  ;;  %v4552_v41 = vor.u32 %v6284_v32, %v4549_v33  ;;  %v6471_v33 = vld [vmem:[#allocation4 + $0xec] sm:$0xf0] }
 0x10c   :  { %1987 = vmatmul.bf16.vlgmr.msra.gmra.mxu1 %v6850_v22  ;;  %v4805_v35 = vld [vmem:[#allocation2 + $0x4f8] sm:$0xf0] }
 0x10d   :  { %2035 = vmatpush.bf16.msrb.mxu1 %v4680_v38  ;;  %2014 = vmatpush.bf16.msra.mxu3 %v4964_v43  ;;  %v4296_v38 = vor.u32 %v6220_v30, %v4293_v31  ;;  %v4808_v42 = vor.u32 %v6348_v34, %v4805_v35  ;;  %v6212_v43 = vld [vmem:[#allocation2 + $0x9c] sm:$0xf]  ;;  %v5283_v31 = vld [vmem:[#allocation4 + $0xe0] sm:$0xf]  ;;  %v6503_v35 = vld [vmem:[#allocation4 + $0x1ec] sm:$0xf0] }
 0x10e   :  { %2001 = vmatmul.bf16.vlgmr.msra.gmra.mxu2 %v6822_v0  ;;  %v4261_v44 = vld [vmem:[#allocation2 + $0xb8] sm:$0xf0]  ;;  %v5411_v34 = vld [vmem:[#allocation4 + $0x1e0] sm:$0xf] }
 0x10f   :  { %2049 = vmatpush.bf16.msrb.mxu2 %v4936_v39  ;;  %2022 = vmatpush.bf16.msrb.mxu0 %v4392_v50  ;;  %v6412_v39 = vld [vmem:[#allocation2 + $0x6dc] sm:$0xf]  ;;  %v4264_v52 = vor.u32 %v6212_v43, %v4261_v44  ;;  %v6929_v56 = vpop.f32.mrf.mxu2 }
 0x110   :  { %5167 = vmatmul.msk.bf16.vlgmr.msra.gmra.mxu3 %vm1600_vm1, %v6838_v17  ;;  %v6276_v45 = vld [vmem:[#allocation2 + $0x29c] sm:$0xf]  ;;  %v5064_v51 = vor.u32 %v6412_v39, %v5061_v40  ;;  %v5539_v39 = vld [vmem:[#allocation4 + $0x2e0] sm:$0xf]  ;;  %v6535_v40 = vld [vmem:[#allocation4 + $0x2ec] sm:$0xf0] }
 0x111   :  { %2063 = vmatpush.bf16.msrb.mxu3 %v1627_v49  ;;  %2036 = vmatpush.bf16.msrb.mxu1 %v4648_v54  ;;  %v4517_v9 = vld [vmem:[#allocation2 + $0x2b8] sm:$0xf0] }
 0x112   :  { %v6340_v49 = vld [vmem:[#allocation2 + $0x49c] sm:$0xf]  ;;  %v4520_v57 = vor.u32 %v6276_v45, %v4517_v9  ;;  %v5284_v9 = vor.u32 %v6471_v33, %v5283_v31  ;;  %v5651_v33 = vld [vmem:[#allocation4 + $0x3c0] sm:$0xf] }
 0x113   :  { %2050 = vmatpush.bf16.msrb.mxu2 %v4904_v55  ;;  %2023 = vmatpush.bf16.msrb.mxu0 %v4360_v3  ;;  %v4773_v50 = vld [vmem:[#allocation2 + $0x4b8] sm:$0xf0]  ;;  %v6938_v12 = vpop.f32.mrf.mxu0  ;;  %v6940_v10 = vpop.f32.mrf.mxu1 }
 0x114   :  { %v6404_v54 = vld [vmem:[#allocation2 + $0x69c] sm:$0xf]  ;;  %v4776_v59 = vor.u32 %v6340_v49, %v4773_v50  ;;  %v5412_v49 = vor.u32 %v6503_v35, %v5411_v34  ;;  %v6563_v34 = vld [vmem:[#allocation4 + $0x3cc] sm:$0xf0] }
 0x115   :  { %2064 = vmatpush.bf16.msrb.mxu3 %v5160_v2  ;;  %2037 = vmatpush.bf16.msrb.mxu1 %v4616_v6  ;;  %v5029_v55 = vld [vmem:[#allocation2 + $0x6b8] sm:$0xf0]  ;;  %v6936_v6 = vpop.f32.mrf.mxu3 }
 0x116   :  { %v6204_v62 = vld [vmem:[#allocation2 + $0x5c] sm:$0xf] }
 0x117   :  { %2051 = vmatpush.bf16.msrb.mxu2 %v4872_v8  ;;  %2024 = vmatpush.bf16.msrb.mxu0 %v4328_v20  ;;  %v4229_v63 = vld [vmem:[#allocation2 + $0x78] sm:$0xf0]  ;;  %v5032_v8 = vor.u32 %v6404_v54, %v5029_v55  ;;  %v6944_v44 = vpop.f32.mrf.mxu2  ;;  %v5540_v54 = vor.u32 %v6535_v40, %v5539_v39  ;;  %v5395_v55 = vld [vmem:[#allocation4 + $0x1c0] sm:$0xf]  ;;  %v5652_v40 = vor.u32 %v6563_v34, %v5651_v33  ;;  %v6551_v34 = vld [vmem:[#allocation4 + $0x36c] sm:$0xf0] }
 0x118   :  { %v6268_v1 = vld [vmem:[#allocation2 + $0x25c] sm:$0xf]  ;;  %v4232_v11 = vor.u32 %v6204_v62, %v4229_v63  ;;  %v5235_v39 = vld [vmem:[#allocation4 + $0x80] sm:$0xf] }
 0x119   :  { %2065 = vmatpush.bf16.msrb.mxu3 %v5128_v19  ;;  %2038 = vmatpush.bf16.msrb.mxu1 %v4584_v25  ;;  %v4485_v2 = vld [vmem:[#allocation2 + $0x278] sm:$0xf0]  ;;  %v5603_v33 = vld [vmem:[#allocation4 + $0x360] sm:$0xf] }
 0x11a   :  { %v6332_v3 = vld [vmem:[#allocation2 + $0x45c] sm:$0xf]  ;;  %v4488_v19 = vor.u32 %v6268_v1, %v4485_v2  ;;  %v6531_v1 = vld [vmem:[#allocation4 + $0x2cc] sm:$0xf0]  ;;  %v5667_v2 = vld [vmem:[#allocation4 + $0x3e0] sm:$0xf] }
 0x11b   :  { %2052 = vmatpush.bf16.msrb.mxu2 %v4840_v29  ;;  %2025 = vmatpush.bf16.msrb.mxu0 %v4296_v38  ;;  %v4741_v4 = vld [vmem:[#allocation2 + $0x478] sm:$0xf0] }
 0x11c   :  { %v6396_v13 = vld [vmem:[#allocation2 + $0x65c] sm:$0xf]  ;;  %v4744_v20 = vor.u32 %v6332_v3, %v4741_v4  ;;  %v6567_v3 = vld [vmem:[#allocation4 + $0x3ec] sm:$0xf0] }
 0x11d   :  { %2066 = vmatpush.bf16.msrb.mxu3 %v5096_v27  ;;  %2039 = vmatpush.bf16.msrb.mxu1 %v4552_v41  ;;  %v4997_v14 = vld [vmem:[#allocation2 + $0x678] sm:$0xf0]  ;;  %v324_v27 = vperm.slane %v6934_v5, 0  ;;  %v325_v41 = vperm.slane %v6934_v5, 1  ;;  %v6947_v63 = vpop.f32.mrf.mxu3 }
 0x11e   :  { %v6196_v15 = vld [vmem:[#allocation2 + $0x1c] sm:$0xf]  ;;  %v5000_v32 = vor.u32 %v6396_v13, %v4997_v14 }
 0x11f   :  { %2053 = vmatpush.bf16.msrb.mxu2 %v4808_v42  ;;  %2026 = vmatpush.bf16.msrb.mxu0 %v4264_v52  ;;  %v4197_v21 = vld [vmem:[#allocation2 + $0x38] sm:$0xf0]  ;;  %v6467_v52 = vld [vmem:[#allocation4 + $0xcc] sm:$0xf0]  ;;  %v1639_v62 = vadd.f32 %v6894_v46, %v324_v27  ;;  %v1641_v4 = vadd.f32 %v6903_v26, %v324_v27  ;;  %v5251_v46 = vld [vmem:[#allocation4 + $0xa0] sm:$0xf]  ;;  %v1695_v31 = vadd.f32 %v6912_v60, %v325_v41 }
 0x120   :  { %v6260_v23 = vld [vmem:[#allocation2 + $0x21c] sm:$0xf]  ;;  %v4200_v38 = vor.u32 %v6196_v15, %v4197_v21  ;;  %v1752_v15 = vpop.f32.mrf.mxu0  ;;  %v6495_v26 = vld [vmem:[#allocation4 + $0x1ac] sm:$0xf0] }
 0x121   :  { %2067 = vmatpush.bf16.msrb.mxu3 %v5064_v51  ;;  %2040 = vmatpush.bf16.msrb.mxu1 %v4520_v57  ;;  %v4453_v25 = vld [vmem:[#allocation2 + $0x238] sm:$0xf0]  ;;  %v5267_v51 = vld [vmem:[#allocation4 + $0xc0] sm:$0xf]  ;;  %v6499_v57 = vld [vmem:[#allocation4 + $0x1cc] sm:$0xf0]  ;;  %v1655_v35 = vadd.f32 %v6905_v28, %v1641_v4 }
 0x122   :  { %v6324_v29 = vld [vmem:[#allocation2 + $0x41c] sm:$0xf]  ;;  %v4456_v42 = vor.u32 %v6260_v23, %v4453_v25  ;;  %v5268_v13 = vor.u32 %v6467_v52, %v5267_v51  ;;  %v5396_v14 = vor.u32 %v6499_v57, %v5395_v55  ;;  %v5668_v23 = vor.u32 %v6567_v3, %v5667_v2  ;;  %v5379_v25 = vld [vmem:[#allocation4 + $0x1a0] sm:$0xf]  ;;  %v6459_v60 = vld [vmem:[#allocation4 + $0x8c] sm:$0xf0] }
 0x123   :  { %2054 = vmatpush.bf16.msrb.mxu2 %v4776_v59  ;;  %v4709_v30 = vld [vmem:[#allocation2 + $0x438] sm:$0xf0]  ;;  %2027 = vmatpush.bf16.msrb.mxu0 %v4232_v11  ;;  %v5523_v59 = vld [vmem:[#allocation4 + $0x2c0] sm:$0xf] }
 0x124   :  { %v4712_v43 = vor.u32 %v6324_v29, %v4709_v30  ;;  %v6388_v45 = vld [vmem:[#allocation2 + $0x61c] sm:$0xf]  ;;  %v5524_v21 = vor.u32 %v6531_v1, %v5523_v59  ;;  %v5507_v29 = vld [vmem:[#allocation4 + $0x2a0] sm:$0xf]  ;;  %v1653_v30 = vadd.f32 %v6896_v47, %v1639_v62  ;;  %v5380_v47 = vor.u32 %v6495_v26, %v5379_v25 }
 0x125   :  { %2068 = vmatpush.bf16.msrb.mxu3 %v5032_v8  ;;  %2041 = vmatpush.bf16.msrb.mxu1 %v4488_v19  ;;  %v4965_v50 = vld [vmem:[#allocation2 + $0x638] sm:$0xf0]  ;;  %v326_v8 = vperm.slane %v6934_v5, 2  ;;  %v1766_v19 = vpop.f32.mrf.mxu1  ;;  %v5219_v57 = vld [vmem:[#allocation4 + $0x60] sm:$0xf] }
 0x126   :  { %v4968_v11 = vor.u32 %v6388_v45, %v4965_v50  ;;  %v5491_v45 = vld [vmem:[#allocation4 + $0x280] sm:$0xf]  ;;  %v1667_v28 = vadd.f32 %v6898_v58, %v1653_v30  ;;  %v1669_v50 = vadd.f32 %v6907_v48, %v1655_v35  ;;  %v6967_v58 = vpop.f32.mrf.mxu3  ;;  %v6487_v48 = vld [vmem:[#allocation4 + $0x16c] sm:$0xf0] }
 0x127   :  { %2055 = vmatpush.bf16.msrb.mxu2 %v4744_v20  ;;  %2028 = vmatpush.bf16.msrb.mxu0 %v4200_v38  ;;  %v6463_v20 = vld [vmem:[#allocation4 + $0xac] sm:$0xf0]  ;;  %v1751_v27 = vadd.f32 %v6938_v12, %v326_v8  ;;  %v1753_v12 = vadd.f32 %v1752_v15, %v326_v8  ;;  %v5347_v1 = vld [vmem:[#allocation4 + $0x160] sm:$0xf] }
 0x128   :  { %v5252_v38 = vor.u32 %v6463_v20, %v5251_v46  ;;  %v5475_v2 = vld [vmem:[#allocation4 + $0x260] sm:$0xf]  ;;  %v1806_v4 = vpop.f32.mrf.mxu0  ;;  %v6974_v15 = vadd.f32 %v6910_v53, %v1669_v50  ;;  %v6483_v30 = vld [vmem:[#allocation4 + $0x14c] sm:$0xf0] }
 0x129   :  { %2069 = vmatpush.bf16.msrb.mxu3 %v5000_v32  ;;  %2042 = vmatpush.bf16.msrb.mxu1 %v4456_v42  ;;  %v6527_v32 = vld [vmem:[#allocation4 + $0x2ac] sm:$0xf0]  ;;  %v5363_v42 = vld [vmem:[#allocation4 + $0x180] sm:$0xf]  ;;  %v1765_v52 = vadd.f32 %v6940_v10, %v1751_v27  ;;  %v1767_v3 = vadd.f32 %v1766_v19, %v1753_v12 }
 0x12a   :  { %2029 = vmatmul.bf16.vlgmr.msrb.gmra.mxu0 %v6836_v16  ;;  %v1697_v16 = vadd.f32 %v6925_v36, %v325_v41  ;;  %v1709_v36 = vadd.f32 %v6914_v61, %v1695_v31  ;;  %v6523_v41 = vld [vmem:[#allocation4 + $0x28c] sm:$0xf0]  ;;  %v5236_v61 = vor.u32 %v6459_v60, %v5235_v39  ;;  %v5203_v19 = vld [vmem:[#allocation4 + $0x40] sm:$0xf] }
 0x12b   :  { %2056 = vmatpush.bf16.msrb.mxu2 %v4712_v43  ;;  %3663 = vmatpush.bf16.msra.mxu0 %v5284_v9  ;;  %v6491_v43 = vld [vmem:[#allocation4 + $0x18c] sm:$0xf0]  ;;  %v5635_v9 = vld [vmem:[#allocation4 + $0x3a0] sm:$0xf]  ;;  %v5492_v59 = vor.u32 %v6523_v41, %v5491_v45  ;;  %v1779_v20 = vadd.f32 %v6944_v44, %v1765_v52 }
 0x12c   :  { %2043 = vmatmul.bf16.vlgmr.msrb.gmra.mxu1 %v6850_v22  ;;  %v5508_v22 = vor.u32 %v6527_v32, %v5507_v29  ;;  %v1711_v51 = vadd.f32 %v6927_v37, %v1697_v16  ;;  %v5364_v55 = vor.u32 %v6491_v43, %v5363_v42  ;;  %v6970_v37 = vadd.f32 %v6900_v7, %v1667_v28  ;;  %v5331_v53 = vld [vmem:[#allocation4 + $0x140] sm:$0xf]  ;;  %v6515_v32 = vld [vmem:[#allocation4 + $0x24c] sm:$0xf0] }
 0x12d   :  { %3677 = vmatpush.bf16.msra.mxu1 %v5412_v49  ;;  %2070 = vmatpush.bf16.msrb.mxu3 %v4968_v11  ;;  %v6559_v49 = vld [vmem:[#allocation4 + $0x3ac] sm:$0xf0]  ;;  %v1723_v10 = vadd.f32 %v6921_v18, %v1709_v36  ;;  %v1820_v8 = vpop.f32.mrf.mxu1  ;;  %v5348_v18 = vor.u32 %v6487_v48, %v5347_v1  ;;  %v5459_v31 = vld [vmem:[#allocation4 + $0x240] sm:$0xf]  ;;  %v6987_v16 = vmul.f32 0.01, %v6974_v15  ;;  %v5332_v39 = vor.u32 %v6483_v30, %v5331_v53 }
 0x12e   :  { %2057 = vmatmul.bf16.vlgmr.msrb.gmra.mxu2 %v6822_v0  ;;  %v1780_v0 = vpop.f32.mrf.mxu2  ;;  %v5636_v62 = vor.u32 %v6559_v49, %v5635_v9  ;;  %v6519_v11 = vld [vmem:[#allocation4 + $0x26c] sm:$0xf0]  ;;  %v1725_v46 = vadd.f32 %v6929_v56, %v1711_v51  ;;  %v6984_v35 = vmul.f32 0.01, %v6970_v37  ;;  %v5187_v60 = vld [vmem:[#allocation4 + $0x20] sm:$0xf]  ;;  %v5460_v42 = vor.u32 %v6515_v32, %v5459_v31 }
 0x12f   :  { %3691 = vmatpush.bf16.msra.mxu2 %v5540_v54  ;;  %3664 = vmatpush.bf16.msra.mxu0 %v5268_v13  ;;  %v327_v54 = vperm.slane %v6934_v5, 3  ;;  %v5619_v13 = vld [vmem:[#allocation4 + $0x380] sm:$0xf]  ;;  %v5476_v26 = vor.u32 %v6519_v11, %v5475_v2  ;;  %v6981_v56 = vadd.f32 %v6923_v24, %v1723_v10  ;;  %v1781_v44 = vadd.f32 %v1780_v0, %v1767_v3  ;;  %v6479_v45 = vld [vmem:[#allocation4 + $0x12c] sm:$0xf0] }
 0x130   :  { %5168 = vmatmul.msk.bf16.vlgmr.msrb.gmra.mxu3 %vm1600_vm1, %v6838_v17  ;;  %v6455_v17 = vld [vmem:[#allocation4 + $0x6c] sm:$0xf0]  ;;  %v6990_v27 = vadd.f32 %v6936_v6, %v1725_v46  ;;  %v5315_v0 = vld [vmem:[#allocation4 + $0x120] sm:$0xf]  ;;  %v5604_v43 = vor.u32 %v6551_v34, %v5603_v33  ;;  %v1808_v41 = vpop.f32.mrf.mxu0  ;;  %v2101_v46 = vmax.f32 %v6974_v15, %v6987_v16 }
 0x131   :  { %3678 = vmatpush.bf16.msra.mxu1 %v5396_v14  ;;  %3705 = vmatpush.bf16.msra.mxu3 %v5668_v23  ;;  %v6555_v14 = vld [vmem:[#allocation4 + $0x38c] sm:$0xf0]  ;;  %v5220_v7 = vor.u32 %v6455_v17, %v5219_v57  ;;  %v5443_v28 = vld [vmem:[#allocation4 + $0x220] sm:$0xf]  ;;  %v6996_v36 = vmul.f32 0.01, %v6981_v56  ;;  %v1809_v52 = vadd.f32 %v1808_v41, %v327_v54  ;;  %v5316_v17 = vor.u32 %v6479_v45, %v5315_v0 }
 0x132   :  { %v6451_v23 = vld [vmem:[#allocation4 + $0x4c] sm:$0xf0]  ;;  %v5620_v29 = vor.u32 %v6555_v14, %v5619_v13  ;;  %v5587_v9 = vld [vmem:[#allocation4 + $0x340] sm:$0xf]  ;;  %v2086_v50 = vmul.f32 0.01, %v6990_v27  ;;  %v2093_v14 = vmax.f32 %v6970_v37, %v6984_v35 }
 0x133   :  { %3692 = vmatpush.bf16.msra.mxu2 %v5524_v21  ;;  %3665 = vmatpush.bf16.msra.mxu0 %v5252_v38  ;;  %v1807_v21 = vadd.f32 %v1806_v4, %v327_v54  ;;  %v6993_v38 = vadd.f32 %v6947_v63, %v1779_v20  ;;  %v5204_v24 = vor.u32 %v6451_v23, %v5203_v19  ;;  %v6511_v6 = vld [vmem:[#allocation4 + $0x22c] sm:$0xf0]  ;;  %v1848_v12 = vpop.f32.mrf.mxu3  ;;  %v5427_v3 = vld [vmem:[#allocation4 + $0x200] sm:$0xf] }
 0x134   :  { %v6999_v63 = vadd.f32 %v6967_v58, %v1781_v44  ;;  %v6547_v49 = vld [vmem:[#allocation4 + $0x34c] sm:$0xf0]  ;;  %v5444_v58 = vor.u32 %v6511_v6, %v5443_v28  ;;  %v5571_v13 = vld [vmem:[#allocation4 + $0x320] sm:$0xf]  ;;  %v2094_v20 = vmax.f32 %v6981_v56, %v6996_v36 }
 0x135   :  { %3679 = vmatpush.bf16.msra.mxu1 %v5380_v47  ;;  %3706 = vmatpush.bf16.msra.mxu3 %v5652_v40  ;;  %v1821_v25 = vadd.f32 %v1820_v8, %v1807_v21  ;;  %v7003_v51 = vmul.f32 0.01, %v6993_v38  ;;  %v6475_v1 = vld [vmem:[#allocation4 + $0x10c] sm:$0xf0]  ;;  %v5588_v10 = vor.u32 %v6547_v49, %v5587_v9  ;;  %v5795_v8 = vld [vmem:[#allocation4 + $0x4e0] sm:$0xf] }
 0x136   :  { %v1834_v47 = vpop.f32.mrf.mxu2  ;;  %v6507_v4 = vld [vmem:[#allocation4 + $0x20c] sm:$0xf0]  ;;  %v2087_v54 = vmul.f32 0.01, %v6999_v63  ;;  %v5779_v32 = vld [vmem:[#allocation4 + $0x4c0] sm:$0xf] }
 0x137   :  { %3693 = vmatpush.bf16.msra.mxu2 %v5508_v22  ;;  %3666 = vmatpush.bf16.msra.mxu0 %v5236_v61  ;;  %v6447_v22 = vld [vmem:[#allocation4 + $0x2c] sm:$0xf0]  ;;  %v1835_v40 = vadd.f32 %v1834_v47, %v1821_v25  ;;  %v1822_v61 = vpop.f32.mrf.mxu1  ;;  %v5428_v37 = vor.u32 %v6507_v4, %v5427_v3  ;;  %v2095_v30 = vmax.f32 %v6993_v38, %v7003_v51  ;;  %v5555_v34 = vld [vmem:[#allocation4 + $0x300] sm:$0xf] }
 0x138   :  { %v5188_v57 = vor.u32 %v6447_v22, %v5187_v60  ;;  %v1823_v2 = vadd.f32 %v1822_v61, %v1809_v52  ;;  %v6599_v11 = vld [vmem:[#allocation4 + $0x4ec] sm:$0xf0]  ;;  %v2103_v31 = vmax.f32 %v6999_v63, %v2087_v54  ;;  %v5891_v36 = vld [vmem:[#allocation4 + $0x5a0] sm:$0xf] }
 0x139   :  { %3680 = vmatpush.bf16.msra.mxu1 %v5364_v55  ;;  %3707 = vmatpush.bf16.msra.mxu3 %v5636_v62  ;;  %v5171_v55 = vld [vmem:[#allocation4] sm:$0xf]  ;;  %v7007_v48 = vadd.f32 %v1848_v12, %v1835_v40  ;;  %v6631_v19 = vld [vmem:[#allocation4 + $0x5ec] sm:$0xf0]  ;;  %v5796_v15 = vor.u32 %v6599_v11, %v5795_v8 }
 0x13a   :  { %v5299_v62 = vld [vmem:[#allocation4 + $0x100] sm:$0xf]  ;;  %v6595_v33 = vld [vmem:[#allocation4 + $0x4cc] sm:$0xf0]  ;;  %v7026_v40 = vpack.c.bf16 %v2103_v31, %v2095_v30 }
 0x13b   :  { %3694 = vmatpush.bf16.msra.mxu2 %v5492_v59  ;;  %3667 = vmatpush.bf16.msra.mxu0 %v5220_v7  ;;  %v6443_v59 = vld [vmem:[#allocation4 + $0xc] sm:$0xf0]  ;;  %v2080_v53 = vmul.f32 0.01, %v7007_v48  ;;  %v1850_v56 = vpop.f32.mrf.mxu3  ;;  %v5780_v0 = vor.u32 %v6595_v33, %v5779_v32  ;;  %v6051_v12 = vld [vmem:[#allocation4 + $0x6e0] sm:$0xf] }
 0x13c   :  { %v6543_v7 = vld [vmem:[#allocation4 + $0x32c] sm:$0xf0]  ;;  %v5172_v25 = vor.u32 %v6443_v59, %v5171_v55  ;;  %v6035_v55 = vld [vmem:[#allocation4 + $0x6c0] sm:$0xf] }
 0x13d   :  { %3681 = vmatpush.bf16.msra.mxu1 %v5348_v18  ;;  %3708 = vmatpush.bf16.msra.mxu3 %v5620_v29  ;;  %v5923_v18 = vld [vmem:[#allocation4 + $0x5e0] sm:$0xf]  ;;  %v2102_v29 = vmax.f32 %v6990_v27, %v2086_v50  ;;  %v5572_v44 = vor.u32 %v6543_v7, %v5571_v13  ;;  %v6539_v47 = vld [vmem:[#allocation4 + $0x30c] sm:$0xf0]  ;;  %v2096_v38 = vmax.f32 %v7007_v48, %v2080_v53 }
 0x13e   :  { %v1836_v21 = vpop.f32.mrf.mxu2  ;;  %v5924_v35 = vor.u32 %v6631_v19, %v5923_v18  ;;  %v5907_v27 = vld [vmem:[#allocation4 + $0x5c0] sm:$0xf]  ;;  %v6591_v45 = vld [vmem:[#allocation4 + $0x4ac] sm:$0xf0] }
 0x13f   :  { %3695 = vmatpush.bf16.msra.mxu2 %v5476_v26  ;;  %3668 = vmatpush.bf16.msra.mxu0 %v5204_v24  ;;  %v1837_v23 = vadd.f32 %v1836_v21, %v1823_v2  ;;  %v5300_v26 = vor.u32 %v6475_v1, %v5299_v62  ;;  %v6627_v24 = vld [vmem:[#allocation4 + $0x5cc] sm:$0xf0]  ;;  %v7023_v60 = vpack.c.bf16 %v2102_v29, %v2094_v20  ;;  %v5747_v50 = vld [vmem:[#allocation4 + $0x480] sm:$0xf] }
 0x140   :  { %v5908_v28 = vor.u32 %v6627_v24, %v5907_v27  ;;  %v6623_v63 = vld [vmem:[#allocation4 + $0x5ac] sm:$0xf0]  ;;  %v5731_v2 = vld [vmem:[#allocation4 + $0x460] sm:$0xf] }
 0x141   :  { %3682 = vmatpush.bf16.msra.mxu1 %v5332_v39  ;;  %3709 = vmatpush.bf16.msra.mxu3 %v5604_v43  ;;  %v1851_v16 = vadd.f32 %v1850_v56, %v1837_v23  ;;  %v7021_v39 = vpack.c.bf16 %v2101_v46, %v2093_v14  ;;  %v5763_v43 = vld [vmem:[#allocation4 + $0x4a0] sm:$0xf]  ;;  %v6663_v41 = vld [vmem:[#allocation4 + $0x6ec] sm:$0xf0]  ;;  %v5892_v61 = vor.u32 %v6623_v63, %v5891_v36 }
 0x142   :  { %v5764_v49 = vor.u32 %v6591_v45, %v5763_v43  ;;  %v6052_v51 = vor.u32 %v6663_v41, %v6051_v12  ;;  %v6587_v52 = vld [vmem:[#allocation4 + $0x48c] sm:$0xf0]  ;;  %v5859_v8 = vld [vmem:[#allocation4 + $0x560] sm:$0xf]  ;;  %v6469_v45 = vld [vmem:[#allocation4 + $0xe4] sm:$0xf] }
 0x143   :  { %3696 = vmatpush.bf16.msra.mxu2 %v5460_v42  ;;  %3669 = vmatpush.bf16.msra.mxu0 %v5188_v57  ;;  %v2088_v22 = vmul.f32 0.01, %v1851_v16  ;;  %v5556_v42 = vor.u32 %v6539_v47, %v5555_v34  ;;  %v6659_v57 = vld [vmem:[#allocation4 + $0x6cc] sm:$0xf0]  ;;  %v5748_v1 = vor.u32 %v6587_v52, %v5747_v50  ;;  %v6019_v13 = vld [vmem:[#allocation4 + $0x6a0] sm:$0xf] }
 0x144   :  { %v6619_v59 = vld [vmem:[#allocation4 + $0x58c] sm:$0xf0]  ;;  %v6036_v62 = vor.u32 %v6659_v57, %v6035_v55  ;;  %v5715_v21 = vld [vmem:[#allocation4 + $0x440] sm:$0xf]  ;;  %v6501_v41 = vld [vmem:[#allocation4 + $0x1e4] sm:$0xf] }
 0x145   :  { %3683 = vmatpush.bf16.msra.mxu1 %v5316_v17  ;;  %3710 = vmatpush.bf16.msra.mxu3 %v5588_v10  ;;  %v2104_v6 = vmax.f32 %v1851_v16, %v2088_v22  ;;  %v328_v17 = vperm.slane %v6934_v5, 4  ;;  %v6583_v10 = vld [vmem:[#allocation4 + $0x46c] sm:$0xf0]  ;;  %v5843_v23 = vld [vmem:[#allocation4 + $0x540] sm:$0xf] }
 0x146   :  { %v6615_v54 = vld [vmem:[#allocation4 + $0x56c] sm:$0xf0]  ;;  %v5732_v46 = vor.u32 %v6583_v10, %v5731_v2  ;;  %v5699_v31 = vld [vmem:[#allocation4 + $0x420] sm:$0xf]  ;;  %v6497_v2 = vld [vmem:[#allocation4 + $0x1c4] sm:$0xf] }
 0x147   :  { %3697 = vmatpush.bf16.msra.mxu2 %v5444_v58  ;;  %3670 = vmatpush.bf16.msra.mxu0 %v5172_v25  ;;  %v7031_v9 = vpack.c.bf16 %v2104_v6, %v2096_v38  ;;  %v5875_v58 = vld [vmem:[#allocation4 + $0x580] sm:$0xf]  ;;  %v1862_v48 = vpop.f32.mrf.mxu0  ;;  %v6655_v14 = vld [vmem:[#allocation4 + $0x6ac] sm:$0xf0]  ;;  %v5860_v18 = vor.u32 %v6615_v54, %v5859_v8 }
 0x148   :  { %v5876_v3 = vor.u32 %v6619_v59, %v5875_v58  ;;  %v1863_v4 = vadd.f32 %v1862_v48, %v328_v17  ;;  %v6020_v20 = vor.u32 %v6655_v14, %v6019_v13  ;;  %v6579_v7 = vld [vmem:[#allocation4 + $0x44c] sm:$0xf0]  ;;  %v5827_v34 = vld [vmem:[#allocation4 + $0x520] sm:$0xf]  ;;  %v6465_v58 = vld [vmem:[#allocation4 + $0xc4] sm:$0xf] }
 0x149   :  { %3684 = vmatpush.bf16.msra.mxu1 %v5300_v26  ;;  %3711 = vmatpush.bf16.msra.mxu3 %v5572_v44  ;;  %v1876_v11 = vpop.f32.mrf.mxu1  ;;  %v6611_v25 = vld [vmem:[#allocation4 + $0x54c] sm:$0xf0]  ;;  %v6003_v26 = vld [vmem:[#allocation4 + $0x680] sm:$0xf]  ;;  %v6461_v14 = vld [vmem:[#allocation4 + $0xa4] sm:$0xf] }
 0x14a   :  { %3671 = vmatmul.bf16.vlgmr.msra.gmra.mxu0 %v7021_v39  ;;  %v1877_v19 = vadd.f32 %v1876_v11, %v1863_v4  ;;  %v6651_v29 = vld [vmem:[#allocation4 + $0x68c] sm:$0xf0]  ;;  %v5844_v44 = vor.u32 %v6611_v25, %v5843_v23  ;;  %v5987_v27 = vld [vmem:[#allocation4 + $0x660] sm:$0xf] }
 0x14b   :  { %3698 = vmatpush.bf16.msra.mxu2 %v5428_v37  ;;  %3719 = vmatpush.bf16.msrb.mxu0 %v5796_v15  ;;  %v5716_v37 = vor.u32 %v6579_v7, %v5715_v21  ;;  %v6004_v15 = vor.u32 %v6651_v29, %v6003_v26  ;;  %v6575_v56 = vld [vmem:[#allocation4 + $0x42c] sm:$0xf0]  ;;  %v5683_v22 = vld [vmem:[#allocation4 + $0x400] sm:$0xf]  ;;  %v5253_v21 = vld [vmem:[#allocation4 + $0xb0] sm:$0xf0] }
 0x14c   :  { %3685 = vmatmul.bf16.vlgmr.msra.gmra.mxu1 %v7023_v60  ;;  %v6647_v24 = vld [vmem:[#allocation4 + $0x66c] sm:$0xf0]  ;;  %v5700_v38 = vor.u32 %v6575_v56, %v5699_v31  ;;  %v5811_v63 = vld [vmem:[#allocation4 + $0x500] sm:$0xf]  ;;  %v6533_v56 = vld [vmem:[#allocation4 + $0x2e4] sm:$0xf] }
 0x14d   :  { %3733 = vmatpush.bf16.msrb.mxu1 %v5924_v35  ;;  %3712 = vmatpush.bf16.msra.mxu3 %v5556_v42  ;;  %v6607_v35 = vld [vmem:[#allocation4 + $0x52c] sm:$0xf0]  ;;  %v5971_v50 = vld [vmem:[#allocation4 + $0x640] sm:$0xf] }
 0x14e   :  { %3699 = vmatmul.bf16.vlgmr.msra.gmra.mxu2 %v7026_v40  ;;  %v6571_v43 = vld [vmem:[#allocation4 + $0x40c] sm:$0xf0]  ;;  %v5828_v6 = vor.u32 %v6607_v35, %v5827_v34  ;;  %v5955_v4 = vld [vmem:[#allocation4 + $0x620] sm:$0xf]  ;;  %v6489_v35 = vld [vmem:[#allocation4 + $0x184] sm:$0xf] }
 0x14f   :  { %3720 = vmatpush.bf16.msrb.mxu0 %v5780_v0  ;;  %3747 = vmatpush.bf16.msrb.mxu2 %v6052_v51  ;;  %v1864_v30 = vpop.f32.mrf.mxu0  ;;  %v5988_v0 = vor.u32 %v6647_v24, %v5987_v27  ;;  %v6603_v12 = vld [vmem:[#allocation4 + $0x50c] sm:$0xf0]  ;;  %v5939_v23 = vld [vmem:[#allocation4 + $0x600] sm:$0xf] }
 0x150   :  { %3713 = vmatmul.bf16.vlgmr.msra.gmra.mxu3 %v7031_v9  ;;  %v1865_v33 = vadd.f32 %v1864_v30, %v328_v17  ;;  %v6643_v51 = vld [vmem:[#allocation4 + $0x64c] sm:$0xf0]  ;;  %v5812_v59 = vor.u32 %v6603_v12, %v5811_v63  ;;  %v6457_v30 = vld [vmem:[#allocation4 + $0x84] sm:$0xf]  ;;  %v6163_v27 = vld [vmem:[#allocation4 + $0x7c0] sm:$0xf] }
 0x151   :  { %3734 = vmatpush.bf16.msrb.mxu1 %v5908_v28  ;;  %v1890_v53 = vpop.f32.mrf.mxu2  ;;  %v1878_v47 = vpop.f32.mrf.mxu1  ;;  %v5285_v28 = vld [vmem:[#allocation4 + $0xf0] sm:$0xf0]  ;;  %v5972_v55 = vor.u32 %v6643_v51, %v5971_v50  ;;  %v6639_v8 = vld [vmem:[#allocation4 + $0x62c] sm:$0xf0]  ;;  %v6485_v63 = vld [vmem:[#allocation4 + $0x164] sm:$0xf] }
 0x152   :  { %v1891_v32 = vadd.f32 %v1890_v53, %v1877_v19  ;;  %v1879_v42 = vadd.f32 %v1878_v47, %v1865_v33  ;;  %v5288_v17 = vor.u32 %v6469_v45, %v5285_v28  ;;  %v5956_v11 = vor.u32 %v6639_v8, %v5955_v4  ;;  %v5381_v19 = vld [vmem:[#allocation4 + $0x1b0] sm:$0xf0]  ;;  %v6635_v25 = vld [vmem:[#allocation4 + $0x60c] sm:$0xf0]  ;;  %v6179_v53 = vld [vmem:[#allocation4 + $0x7e0] sm:$0xf] }
 0x153   :  { %3721 = vmatpush.bf16.msrb.mxu0 %v5764_v49  ;;  %3748 = vmatpush.bf16.msrb.mxu2 %v6036_v62  ;;  %v1904_v16 = vpop.f32.mrf.mxu3  ;;  %v5413_v49 = vld [vmem:[#allocation4 + $0x1f0] sm:$0xf0]  ;;  %v5940_v29 = vor.u32 %v6635_v25, %v5939_v23  ;;  %v6691_v24 = vld [vmem:[#allocation4 + $0x7cc] sm:$0xf0]  ;;  %v6453_v45 = vld [vmem:[#allocation4 + $0x64] sm:$0xf] }
 0x154   :  { %v1905_v36 = vadd.f32 %v1904_v16, %v1891_v32  ;;  %v5416_v48 = vor.u32 %v6501_v41, %v5413_v49  ;;  %v5237_v33 = vld [vmem:[#allocation4 + $0x90] sm:$0xf0]  ;;  %v6147_v41 = vld [vmem:[#allocation4 + $0x7a0] sm:$0xf]  ;;  %v6687_v49 = vld [vmem:[#allocation4 + $0x7ac] sm:$0xf0] }
 0x155   :  { %3735 = vmatpush.bf16.msrb.mxu1 %v5892_v61  ;;  %v5684_v61 = vor.u32 %v6571_v43, %v5683_v22  ;;  %v5365_v16 = vld [vmem:[#allocation4 + $0x190] sm:$0xf0]  ;;  %v6164_v22 = vor.u32 %v6691_v24, %v6163_v27  ;;  %v329_v43 = vperm.slane %v6934_v5, 5  ;;  %v6525_v50 = vld [vmem:[#allocation4 + $0x2a4] sm:$0xf] }
 0x156   :  { %v2081_v62 = vmul.f32 0.01, %v1905_v36  ;;  %v5349_v12 = vld [vmem:[#allocation4 + $0x170] sm:$0xf0]  ;;  %v6521_v4 = vld [vmem:[#allocation4 + $0x284] sm:$0xf] }
 0x157   :  { %3722 = vmatpush.bf16.msrb.mxu0 %v5748_v1  ;;  %3749 = vmatpush.bf16.msrb.mxu2 %v6020_v20  ;;  %v5269_v1 = vld [vmem:[#allocation4 + $0xd0] sm:$0xf0] }
 0x158   :  { %v5272_v13 = vor.u32 %v6465_v58, %v5269_v1  ;;  %v6449_v58 = vld [vmem:[#allocation4 + $0x44] sm:$0xf]  ;;  %v5797_v24 = vld [vmem:[#allocation4 + $0x4f0] sm:$0xf0] }
 0x159   :  { %3736 = vmatpush.bf16.msrb.mxu1 %v5876_v3  ;;  %v1892_v52 = vpop.f32.mrf.mxu2  ;;  %v5397_v3 = vld [vmem:[#allocation4 + $0x1d0] sm:$0xf0] }
 0x15a   :  { %v1893_v57 = vadd.f32 %v1892_v52, %v1879_v42  ;;  %v5400_v7 = vor.u32 %v6497_v2, %v5397_v3  ;;  %v5240_v42 = vor.u32 %v6457_v30, %v5237_v33  ;;  %v5333_v2 = vld [vmem:[#allocation4 + $0x150] sm:$0xf0]  ;;  %v6683_v3 = vld [vmem:[#allocation4 + $0x78c] sm:$0xf0] }
 0x15b   :  { %3723 = vmatpush.bf16.msrb.mxu0 %v5732_v46  ;;  %3750 = vmatpush.bf16.msrb.mxu2 %v6004_v15  ;;  %v1906_v10 = vpop.f32.mrf.mxu3  ;;  %v2097_v46 = vmax.f32 %v1905_v36, %v2081_v62  ;;  %v5256_v15 = vor.u32 %v6461_v14, %v5253_v21  ;;  %v5368_v36 = vor.u32 %v6489_v35, %v5365_v16  ;;  %v6445_v14 = vld [vmem:[#allocation4 + $0x24] sm:$0xf]  ;;  %v5173_v33 = vld [vmem:[#allocation4 + $0x10] sm:$0xf0] }
 0x15c   :  { %v1907_v54 = vadd.f32 %v1906_v10, %v1893_v57  ;;  %v5352_v62 = vor.u32 %v6485_v63, %v5349_v12  ;;  %v6131_v10 = vld [vmem:[#allocation4 + $0x780] sm:$0xf] }
 0x15d   :  { %3737 = vmatpush.bf16.msrb.mxu1 %v5860_v18  ;;  %v6493_v18 = vld [vmem:[#allocation4 + $0x1a4] sm:$0xf] }
 0x15e   :  { %v2089_v20 = vmul.f32 0.01, %v1907_v54  ;;  %v5384_v34 = vor.u32 %v6493_v18, %v5381_v19  ;;  %v6477_v18 = vld [vmem:[#allocation4 + $0x124] sm:$0xf]  ;;  %v5317_v19 = vld [vmem:[#allocation4 + $0x130] sm:$0xf0] }
 0x15f   :  { %3724 = vmatpush.bf16.msrb.mxu0 %v5716_v37  ;;  %3751 = vmatpush.bf16.msrb.mxu2 %v5988_v0  ;;  %v6695_v37 = vld [vmem:[#allocation4 + $0x7ec] sm:$0xf0]  ;;  %v5525_v0 = vld [vmem:[#allocation4 + $0x2d0] sm:$0xf0]  ;;  %v5320_v35 = vor.u32 %v6477_v18, %v5317_v19  ;;  %v6585_v18 = vld [vmem:[#allocation4 + $0x484] sm:$0xf] }
 0x160   :  { %v2105_v26 = vmax.f32 %v1907_v54, %v2089_v20  ;;  %v6180_v31 = vor.u32 %v6695_v37, %v6179_v53  ;;  %v6517_v53 = vld [vmem:[#allocation4 + $0x264] sm:$0xf] }
 0x161   :  { %3738 = vmatpush.bf16.msrb.mxu1 %v5844_v44  ;;  %v5541_v44 = vld [vmem:[#allocation4 + $0x2f0] sm:$0xf0] }
 0x162   :  { %v7035_v32 = vpack.c.bf16 %v2105_v26, %v2097_v46  ;;  %v5544_v47 = vor.u32 %v6533_v56, %v5541_v44  ;;  %3761 = vmatpush.bf16.msrb.mxu3 %v6180_v31  ;;  %v5189_v46 = vld [vmem:[#allocation4 + $0x30] sm:$0xf0]  ;;  %v6115_v26 = vld [vmem:[#allocation4 + $0x760] sm:$0xf]  ;;  %v6441_v44 = vld [vmem:[#allocation4 + $0x4] sm:$0xf] }
 0x163   :  { %3725 = vmatpush.bf16.msrb.mxu0 %v5700_v38  ;;  %3752 = vmatpush.bf16.msrb.mxu2 %v5972_v55  ;;  %v6529_v38 = vld [vmem:[#allocation4 + $0x2c4] sm:$0xf]  ;;  %v5509_v55 = vld [vmem:[#allocation4 + $0x2b0] sm:$0xf0]  ;;  %v5192_v30 = vor.u32 %v6445_v14, %v5189_v46 }
 0x164   :  { %v5528_v28 = vor.u32 %v6529_v38, %v5525_v0  ;;  %v5512_v5 = vor.u32 %v6525_v50, %v5509_v55  ;;  %v5477_v56 = vld [vmem:[#allocation4 + $0x270] sm:$0xf0]  ;;  %v6473_v38 = vld [vmem:[#allocation4 + $0x104] sm:$0xf]  ;;  %v6099_v0 = vld [vmem:[#allocation4 + $0x740] sm:$0xf] }
 0x165   :  { %3739 = vmatpush.bf16.msrb.mxu1 %v5828_v6  ;;  %v5221_v6 = vld [vmem:[#allocation4 + $0x70] sm:$0xf0]  ;;  %v5480_v16 = vor.u32 %v6517_v53, %v5477_v56  ;;  %v6083_v55 = vld [vmem:[#allocation4 + $0x720] sm:$0xf]  ;;  %v6625_v53 = vld [vmem:[#allocation4 + $0x5c4] sm:$0xf] }
 0x166   :  { %3762 = vmatpush.bf16.msrb.mxu3 %v6164_v22  ;;  %v5301_v22 = vld [vmem:[#allocation4 + $0x110] sm:$0xf0]  ;;  %v6561_v56 = vld [vmem:[#allocation4 + $0x3c4] sm:$0xf] }
 0x167   :  { %3726 = vmatpush.bf16.msrb.mxu0 %v5684_v61  ;;  %3753 = vmatpush.bf16.msrb.mxu2 %v5956_v11  ;;  %v1918_v51 = vpop.f32.mrf.mxu0  ;;  %v6148_v61 = vor.u32 %v6687_v49, %v6147_v41  ;;  %v6132_v11 = vor.u32 %v6683_v3, %v6131_v10  ;;  %v5304_v41 = vor.u32 %v6473_v38, %v5301_v22  ;;  %v6557_v22 = vld [vmem:[#allocation4 + $0x3a4] sm:$0xf] }
 0x168   :  { %v1919_v57 = vadd.f32 %v1918_v51, %v329_v43  ;;  %v6593_v51 = vld [vmem:[#allocation4 + $0x4c4] sm:$0xf] }
 0x169   :  { %3740 = vmatpush.bf16.msrb.mxu1 %v5812_v59  ;;  %v1932_v52 = vpop.f32.mrf.mxu1  ;;  %v5205_v59 = vld [vmem:[#allocation4 + $0x50] sm:$0xf0] }
 0x16a   :  { %3727 = vmatmul.bf16.vlgmr.msrb.gmra.mxu0 %v7035_v32  ;;  %v1933_v1 = vadd.f32 %v1932_v52, %v1919_v57  ;;  %3763 = vmatpush.bf16.msrb.mxu3 %v6148_v61  ;;  %v5208_v54 = vor.u32 %v6449_v58, %v5205_v59  ;;  %v5781_v52 = vld [vmem:[#allocation4 + $0x4d0] sm:$0xf0]  ;;  %v6671_v57 = vld [vmem:[#allocation4 + $0x72c] sm:$0xf0] }
 0x16b   :  { %3775 = vmatpush.bf16.msra.mxu0 %v5288_v17  ;;  %3754 = vmatpush.bf16.msrb.mxu2 %v5940_v29  ;;  %v5224_v17 = vor.u32 %v6453_v45, %v5221_v6  ;;  %v6679_v29 = vld [vmem:[#allocation4 + $0x76c] sm:$0xf0]  ;;  %v6084_v58 = vor.u32 %v6671_v57, %v6083_v55  ;;  %v5445_v59 = vld [vmem:[#allocation4 + $0x230] sm:$0xf0]  ;;  %v6573_v55 = vld [vmem:[#allocation4 + $0x424] sm:$0xf] }
 0x16c   :  { %v6116_v31 = vor.u32 %v6679_v29, %v6115_v26  ;;  %v5749_v29 = vld [vmem:[#allocation4 + $0x490] sm:$0xf0] }
 0x16d   :  { %3789 = vmatpush.bf16.msra.mxu1 %v5416_v48  ;;  %v6481_v48 = vld [vmem:[#allocation4 + $0x144] sm:$0xf] }
 0x16e   :  { %v5336_v20 = vor.u32 %v6481_v48, %v5333_v2  ;;  %3764 = vmatpush.bf16.msrb.mxu3 %v6132_v11  ;;  %v5765_v48 = vld [vmem:[#allocation4 + $0x4b0] sm:$0xf0]  ;;  %v6667_v11 = vld [vmem:[#allocation4 + $0x70c] sm:$0xf0] }
 0x16f   :  { %3776 = vmatpush.bf16.msra.mxu0 %v5272_v13  ;;  %3803 = vmatpush.bf16.msra.mxu2 %v5544_v47  ;;  %v5493_v13 = vld [vmem:[#allocation4 + $0x290] sm:$0xf0]  ;;  %v1920_v25 = vpop.f32.mrf.mxu0 }
 0x170   :  { %v5496_v21 = vor.u32 %v6521_v4, %v5493_v13  ;;  %v1921_v37 = vadd.f32 %v1920_v25, %v329_v43  ;;  %v6513_v43 = vld [vmem:[#allocation4 + $0x244] sm:$0xf]  ;;  %v5669_v25 = vld [vmem:[#allocation4 + $0x3f0] sm:$0xf0] }
 0x171   :  { %3790 = vmatpush.bf16.msra.mxu1 %v5400_v7  ;;  %v1946_v8 = vpop.f32.mrf.mxu2  ;;  %v6629_v4 = vld [vmem:[#allocation4 + $0x5e4] sm:$0xf] }
 0x172   :  { %v1947_v7 = vadd.f32 %v1946_v8, %v1933_v1  ;;  %3765 = vmatpush.bf16.msrb.mxu3 %v6116_v31  ;;  %v6589_v1 = vld [vmem:[#allocation4 + $0x4a4] sm:$0xf]  ;;  %v5925_v8 = vld [vmem:[#allocation4 + $0x5f0] sm:$0xf0] }
 0x173   :  { %3777 = vmatpush.bf16.msra.mxu0 %v5256_v15  ;;  %3804 = vmatpush.bf16.msra.mxu2 %v5528_v28  ;;  %v1960_v23 = vpop.f32.mrf.mxu3  ;;  %v1934_v15 = vpop.f32.mrf.mxu1  ;;  %v5176_v28 = vor.u32 %v6441_v44, %v5173_v33  ;;  %v6505_v13 = vld [vmem:[#allocation4 + $0x204] sm:$0xf]  ;;  %v5653_v44 = vld [vmem:[#allocation4 + $0x3d0] sm:$0xf0]  ;;  %v5752_v33 = vor.u32 %v6585_v18, %v5749_v29  ;;  %v6472_v18 = vld [vmem:[#allocation4 + $0xf4] sm:$0xf0] }
 0x174   :  { %v1961_v47 = vadd.f32 %v1960_v23, %v1947_v7  ;;  %v1935_v27 = vadd.f32 %v1934_v15, %v1921_v37  ;;  %v5928_v7 = vor.u32 %v6629_v4, %v5925_v8  ;;  %v6565_v23 = vld [vmem:[#allocation4 + $0x3e4] sm:$0xf]  ;;  %v5909_v37 = vld [vmem:[#allocation4 + $0x5d0] sm:$0xf0] }
 0x175   :  { %3791 = vmatpush.bf16.msra.mxu1 %v5384_v34  ;;  %v6597_v34 = vld [vmem:[#allocation4 + $0x4e4] sm:$0xf]  ;;  %v5672_v15 = vor.u32 %v6565_v23, %v5669_v25  ;;  %v5589_v25 = vld [vmem:[#allocation4 + $0x350] sm:$0xf0] }
 0x176   :  { %v5800_v12 = vor.u32 %v6597_v34, %v5797_v24  ;;  %v2082_v50 = vmul.f32 0.01, %v1961_v47  ;;  %v5912_v34 = vor.u32 %v6625_v53, %v5909_v37  ;;  %v5893_v24 = vld [vmem:[#allocation4 + $0x5b0] sm:$0xf0]  ;;  %v6545_v23 = vld [vmem:[#allocation4 + $0x344] sm:$0xf] }
 0x177   :  { %3778 = vmatpush.bf16.msra.mxu0 %v5240_v42  ;;  %3805 = vmatpush.bf16.msra.mxu2 %v5512_v5  ;;  %v6675_v42 = vld [vmem:[#allocation4 + $0x74c] sm:$0xf0]  ;;  %v5592_v37 = vor.u32 %v6545_v23, %v5589_v25 }
 0x178   :  { %v6100_v6 = vor.u32 %v6675_v42, %v6099_v0  ;;  %v2098_v10 = vmax.f32 %v1961_v47, %v2082_v50  ;;  %v5733_v47 = vld [vmem:[#allocation4 + $0x470] sm:$0xf0]  ;;  %v6553_v50 = vld [vmem:[#allocation4 + $0x384] sm:$0xf] }
 0x179   :  { %3792 = vmatpush.bf16.msra.mxu1 %v5368_v36  ;;  %v1948_v45 = vpop.f32.mrf.mxu2  ;;  %v5461_v36 = vld [vmem:[#allocation4 + $0x250] sm:$0xf0] }
 0x17a   :  { %v1949_v63 = vadd.f32 %v1948_v45, %v1935_v27  ;;  %v5464_v49 = vor.u32 %v6513_v43, %v5461_v36  ;;  %3766 = vmatpush.bf16.msrb.mxu3 %v6100_v6  ;;  %v6621_v27 = vld [vmem:[#allocation4 + $0x5a4] sm:$0xf]  ;;  %v5637_v0 = vld [vmem:[#allocation4 + $0x3b0] sm:$0xf0] }
 0x17b   :  { %3779 = vmatpush.bf16.msra.mxu0 %v5224_v17  ;;  %3806 = vmatpush.bf16.msra.mxu2 %v5496_v21  ;;  %v1962_v61 = vpop.f32.mrf.mxu3  ;;  %v6509_v17 = vld [vmem:[#allocation4 + $0x224] sm:$0xf]  ;;  %v5768_v21 = vor.u32 %v6589_v1, %v5765_v48  ;;  %v5640_v43 = vor.u32 %v6557_v22, %v5637_v0  ;;  %v5896_v6 = vor.u32 %v6621_v27, %v5893_v24  ;;  %v5573_v27 = vld [vmem:[#allocation4 + $0x330] sm:$0xf0] }
 0x17c   :  { %v1963_v5 = vadd.f32 %v1962_v61, %v1949_v63  ;;  %v5448_v2 = vor.u32 %v6509_v17, %v5445_v59  ;;  %v6577_v36 = vld [vmem:[#allocation4 + $0x444] sm:$0xf]  ;;  %v5717_v63 = vld [vmem:[#allocation4 + $0x450] sm:$0xf0] }
 0x17d   :  { %3793 = vmatpush.bf16.msra.mxu1 %v5352_v62  ;;  %v5784_v62 = vor.u32 %v6593_v51, %v5781_v52  ;;  %v5621_v51 = vld [vmem:[#allocation4 + $0x390] sm:$0xf0]  ;;  %v5720_v52 = vor.u32 %v6577_v36, %v5717_v63  ;;  %v6601_v22 = vld [vmem:[#allocation4 + $0x504] sm:$0xf]  ;;  %v5259_v36 = vld [vmem:[#allocation4 + $0xa8] sm:$0xf] }
 0x17e   :  { %v2090_v3 = vmul.f32 0.01, %v1963_v5  ;;  %3767 = vmatpush.bf16.msrb.mxu3 %v6084_v58  ;;  %v5624_v57 = vor.u32 %v6553_v50, %v5621_v51  ;;  %v6613_v58 = vld [vmem:[#allocation4 + $0x564] sm:$0xf]  ;;  %v5861_v59 = vld [vmem:[#allocation4 + $0x570] sm:$0xf0] }
 0x17f   :  { %3780 = vmatpush.bf16.msra.mxu0 %v5208_v54  ;;  %3807 = vmatpush.bf16.msra.mxu2 %v5480_v16  ;;  %v6067_v54 = vld [vmem:[#allocation4 + $0x700] sm:$0xf]  ;;  %v5656_v16 = vor.u32 %v6561_v56, %v5653_v44  ;;  %v6605_v56 = vld [vmem:[#allocation4 + $0x524] sm:$0xf]  ;;  %v5829_v44 = vld [vmem:[#allocation4 + $0x530] sm:$0xf0] }
 0x180   :  { %v2106_v14 = vmax.f32 %v1963_v5, %v2090_v3  ;;  %v6068_v46 = vor.u32 %v6667_v11, %v6067_v54  ;;  %v5701_v5 = vld [vmem:[#allocation4 + $0x430] sm:$0xf0]  ;;  %v5864_v54 = vor.u32 %v6613_v58, %v5861_v59  ;;  %v6569_v11 = vld [vmem:[#allocation4 + $0x404] sm:$0xf]  ;;  %v6464_v63 = vld [vmem:[#allocation4 + $0xb4] sm:$0xf0] }
 0x181   :  { %3794 = vmatpush.bf16.msra.mxu1 %v5336_v20  ;;  %v5429_v20 = vld [vmem:[#allocation4 + $0x210] sm:$0xf0]  ;;  %v5704_v8 = vor.u32 %v6573_v55, %v5701_v5  ;;  %v6537_v51 = vld [vmem:[#allocation4 + $0x304] sm:$0xf] }
 0x182   :  { %v5432_v19 = vor.u32 %v6505_v13, %v5429_v20  ;;  %v7040_v26 = vpack.c.bf16 %v2106_v14, %v2098_v10  ;;  %3768 = vmatpush.bf16.msrb.mxu3 %v6068_v46  ;;  %v5605_v10 = vld [vmem:[#allocation4 + $0x370] sm:$0xf0]  ;;  %v6609_v46 = vld [vmem:[#allocation4 + $0x544] sm:$0xf] }
 0x183   :  { %3781 = vmatpush.bf16.msra.mxu0 %v5192_v30  ;;  %3808 = vmatpush.bf16.msra.mxu2 %v5464_v49  ;;  %v7046_v30 = vld [vmem:[%s7139_s2] sm:$0xff]  ;;  %v5685_v14 = vld [vmem:[#allocation4 + $0x410] sm:$0xf0] }
 0x184   :  { %3741 = vmatmul.bf16.vlgmr.msrb.gmra.mxu1 %v7040_v26  ;;  %v330_v31 = vperm.slane %v7046_v30, 6  ;;  %v5845_v20 = vld [vmem:[#allocation4 + $0x550] sm:$0xf0]  ;;  %v5688_v29 = vor.u32 %v6569_v11, %v5685_v14  ;;  %v6657_v59 = vld [vmem:[#allocation4 + $0x6c4] sm:$0xf] }
 0x185   :  { %3795 = vmatpush.bf16.msra.mxu1 %v5320_v35  ;;  %v6581_v35 = vld [vmem:[#allocation4 + $0x464] sm:$0xf]  ;;  %v5848_v53 = vor.u32 %v6609_v46, %v5845_v20  ;;  %v5813_v0 = vld [vmem:[#allocation4 + $0x510] sm:$0xf0]  ;;  %v5227_v14 = vld [vmem:[#allocation4 + $0x68] sm:$0xf] }
 0x186   :  { %3817 = vmatpush.bf16.msra.mxu3 %v5672_v15  ;;  %v6456_v46 = vld [vmem:[#allocation4 + $0x74] sm:$0xf0] }
 0x187   :  { %3782 = vmatpush.bf16.msra.mxu0 %v5176_v28  ;;  %3809 = vmatpush.bf16.msra.mxu2 %v5448_v2  ;;  %v1974_v38 = vpop.f32.mrf.mxu0  ;;  %v5736_v28 = vor.u32 %v6581_v35, %v5733_v47  ;;  %v6549_v2 = vld [vmem:[#allocation4 + $0x364] sm:$0xf]  ;;  %v6468_v35 = vld [vmem:[#allocation4 + $0xd4] sm:$0xf0] }
 0x188   :  { %v1975_v42 = vadd.f32 %v1974_v38, %v330_v31  ;;  %v5608_v13 = vor.u32 %v6549_v2, %v5605_v10  ;;  %v6541_v47 = vld [vmem:[#allocation4 + $0x324] sm:$0xf]  ;;  %v5832_v38 = vor.u32 %v6605_v56, %v5829_v44  ;;  %v6037_v2 = vld [vmem:[#allocation4 + $0x6d0] sm:$0xf0]  ;;  %v5403_v10 = vld [vmem:[#allocation4 + $0x1c8] sm:$0xf] }
 0x189   :  { %3796 = vmatpush.bf16.msra.mxu1 %v5304_v41  ;;  %v1988_v45 = vpop.f32.mrf.mxu1  ;;  %v5877_v41 = vld [vmem:[#allocation4 + $0x590] sm:$0xf0]  ;;  %v5371_v56 = vld [vmem:[#allocation4 + $0x188] sm:$0xf]  ;;  %v6492_v44 = vld [vmem:[#allocation4 + $0x194] sm:$0xf0] }
 0x18a   :  { %3783 = vmatmul.bf16.vlgmr.msra.gmra.mxu0 %v7021_v39  ;;  %3818 = vmatpush.bf16.msra.mxu3 %v5656_v16  ;;  %v1989_v49 = vadd.f32 %v1988_v45, %v1975_v42  ;;  %v5576_v42 = vor.u32 %v6541_v47, %v5573_v27  ;;  %v6645_v47 = vld [vmem:[#allocation4 + $0x664] sm:$0xf]  ;;  %v5195_v27 = vld [vmem:[#allocation4 + $0x28] sm:$0xf] }
 0x18b   :  { %3831 = vmatpush.bf16.msrb.mxu0 %v5800_v12  ;;  %3810 = vmatpush.bf16.msra.mxu2 %v5432_v19  ;;  %v6617_v12 = vld [vmem:[#allocation4 + $0x584] sm:$0xf] }
 0x18c   :  { %v5880_v61 = vor.u32 %v6617_v12, %v5877_v41  ;;  %v5419_v12 = vld [vmem:[#allocation4 + $0x1e8] sm:$0xf]  ;;  %v6504_v41 = vld [vmem:[#allocation4 + $0x1f4] sm:$0xf0] }
 0x18d   :  { %3845 = vmatpush.bf16.msrb.mxu1 %v5928_v7  ;;  %v5291_v7 = vld [vmem:[#allocation4 + $0xe8] sm:$0xf]  ;;  %v5420_v58 = vor.u32 %v6504_v41, %v5419_v12  ;;  %v6641_v12 = vld [vmem:[#allocation4 + $0x644] sm:$0xf] }
 0x18e   :  { %3819 = vmatpush.bf16.msra.mxu3 %v5640_v43  ;;  %v5179_v41 = vld [vmem:[#allocation4 + $0x8] sm:$0xf] }
 0x18f   :  { %3832 = vmatpush.bf16.msrb.mxu0 %v5784_v62  ;;  %v1976_v62 = vpop.f32.mrf.mxu0 }
 0x190   :  { %v1977_v48 = vadd.f32 %v1976_v62, %v330_v31  ;;  %v5292_v31 = vor.u32 %v6472_v18, %v5291_v7  ;;  %v5243_v62 = vld [vmem:[#allocation4 + $0x88] sm:$0xf]  ;;  %v6496_v18 = vld [vmem:[#allocation4 + $0x1b4] sm:$0xf0] }
 0x191   :  { %3846 = vmatpush.bf16.msrb.mxu1 %v5912_v34  ;;  %v2002_v17 = vpop.f32.mrf.mxu2  ;;  %v1990_v4 = vpop.f32.mrf.mxu1  ;;  %v5275_v34 = vld [vmem:[#allocation4 + $0xc8] sm:$0xf] }
 0x192   :  { %v2003_v1 = vadd.f32 %v2002_v17, %v1989_v49  ;;  %3820 = vmatpush.bf16.msra.mxu3 %v5624_v57  ;;  %v5276_v45 = vor.u32 %v6468_v35, %v5275_v34  ;;  %v5260_v17 = vor.u32 %v6464_v63, %v5259_v36  ;;  %v5387_v7 = vld [vmem:[#allocation4 + $0x1a8] sm:$0xf] }
 0x193   :  { %3833 = vmatpush.bf16.msrb.mxu0 %v5768_v21  ;;  %v2016_v3 = vpop.f32.mrf.mxu3  ;;  %v1991_v21 = vadd.f32 %v1990_v4, %v1977_v48  ;;  %v331_v4 = vperm.slane %v7046_v30, 7  ;;  %v5388_v25 = vor.u32 %v6496_v18, %v5387_v7  ;;  %v6633_v7 = vld [vmem:[#allocation4 + $0x604] sm:$0xf]  ;;  %v5941_v18 = vld [vmem:[#allocation4 + $0x610] sm:$0xf0] }
 0x194   :  { %v2017_v19 = vadd.f32 %v2016_v3, %v2003_v1  ;;  %3797 = vmatmul.bf16.vlgmr.msra.gmra.mxu1 %v7023_v60  ;;  %v6460_v1 = vld [vmem:[#allocation4 + $0x94] sm:$0xf0] }
 0x195   :  { %3847 = vmatpush.bf16.msrb.mxu1 %v5896_v6  ;;  %v6053_v6 = vld [vmem:[#allocation4 + $0x6f0] sm:$0xf0]  ;;  %v6500_v3 = vld [vmem:[#allocation4 + $0x1d4] sm:$0xf0] }
 0x196   :  { %3821 = vmatpush.bf16.msra.mxu3 %v5608_v13  ;;  %v2083_v16 = vmul.f32 0.01, %v2017_v19  ;;  %v5404_v11 = vor.u32 %v6500_v3, %v5403_v10  ;;  %v6653_v13 = vld [vmem:[#allocation4 + $0x6a4] sm:$0xf] }
 0x197   :  { %3834 = vmatpush.bf16.msrb.mxu0 %v5752_v33 }
 0x198   :  { %v2099_v49 = vmax.f32 %v2017_v19, %v2083_v16  ;;  %v5228_v19 = vor.u32 %v6456_v46, %v5227_v14  ;;  %v5372_v16 = vor.u32 %v6492_v44, %v5371_v56  ;;  %v6596_v14 = vld [vmem:[#allocation4 + $0x4d4] sm:$0xf0]  ;;  %v5771_v44 = vld [vmem:[#allocation4 + $0x4a8] sm:$0xf] }
 0x199   :  { %3848 = vmatpush.bf16.msrb.mxu1 %v5880_v61  ;;  %v2004_v15 = vpop.f32.mrf.mxu2  ;;  %v5816_v61 = vor.u32 %v6601_v22, %v5813_v0  ;;  %v5989_v0 = vld [vmem:[#allocation4 + $0x670] sm:$0xf0] }
 0x19a   :  { %v2005_v33 = vadd.f32 %v2004_v15, %v1991_v21  ;;  %3822 = vmatpush.bf16.msra.mxu3 %v5592_v37  ;;  %v6021_v21 = vld [vmem:[#allocation4 + $0x6b0] sm:$0xf0]  ;;  %v6452_v37 = vld [vmem:[#allocation4 + $0x54] sm:$0xf0]  ;;  %v5992_v36 = vor.u32 %v6645_v47, %v5989_v0 }
 0x19b   :  { %3835 = vmatpush.bf16.msrb.mxu0 %v5736_v28  ;;  %v2018_v24 = vpop.f32.mrf.mxu3  ;;  %v6661_v28 = vld [vmem:[#allocation4 + $0x6e4] sm:$0xf]  ;;  %v6024_v30 = vor.u32 %v6653_v13, %v6021_v21  ;;  %v5787_v13 = vld [vmem:[#allocation4 + $0x4c8] sm:$0xf]  ;;  %v6632_v47 = vld [vmem:[#allocation4 + $0x5f4] sm:$0xf0] }
 0x19c   :  { %v2019_v43 = vadd.f32 %v2018_v24, %v2005_v33  ;;  %v6056_v5 = vor.u32 %v6661_v28, %v6053_v6  ;;  %v6448_v24 = vld [vmem:[#allocation4 + $0x34] sm:$0xf0] }
 0x19d   :  { %3849 = vmatpush.bf16.msrb.mxu1 %v5864_v54  ;;  %v6040_v54 = vor.u32 %v6657_v59, %v6037_v2  ;;  %v5196_v28 = vor.u32 %v6448_v24, %v5195_v27  ;;  %v6637_v2 = vld [vmem:[#allocation4 + $0x624] sm:$0xf] }
 0x19e   :  { %v2091_v50 = vmul.f32 0.01, %v2019_v43  ;;  %3823 = vmatpush.bf16.msra.mxu3 %v5576_v42  ;;  %v5355_v42 = vld [vmem:[#allocation4 + $0x168] sm:$0xf] }
 0x19f   :  { %3836 = vmatpush.bf16.msrb.mxu0 %v5720_v52  ;;  %v5557_v52 = vld [vmem:[#allocation4 + $0x310] sm:$0xf0] }
 0x1a0   :  { %v5560_v55 = vor.u32 %v6537_v51, %v5557_v52  ;;  %v2107_v57 = vmax.f32 %v2019_v43, %v2091_v50  ;;  %v6488_v43 = vld [vmem:[#allocation4 + $0x174] sm:$0xf0]  ;;  %v5973_v51 = vld [vmem:[#allocation4 + $0x650] sm:$0xf0]  ;;  %v5339_v52 = vld [vmem:[#allocation4 + $0x148] sm:$0xf] }
 0x1a1   :  { %3850 = vmatpush.bf16.msrb.mxu1 %v5848_v53  ;;  %v5211_v53 = vld [vmem:[#allocation4 + $0x48] sm:$0xf]  ;;  %v5356_v63 = vor.u32 %v6488_v43, %v5355_v42  ;;  %v6689_v43 = vld [vmem:[#allocation4 + $0x7c4] sm:$0xf] }
 0x1a2   :  { %v7051_v48 = vpack.c.bf16 %v2107_v57, %v2099_v49  ;;  %3824 = vmatpush.bf16.msra.mxu3 %v5560_v55  ;;  %v5212_v33 = vor.u32 %v6452_v37, %v5211_v53  ;;  %v6444_v49 = vld [vmem:[#allocation4 + $0x14] sm:$0xf0]  ;;  %v5803_v57 = vld [vmem:[#allocation4 + $0x4e8] sm:$0xf]  ;;  %v6693_v53 = vld [vmem:[#allocation4 + $0x7e4] sm:$0xf] }
 0x1a3   :  { %3837 = vmatpush.bf16.msrb.mxu0 %v5704_v8  ;;  %v5244_v8 = vor.u32 %v6460_v1, %v5243_v62  ;;  %v5976_v62 = vor.u32 %v6641_v12, %v5973_v51  ;;  %v6181_v37 = vld [vmem:[#allocation4 + $0x7f0] sm:$0xf0]  ;;  %v5755_v12 = vld [vmem:[#allocation4 + $0x488] sm:$0xf]  ;;  %v6628_v51 = vld [vmem:[#allocation4 + $0x5d4] sm:$0xf0] }
 0x1a4   :  { %3755 = vmatmul.bf16.vlgmr.msrb.gmra.mxu2 %v7051_v48  ;;  %v6184_v0 = vor.u32 %v6693_v53, %v6181_v37 }
 0x1a5   :  { %3851 = vmatpush.bf16.msrb.mxu1 %v5832_v38  ;;  %3859 = vmatpush.bf16.msrb.mxu2 %v6056_v5 }
 0x1a7   :  { %3838 = vmatpush.bf16.msrb.mxu0 %v5688_v29  ;;  %v2030_v20 = vpop.f32.mrf.mxu0  ;;  %v6649_v29 = vld [vmem:[#allocation4 + $0x684] sm:$0xf] }
 0x1a8   :  { %v2031_v15 = vadd.f32 %v2030_v20, %v331_v4 }
 0x1a9   :  { %3852 = vmatpush.bf16.msrb.mxu1 %v5816_v61  ;;  %v2044_v23 = vpop.f32.mrf.mxu1  ;;  %3860 = vmatpush.bf16.msrb.mxu2 %v6040_v54  ;;  %v6484_v61 = vld [vmem:[#allocation4 + $0x154] sm:$0xf0]  ;;  %v5323_v54 = vld [vmem:[#allocation4 + $0x128] sm:$0xf] }
 0x1aa   :  { %3839 = vmatmul.bf16.vlgmr.msrb.gmra.mxu0 %v7035_v32  ;;  %v2045_v38 = vadd.f32 %v2044_v23, %v2031_v15  ;;  %v5340_v1 = vor.u32 %v6484_v61, %v5339_v52  ;;  %v5547_v15 = vld [vmem:[#allocation4 + $0x2e8] sm:$0xf] }
 0x1ab   :  { %3887 = vmatpush.bf16.msra.mxu0 %v5292_v31  ;;  %v6005_v31 = vld [vmem:[#allocation4 + $0x690] sm:$0xf0] }
 0x1ac   :  { %3853 = vmatmul.bf16.vlgmr.msrb.gmra.mxu1 %v7040_v26  ;;  %v6008_v35 = vor.u32 %v6649_v29, %v6005_v31  ;;  %v6476_v29 = vld [vmem:[#allocation4 + $0x114] sm:$0xf0] }
 0x1ad   :  { %3901 = vmatpush.bf16.msra.mxu1 %v5420_v58  ;;  %3861 = vmatpush.bf16.msrb.mxu2 %v6024_v30  ;;  %v5180_v58 = vor.u32 %v6444_v49, %v5179_v41  ;;  %v6536_v31 = vld [vmem:[#allocation4 + $0x2f4] sm:$0xf0] }
 0x1ae   :  { %v6588_v41 = vld [vmem:[#allocation4 + $0x494] sm:$0xf0] }
 0x1af   :  { %3888 = vmatpush.bf16.msra.mxu0 %v5276_v45  ;;  %v2032_v22 = vpop.f32.mrf.mxu0 }
 0x1b0   :  { %v2033_v45 = vadd.f32 %v2032_v22, %v331_v4  ;;  %v7061_v22 = vld [vmem:[%s7141_s4] sm:$0xf] }
 0x1b1   :  { %3902 = vmatpush.bf16.msra.mxu1 %v5404_v11  ;;  %v2058_v34 = vpop.f32.mrf.mxu2  ;;  %3862 = vmatpush.bf16.msrb.mxu2 %v6008_v35  ;;  %v2046_v55 = vpop.f32.mrf.mxu1  ;;  %v6480_v11 = vld [vmem:[#allocation4 + $0x134] sm:$0xf0]  ;;  %v2375_v49 = vperm.slane %v7061_v22, 0 }
 0x1b2   :  { %v2059_v50 = vadd.f32 %v2058_v34, %v2045_v38  ;;  %v2047_v5 = vadd.f32 %v2046_v55, %v2033_v45  ;;  %v5324_v21 = vor.u32 %v6480_v11, %v5323_v54  ;;  %v5944_v34 = vor.u32 %v6633_v7, %v5941_v18  ;;  %v5531_v45 = vld [vmem:[#allocation4 + $0x2c8] sm:$0xf]  ;;  %v6133_v18 = vld [vmem:[#allocation4 + $0x790] sm:$0xf0] }
 0x1b3   :  { %3889 = vmatpush.bf16.msra.mxu0 %v5260_v17  ;;  %v2072_v6 = vpop.f32.mrf.mxu3  ;;  %v6600_v17 = vld [vmem:[#allocation4 + $0x4f4] sm:$0xf0]  ;;  %v5548_v38 = vor.u32 %v6536_v31, %v5547_v15  ;;  %v5756_v55 = vor.u32 %v6588_v41, %v5755_v12  ;;  %v6677_v31 = vld [vmem:[#allocation4 + $0x764] sm:$0xf]  ;;  %v6101_v12 = vld [vmem:[#allocation4 + $0x750] sm:$0xf0] }
 0x1b4   :  { %3811 = vmatmul.bf16.vlgmr.msra.gmra.mxu2 %v7026_v40  ;;  %v2073_v10 = vadd.f32 %v2072_v6, %v2059_v50  ;;  %v5804_v4 = vor.u32 %v6600_v17, %v5803_v57  ;;  %v5915_v50 = vld [vmem:[#allocation4 + $0x5c8] sm:$0xf]  ;;  %v6685_v57 = vld [vmem:[#allocation4 + $0x7a4] sm:$0xf] }
 0x1b5   :  { %3903 = vmatpush.bf16.msra.mxu1 %v5388_v25  ;;  %3863 = vmatpush.bf16.msrb.mxu2 %v5992_v36  ;;  %v5788_v25 = vor.u32 %v6596_v14, %v5787_v13  ;;  %v5515_v17 = vld [vmem:[#allocation4 + $0x2a8] sm:$0xf] }
 0x1b6   :  { %v2084_v23 = vmul.f32 0.01, %v2073_v10  ;;  %v5467_v41 = vld [vmem:[#allocation4 + $0x248] sm:$0xf] }
 0x1b7   :  { %3890 = vmatpush.bf16.msra.mxu0 %v5244_v8  ;;  %v5957_v8 = vld [vmem:[#allocation4 + $0x630] sm:$0xf0] }
 0x1b8   :  { %v5960_v20 = vor.u32 %v6637_v2, %v5957_v8  ;;  %v2100_v27 = vmax.f32 %v2073_v10, %v2084_v23  ;;  %v5739_v2 = vld [vmem:[#allocation4 + $0x468] sm:$0xf]  ;;  %v6584_v10 = vld [vmem:[#allocation4 + $0x474] sm:$0xf0] }
 0x1b9   :  { %3904 = vmatpush.bf16.msra.mxu1 %v5372_v16  ;;  %v2060_v59 = vpop.f32.mrf.mxu2  ;;  %3864 = vmatpush.bf16.msrb.mxu2 %v5976_v62  ;;  %v5931_v16 = vld [vmem:[#allocation4 + $0x5e8] sm:$0xf]  ;;  %v5916_v62 = vor.u32 %v6628_v51, %v5915_v50  ;;  %v6624_v8 = vld [vmem:[#allocation4 + $0x5b4] sm:$0xf0]  ;;  %v5740_v14 = vor.u32 %v6584_v10, %v5739_v2 }
 0x1ba   :  { %v2061_v3 = vadd.f32 %v2060_v59, %v2047_v5  ;;  %v5932_v36 = vor.u32 %v6632_v47, %v5931_v16  ;;  %v6528_v5 = vld [vmem:[#allocation4 + $0x2b4] sm:$0xf0]  ;;  %v6117_v16 = vld [vmem:[#allocation4 + $0x770] sm:$0xf0]  ;;  %v5707_v47 = vld [vmem:[#allocation4 + $0x428] sm:$0xf] }
 0x1bb   :  { %3891 = vmatpush.bf16.msra.mxu0 %v5228_v19  ;;  %v2074_v46 = vpop.f32.mrf.mxu3  ;;  %v5307_v19 = vld [vmem:[#allocation4 + $0x108] sm:$0xf]  ;;  %v5516_v54 = vor.u32 %v6528_v5, %v5515_v17  ;;  %v6580_v23 = vld [vmem:[#allocation4 + $0x454] sm:$0xf0]  ;;  %v6470_v5 = vld [vmem:[#allocation4 + $0xec] sm:$0xf] }
 0x1bc   :  { %v2075_v30 = vadd.f32 %v2074_v46, %v2061_v3  ;;  %v5308_v35 = vor.u32 %v6476_v29, %v5307_v19  ;;  %v6681_v46 = vld [vmem:[#allocation4 + $0x784] sm:$0xf]  ;;  %v5723_v19 = vld [vmem:[#allocation4 + $0x448] sm:$0xf]  ;;  %v6516_v50 = vld [vmem:[#allocation4 + $0x254] sm:$0xf0] }
 0x1bd   :  { %3905 = vmatpush.bf16.msra.mxu1 %v5356_v63  ;;  %3865 = vmatpush.bf16.msrb.mxu2 %v5960_v20  ;;  %v6165_v63 = vld [vmem:[#allocation4 + $0x7d0] sm:$0xf0]  ;;  %v5499_v20 = vld [vmem:[#allocation4 + $0x288] sm:$0xf]  ;;  %v6136_v37 = vor.u32 %v6681_v46, %v6133_v18  ;;  %v5724_v15 = vor.u32 %v6580_v23, %v5723_v19  ;;  %v6612_v17 = vld [vmem:[#allocation4 + $0x554] sm:$0xf0] }
 0x1be   :  { %v2092_v56 = vmul.f32 0.01, %v2075_v30  ;;  %v6168_v61 = vor.u32 %v6689_v43, %v6165_v63  ;;  %v5451_v2 = vld [vmem:[#allocation4 + $0x228] sm:$0xf]  ;;  %v6512_v10 = vld [vmem:[#allocation4 + $0x234] sm:$0xf0] }
 0x1bf   :  { %3892 = vmatpush.bf16.msra.mxu0 %v5212_v33  ;;  %v6592_v33 = vld [vmem:[#allocation4 + $0x4b4] sm:$0xf0]  ;;  %v5277_v46 = vld [vmem:[#allocation4 + $0xd8] sm:$0xf0]  ;;  %v5435_v19 = vld [vmem:[#allocation4 + $0x208] sm:$0xf] }
 0x1c0   :  { %v2108_v24 = vmax.f32 %v2075_v30, %v2092_v56  ;;  %v5772_v42 = vor.u32 %v6592_v33, %v5771_v44  ;;  %v5883_v30 = vld [vmem:[#allocation4 + $0x588] sm:$0xf]  ;;  %v6520_v44 = vld [vmem:[#allocation4 + $0x274] sm:$0xf0] }
 0x1c1   :  { %3906 = vmatpush.bf16.msra.mxu1 %v5340_v1  ;;  %3866 = vmatpush.bf16.msrb.mxu2 %v5944_v34  ;;  %v6149_v1 = vld [vmem:[#allocation4 + $0x7b0] sm:$0xf0]  ;;  %v5483_v56 = vld [vmem:[#allocation4 + $0x268] sm:$0xf]  ;;  %v6508_v23 = vld [vmem:[#allocation4 + $0x214] sm:$0xf0] }
 0x1c2   :  { %v7063_v6 = vpack.c.bf16 %v2108_v24, %v2100_v27  ;;  %v6152_v13 = vor.u32 %v6685_v57, %v6149_v1  ;;  %v6576_v27 = vld [vmem:[#allocation4 + $0x434] sm:$0xf0]  ;;  %v5484_v43 = vor.u32 %v6520_v44, %v5483_v56  ;;  %v6462_v44 = vld [vmem:[#allocation4 + $0xac] sm:$0xf] }
 0x1c3   :  { %3893 = vmatpush.bf16.msra.mxu0 %v5196_v28  ;;  %v6532_v28 = vld [vmem:[#allocation4 + $0x2d4] sm:$0xf0]  ;;  %v5708_v63 = vor.u32 %v6576_v27, %v5707_v47 }
 0x1c4   :  { %3769 = vmatmul.bf16.vlgmr.msrb.gmra.mxu3 %v7063_v6  ;;  %v5532_v52 = vor.u32 %v6532_v28, %v5531_v45  ;;  %3867 = vmatmul.bf16.vlgmr.msrb.gmra.mxu2 %v7051_v48  ;;  %v6673_v45 = vld [vmem:[#allocation4 + $0x744] sm:$0xf]  ;;  %v6568_v56 = vld [vmem:[#allocation4 + $0x3f4] sm:$0xf0] }
 0x1c5   :  { %3907 = vmatpush.bf16.msra.mxu1 %v5324_v21  ;;  %3915 = vmatpush.bf16.msra.mxu2 %v5548_v38  ;;  %v6524_v21 = vld [vmem:[#allocation4 + $0x294] sm:$0xf0]  ;;  %v5867_v38 = vld [vmem:[#allocation4 + $0x568] sm:$0xf] }
 0x1c6   :  { %3873 = vmatpush.bf16.msrb.mxu3 %v6184_v0  ;;  %v5500_v29 = vor.u32 %v6524_v21, %v5499_v20  ;;  %v6616_v0 = vld [vmem:[#allocation4 + $0x574] sm:$0xf0]  ;;  %v5452_v20 = vor.u32 %v6512_v10, %v5451_v2  ;;  %v6665_v21 = vld [vmem:[#allocation4 + $0x704] sm:$0xf]  ;;  %v6494_v2 = vld [vmem:[#allocation4 + $0x1ac] sm:$0xf] }
 0x1c7   :  { %3894 = vmatpush.bf16.msra.mxu0 %v5180_v58  ;;  %v3672_v58 = vpop.f32.mrf.mxu0  ;;  %v5389_v10 = vld [vmem:[#allocation4 + $0x1b8] sm:$0xf0] }
 0x1c8   :  { %v3673_v3 = vadd.f32 %v3672_v58, %v2375_v49  ;;  %v5293_v58 = vld [vmem:[#allocation4 + $0xf8] sm:$0xf0] }
 0x1c9   :  { %3908 = vmatpush.bf16.msra.mxu1 %v5308_v35  ;;  %v3686_v59 = vpop.f32.mrf.mxu1  ;;  %3916 = vmatpush.bf16.msra.mxu2 %v5532_v52  ;;  %v5868_v52 = vor.u32 %v6616_v0, %v5867_v38  ;;  %v6043_v0 = vld [vmem:[#allocation4 + $0x6c8] sm:$0xf] }
 0x1ca   :  { %3895 = vmatmul.bf16.vlgmr.msra.gmra.mxu0 %v7021_v39  ;;  %v3687_v11 = vadd.f32 %v3686_v59, %v3673_v3  ;;  %3874 = vmatpush.bf16.msrb.mxu3 %v6168_v61  ;;  %v5691_v61 = vld [vmem:[#allocation4 + $0x408] sm:$0xf]  ;;  %v5468_v59 = vor.u32 %v6516_v50, %v5467_v41  ;;  %v5245_v41 = vld [vmem:[#allocation4 + $0x98] sm:$0xf0]  ;;  %v6498_v50 = vld [vmem:[#allocation4 + $0x1cc] sm:$0xf] }
 0x1cb   :  { %3943 = vmatpush.bf16.msrb.mxu0 %v5804_v4  ;;  %v5899_v4 = vld [vmem:[#allocation4 + $0x5a8] sm:$0xf] }
 0x1cc   :  { %3909 = vmatmul.bf16.vlgmr.msra.gmra.mxu1 %v7023_v60  ;;  %v5900_v7 = vor.u32 %v6624_v8, %v5899_v4  ;;  %v5296_v4 = vor.u32 %v6470_v5, %v5293_v58  ;;  %v6669_v8 = vld [vmem:[#allocation4 + $0x724] sm:$0xf]  ;;  %v5643_v58 = vld [vmem:[#allocation4 + $0x3a8] sm:$0xf] }
 0x1cd   :  { %3957 = vmatpush.bf16.msrb.mxu1 %v5932_v36  ;;  %3917 = vmatpush.bf16.msra.mxu2 %v5516_v54  ;;  %v6120_v36 = vor.u32 %v6677_v31, %v6117_v16  ;;  %v6085_v54 = vld [vmem:[#allocation4 + $0x730] sm:$0xf0]  ;;  %v5675_v31 = vld [vmem:[#allocation4 + $0x3e8] sm:$0xf]  ;;  %v5421_v16 = vld [vmem:[#allocation4 + $0x1f8] sm:$0xf0] }
 0x1ce   :  { %3875 = vmatpush.bf16.msrb.mxu3 %v6152_v13  ;;  %v6608_v13 = vld [vmem:[#allocation4 + $0x534] sm:$0xf0]  ;;  %v6088_v18 = vor.u32 %v6669_v8, %v6085_v54  ;;  %v5676_v38 = vor.u32 %v6568_v56, %v5675_v31  ;;  %v6011_v8 = vld [vmem:[#allocation4 + $0x688] sm:$0xf] }
 0x1cf   :  { %3944 = vmatpush.bf16.msrb.mxu0 %v5788_v25  ;;  %v6620_v25 = vld [vmem:[#allocation4 + $0x594] sm:$0xf0]  ;;  %v3674_v34 = vpop.f32.mrf.mxu0  ;;  %v5611_v56 = vld [vmem:[#allocation4 + $0x368] sm:$0xf] }
 0x1d0   :  { %v5884_v35 = vor.u32 %v6620_v25, %v5883_v30  ;;  %v3675_v24 = vadd.f32 %v3674_v34, %v2375_v49  ;;  %v6572_v49 = vld [vmem:[#allocation4 + $0x414] sm:$0xf0]  ;;  %v5819_v30 = vld [vmem:[#allocation4 + $0x508] sm:$0xf]  ;;  %v5261_v34 = vld [vmem:[#allocation4 + $0xb8] sm:$0xf0] }
 0x1d1   :  { %3958 = vmatpush.bf16.msrb.mxu1 %v5916_v62  ;;  %v3700_v53 = vpop.f32.mrf.mxu2  ;;  %3918 = vmatpush.bf16.msra.mxu2 %v5500_v29  ;;  %v6104_v62 = vor.u32 %v6673_v45, %v6101_v12  ;;  %v5692_v1 = vor.u32 %v6572_v49, %v5691_v61  ;;  %v6458_v12 = vld [vmem:[#allocation4 + $0x8c] sm:$0xf]  ;;  %v6027_v49 = vld [vmem:[#allocation4 + $0x6a8] sm:$0xf]  ;;  %v6652_v54 = vld [vmem:[#allocation4 + $0x694] sm:$0xf0] }
 0x1d2   :  { %v3701_v33 = vadd.f32 %v3700_v53, %v3687_v11  ;;  %3876 = vmatpush.bf16.msrb.mxu3 %v6136_v37  ;;  %v5835_v11 = vld [vmem:[#allocation4 + $0x528] sm:$0xf]  ;;  %v6604_v53 = vld [vmem:[#allocation4 + $0x514] sm:$0xf0] }
 0x1d3   :  { %3945 = vmatpush.bf16.msrb.mxu0 %v5772_v42  ;;  %v3688_v42 = vpop.f32.mrf.mxu1  ;;  %v3714_v51 = vpop.f32.mrf.mxu3  ;;  %v5836_v25 = vor.u32 %v6608_v13, %v5835_v11  ;;  %v6059_v37 = vld [vmem:[#allocation4 + $0x6e8] sm:$0xf]  ;;  %v5392_v13 = vor.u32 %v6494_v2, %v5389_v10  ;;  %v6544_v2 = vld [vmem:[#allocation4 + $0x334] sm:$0xf0] }
 0x1d4   :  { %v7069_v28 = vadd.f32 %v3688_v42, %v3675_v24  ;;  %v7071_v57 = vadd.f32 %v3714_v51, %v3701_v33  ;;  %3825 = vmatmul.bf16.vlgmr.msra.gmra.mxu3 %v7031_v9  ;;  %v5436_v33 = vor.u32 %v6508_v23, %v5435_v19  ;;  %v5820_v24 = vor.u32 %v6604_v53, %v5819_v30  ;;  %v6660_v42 = vld [vmem:[#allocation4 + $0x6d4] sm:$0xf0]  ;;  %v5405_v51 = vld [vmem:[#allocation4 + $0x1d8] sm:$0xf0]  ;;  %v5995_v53 = vld [vmem:[#allocation4 + $0x668] sm:$0xf] }
 0x1d5   :  { %3959 = vmatpush.bf16.msrb.mxu1 %v5900_v7  ;;  %3919 = vmatpush.bf16.msra.mxu2 %v5484_v43  ;;  %v6069_v7 = vld [vmem:[#allocation4 + $0x710] sm:$0xf0]  ;;  %v5264_v43 = vor.u32 %v6462_v44, %v5261_v34  ;;  %v5408_v5 = vor.u32 %v6498_v50, %v5405_v51  ;;  %v5373_v19 = vld [vmem:[#allocation4 + $0x198] sm:$0xf0]  ;;  %v6012_v30 = vor.u32 %v6652_v54, %v6011_v8  ;;  %v6552_v44 = vld [vmem:[#allocation4 + $0x374] sm:$0xf0] }
 0x1d6   :  { %3877 = vmatpush.bf16.msrb.mxu3 %v6120_v36  ;;  %v6072_v47 = vor.u32 %v6665_v21, %v6069_v7  ;;  %v5659_v36 = vld [vmem:[#allocation4 + $0x3c8] sm:$0xf]  ;;  %v5213_v7 = vld [vmem:[#allocation4 + $0x58] sm:$0xf0]  ;;  %v6482_v51 = vld [vmem:[#allocation4 + $0x14c] sm:$0xf] }
 0x1d7   :  { %3946 = vmatpush.bf16.msrb.mxu0 %v5756_v55  ;;  %v5851_v55 = vld [vmem:[#allocation4 + $0x548] sm:$0xf]  ;;  %v5181_v50 = vld [vmem:[#allocation4 + $0x18] sm:$0xf0]  ;;  %v6594_v8 = vld [vmem:[#allocation4 + $0x4cc] sm:$0xf] }
 0x1d8   :  { %v5852_v3 = vor.u32 %v6612_v17, %v5851_v55  ;;  %v6656_v55 = vld [vmem:[#allocation4 + $0x6b4] sm:$0xf0]  ;;  %v5248_v17 = vor.u32 %v6458_v12, %v5245_v41  ;;  %v6442_v12 = vld [vmem:[#allocation4 + $0xc] sm:$0xf] }
 0x1d9   :  { %3960 = vmatpush.bf16.msrb.mxu1 %v5884_v35  ;;  %3920 = vmatpush.bf16.msra.mxu2 %v5468_v59  ;;  %v6502_v35 = vld [vmem:[#allocation4 + $0x1ec] sm:$0xf]  ;;  %v6560_v59 = vld [vmem:[#allocation4 + $0x3b4] sm:$0xf0] }
 0x1da   :  { %3878 = vmatpush.bf16.msrb.mxu3 %v6104_v62  ;;  %v5424_v45 = vor.u32 %v6502_v35, %v5421_v16  ;;  %v6454_v62 = vld [vmem:[#allocation4 + $0x6c] sm:$0xf]  ;;  %v5197_v35 = vld [vmem:[#allocation4 + $0x38] sm:$0xf0] }
 0x1db   :  { %3947 = vmatpush.bf16.msrb.mxu0 %v5740_v14  ;;  %v6466_v14 = vld [vmem:[#allocation4 + $0xcc] sm:$0xf]  ;;  %v3716_v34 = vpop.f32.mrf.mxu3 }
 0x1dc   :  { %v5280_v29 = vor.u32 %v6466_v14, %v5277_v46  ;;  %v5627_v14 = vld [vmem:[#allocation4 + $0x388] sm:$0xf]  ;;  %v6556_v46 = vld [vmem:[#allocation4 + $0x394] sm:$0xf0]  ;;  %v6486_v16 = vld [vmem:[#allocation4 + $0x16c] sm:$0xf] }
 0x1dd   :  { %3961 = vmatpush.bf16.msrb.mxu1 %v5868_v52  ;;  %3921 = vmatpush.bf16.msra.mxu2 %v5452_v20  ;;  %v6044_v52 = vor.u32 %v6660_v42, %v6043_v0  ;;  %v6450_v20 = vld [vmem:[#allocation4 + $0x4c] sm:$0xf]  ;;  %v6644_v0 = vld [vmem:[#allocation4 + $0x654] sm:$0xf0] }
 0x1de   :  { %3879 = vmatpush.bf16.msrb.mxu3 %v6088_v18  ;;  %v6490_v18 = vld [vmem:[#allocation4 + $0x18c] sm:$0xf] }
 0x1df   :  { %3948 = vmatpush.bf16.msrb.mxu0 %v5724_v15  ;;  %v6664_v15 = vld [vmem:[#allocation4 + $0x6f4] sm:$0xf0]  ;;  %v5376_v31 = vor.u32 %v6490_v18, %v5373_v19  ;;  %v5309_v19 = vld [vmem:[#allocation4 + $0x118] sm:$0xf0] }
 0x1e0   :  { %v6060_v27 = vor.u32 %v6664_v15, %v6059_v37  ;;  %v6648_v37 = vld [vmem:[#allocation4 + $0x674] sm:$0xf0]  ;;  %v5216_v15 = vor.u32 %v6450_v20, %v5213_v7  ;;  %v5947_v20 = vld [vmem:[#allocation4 + $0x608] sm:$0xf]  ;;  %v6474_v7 = vld [vmem:[#allocation4 + $0x10c] sm:$0xf] }
 0x1e1   :  { %3962 = vmatpush.bf16.msrb.mxu1 %v5852_v3  ;;  %3922 = vmatpush.bf16.msra.mxu2 %v5436_v33  ;;  %v6028_v3 = vor.u32 %v6656_v55, %v6027_v49  ;;  %v6446_v33 = vld [vmem:[#allocation4 + $0x2c] sm:$0xf]  ;;  %v5805_v55 = vld [vmem:[#allocation4 + $0x4f8] sm:$0xf0] }
 0x1e2   :  { %3880 = vmatpush.bf16.msrb.mxu3 %v6072_v47  ;;  %v5357_v47 = vld [vmem:[#allocation4 + $0x178] sm:$0xf0]  ;;  %v6598_v49 = vld [vmem:[#allocation4 + $0x4ec] sm:$0xf] }
 0x1e3   :  { %3949 = vmatpush.bf16.msrb.mxu0 %v5708_v63  ;;  %v6564_v63 = vld [vmem:[#allocation4 + $0x3d4] sm:$0xf0]  ;;  %v5808_v10 = vor.u32 %v6598_v49, %v5805_v55  ;;  %v6582_v55 = vld [vmem:[#allocation4 + $0x46c] sm:$0xf] }
 0x1e4   :  { %v5660_v61 = vor.u32 %v6564_v63, %v5659_v36  ;;  %3923 = vmatmul.bf16.vlgmr.msra.gmra.mxu2 %v7026_v40  ;;  %v5595_v36 = vld [vmem:[#allocation4 + $0x348] sm:$0xf]  ;;  %v6548_v63 = vld [vmem:[#allocation4 + $0x354] sm:$0xf0] }
 0x1e5   :  { %3963 = vmatpush.bf16.msrb.mxu1 %v5836_v25  ;;  %3971 = vmatpush.bf16.msrb.mxu2 %v6060_v27  ;;  %v3702_v25 = vpop.f32.mrf.mxu2  ;;  %v5996_v27 = vor.u32 %v6648_v37, %v5995_v53  ;;  %v6187_v53 = vld [vmem:[#allocation4 + $0x7e8] sm:$0xf]  ;;  %v6696_v37 = vld [vmem:[#allocation4 + $0x7f4] sm:$0xf0] }
 0x1e6   :  { %3929 = vmatpush.bf16.msra.mxu3 %v5676_v38  ;;  %v5979_v38 = vld [vmem:[#allocation4 + $0x648] sm:$0xf]  ;;  %v6688_v49 = vld [vmem:[#allocation4 + $0x7b4] sm:$0xf0] }
 0x1e7   :  { %3950 = vmatpush.bf16.msrb.mxu0 %v5692_v1  ;;  %3881 = vmatmul.bf16.vlgmr.msrb.gmra.mxu3 %v7063_v6  ;;  %v5229_v1 = vld [vmem:[#allocation4 + $0x78] sm:$0xf0]  ;;  %v3728_v21 = vpop.f32.mrf.mxu0 }
 0x1e8   :  { %v5232_v11 = vor.u32 %v6454_v62, %v5229_v1  ;;  %v7079_v23 = vadd.f32 %v3728_v21, %v7071_v57  ;;  %v3703_v57 = vadd.f32 %v3702_v25, %v7069_v28  ;;  %v5579_v1 = vld [vmem:[#allocation4 + $0x328] sm:$0xf]  ;;  %v6636_v21 = vld [vmem:[#allocation4 + $0x614] sm:$0xf0]  ;;  %v5549_v25 = vld [vmem:[#allocation4 + $0x2f8] sm:$0xf0] }
 0x1e9   :  { %3964 = vmatpush.bf16.msrb.mxu1 %v5820_v24  ;;  %3972 = vmatpush.bf16.msrb.mxu2 %v6044_v52  ;;  %v5612_v24 = vor.u32 %v6552_v44, %v5611_v56  ;;  %v5341_v52 = vld [vmem:[#allocation4 + $0x158] sm:$0xf0]  ;;  %v6630_v44 = vld [vmem:[#allocation4 + $0x5ec] sm:$0xf] }
 0x1ea   :  { %3951 = vmatmul.bf16.vlgmr.msrb.gmra.mxu0 %v7035_v32  ;;  %3930 = vmatpush.bf16.msra.mxu3 %v5660_v61  ;;  %v3717_v42 = vadd.f32 %v3716_v34, %v3703_v57  ;;  %v5980_v61 = vor.u32 %v6644_v0, %v5979_v38  ;;  %v5344_v62 = vor.u32 %v6482_v51, %v5341_v52  ;;  %v5773_v56 = vld [vmem:[#allocation4 + $0x4b8] sm:$0xf0]  ;;  %v6530_v57 = vld [vmem:[#allocation4 + $0x2cc] sm:$0xf]  ;;  %v6171_v0 = vld [vmem:[#allocation4 + $0x7c8] sm:$0xf] }
 0x1eb   :  { %3999 = vmatpush.bf16.msra.mxu0 %v5296_v4  ;;  %v5644_v4 = vor.u32 %v6560_v59, %v5643_v58  ;;  %v6640_v58 = vld [vmem:[#allocation4 + $0x634] sm:$0xf0]  ;;  %v5184_v59 = vor.u32 %v6442_v12, %v5181_v50  ;;  %v5517_v50 = vld [vmem:[#allocation4 + $0x2b8] sm:$0xf0] }
 0x1ec   :  { %3965 = vmatmul.bf16.vlgmr.msrb.gmra.mxu1 %v7040_v26 }
 0x1ed   :  { %4013 = vmatpush.bf16.msra.mxu1 %v5424_v45  ;;  %3973 = vmatpush.bf16.msrb.mxu2 %v6028_v3  ;;  %v5360_v45 = vor.u32 %v6486_v16, %v5357_v47  ;;  %v6478_v3 = vld [vmem:[#allocation4 + $0x12c] sm:$0xf]  ;;  %v5312_v16 = vor.u32 %v6474_v7, %v5309_v19  ;;  %v6188_v47 = vor.u32 %v6696_v37, %v6187_v53  ;;  %v5709_v37 = vld [vmem:[#allocation4 + $0x438] sm:$0xf0] }
 0x1ee   :  { %3931 = vmatpush.bf16.msra.mxu3 %v5644_v4  ;;  %v5325_v4 = vld [vmem:[#allocation4 + $0x138] sm:$0xf0]  ;;  %v6518_v7 = vld [vmem:[#allocation4 + $0x26c] sm:$0xf] }
 0x1ef   :  { %4000 = vmatpush.bf16.msra.mxu0 %v5280_v29  ;;  %v5628_v29 = vor.u32 %v6556_v46, %v5627_v14  ;;  %v3730_v41 = vpop.f32.mrf.mxu0  ;;  %v6540_v14 = vld [vmem:[#allocation4 + $0x314] sm:$0xf0]  ;;  %v5580_v46 = vor.u32 %v6544_v2, %v5579_v1  ;;  %v5328_v18 = vor.u32 %v6478_v3, %v5325_v4  ;;  %v6522_v1 = vld [vmem:[#allocation4 + $0x28c] sm:$0xf]  ;;  %v5501_v2 = vld [vmem:[#allocation4 + $0x298] sm:$0xf0] }
 0x1f0   :  { %v7082_v28 = vadd.f32 %v3730_v41, %v3717_v42  ;;  %v6692_v42 = vld [vmem:[#allocation4 + $0x7d4] sm:$0xf0]  ;;  %v6526_v41 = vld [vmem:[#allocation4 + $0x2ac] sm:$0xf]  ;;  %v6139_v4 = vld [vmem:[#allocation4 + $0x788] sm:$0xf] }
 0x1f1   :  { %4014 = vmatpush.bf16.msra.mxu1 %v5408_v5  ;;  %3974 = vmatpush.bf16.msrb.mxu2 %v6012_v30  ;;  %v5963_v5 = vld [vmem:[#allocation4 + $0x628] sm:$0xf]  ;;  %v6534_v30 = vld [vmem:[#allocation4 + $0x2ec] sm:$0xf]  ;;  %v6172_v12 = vor.u32 %v6692_v42, %v6171_v0  ;;  %v5853_v0 = vld [vmem:[#allocation4 + $0x558] sm:$0xf0] }
 0x1f2   :  { %3932 = vmatpush.bf16.msra.mxu3 %v5628_v29  ;;  %v5964_v54 = vor.u32 %v6640_v58, %v5963_v5  ;;  %v6622_v5 = vld [vmem:[#allocation4 + $0x5ac] sm:$0xf]  ;;  %v5901_v58 = vld [vmem:[#allocation4 + $0x5b8] sm:$0xf0] }
 0x1f3   :  { %4001 = vmatpush.bf16.msra.mxu0 %v5264_v43  ;;  %v5200_v43 = vor.u32 %v6446_v33, %v5197_v35  ;;  %v5933_v33 = vld [vmem:[#allocation4 + $0x5f8] sm:$0xf0]  ;;  %v5552_v35 = vor.u32 %v6534_v30, %v5549_v25  ;;  %v5904_v3 = vor.u32 %v6622_v5, %v5901_v58  ;;  %v6123_v25 = vld [vmem:[#allocation4 + $0x768] sm:$0xf]  ;;  %v6574_v53 = vld [vmem:[#allocation4 + $0x42c] sm:$0xf] }
 0x1f4   :  { %v5936_v38 = vor.u32 %v6630_v44, %v5933_v33  ;;  %v6514_v44 = vld [vmem:[#allocation4 + $0x24c] sm:$0xf]  ;;  %v5469_v33 = vld [vmem:[#allocation4 + $0x258] sm:$0xf0]  ;;  %v6668_v5 = vld [vmem:[#allocation4 + $0x714] sm:$0xf0] }
 0x1f5   :  { %4015 = vmatpush.bf16.msra.mxu1 %v5392_v13  ;;  %3975 = vmatpush.bf16.msrb.mxu2 %v5996_v27  ;;  %v5563_v13 = vld [vmem:[#allocation4 + $0x308] sm:$0xf]  ;;  %v5533_v27 = vld [vmem:[#allocation4 + $0x2d8] sm:$0xf0]  ;;  %v6506_v58 = vld [vmem:[#allocation4 + $0x20c] sm:$0xf] }
 0x1f6   :  { %3933 = vmatpush.bf16.msra.mxu3 %v5612_v24  ;;  %v5564_v34 = vor.u32 %v6540_v14, %v5563_v13  ;;  %v5725_v13 = vld [vmem:[#allocation4 + $0x458] sm:$0xf0]  ;;  %v6618_v14 = vld [vmem:[#allocation4 + $0x58c] sm:$0xf] }
 0x1f7   :  { %4002 = vmatpush.bf16.msra.mxu0 %v5248_v17  ;;  %v5596_v17 = vor.u32 %v6548_v63, %v5595_v36  ;;  %v6626_v36 = vld [vmem:[#allocation4 + $0x5cc] sm:$0xf]  ;;  %v5917_v63 = vld [vmem:[#allocation4 + $0x5d8] sm:$0xf0] }
 0x1f8   :  { %v5920_v52 = vor.u32 %v6626_v36, %v5917_v63  ;;  %v6510_v63 = vld [vmem:[#allocation4 + $0x22c] sm:$0xf] }
 0x1f9   :  { %4016 = vmatpush.bf16.msra.mxu1 %v5376_v31  ;;  %3976 = vmatpush.bf16.msrb.mxu2 %v5980_v61  ;;  %v5948_v31 = vor.u32 %v6636_v21, %v5947_v20  ;;  %v6155_v61 = vld [vmem:[#allocation4 + $0x7a8] sm:$0xf]  ;;  %v5504_v20 = vor.u32 %v6522_v1, %v5501_v2  ;;  %v6602_v1 = vld [vmem:[#allocation4 + $0x50c] sm:$0xf] }
 0x1fa   :  { %3934 = vmatpush.bf16.msra.mxu3 %v5596_v17  ;;  %v5741_v17 = vld [vmem:[#allocation4 + $0x478] sm:$0xf0]  ;;  %v6662_v2 = vld [vmem:[#allocation4 + $0x6ec] sm:$0xf] }
 0x1fb   :  { %4003 = vmatpush.bf16.msra.mxu0 %v5232_v11  ;;  %v5789_v11 = vld [vmem:[#allocation4 + $0x4d8] sm:$0xf0] }
 0x1fc   :  { %v5792_v29 = vor.u32 %v6594_v8, %v5789_v11  ;;  %v6684_v8 = vld [vmem:[#allocation4 + $0x794] sm:$0xf0] }
 0x1fd   :  { %4017 = vmatpush.bf16.msra.mxu1 %v5360_v45  ;;  %3977 = vmatpush.bf16.msrb.mxu2 %v5964_v54  ;;  %v5757_v45 = vld [vmem:[#allocation4 + $0x498] sm:$0xf0]  ;;  %v6578_v54 = vld [vmem:[#allocation4 + $0x44c] sm:$0xf]  ;;  %v6140_v21 = vor.u32 %v6684_v8, %v6139_v4 }
 0x1fe   :  { %3935 = vmatpush.bf16.msra.mxu3 %v5580_v46  ;;  %v5885_v46 = vld [vmem:[#allocation4 + $0x598] sm:$0xf0]  ;;  %v5728_v19 = vor.u32 %v6578_v54, %v5725_v13  ;;  %v6566_v8 = vld [vmem:[#allocation4 + $0x3ec] sm:$0xf] }
 0x1ff   :  { %4004 = vmatpush.bf16.msra.mxu0 %v5216_v15  ;;  %v6590_v15 = vld [vmem:[#allocation4 + $0x4ac] sm:$0xf]  ;;  %v5888_v30 = vor.u32 %v6618_v14, %v5885_v46  ;;  %v5821_v4 = vld [vmem:[#allocation4 + $0x518] sm:$0xf0] }
 0x200   :  { %v5776_v24 = vor.u32 %v6590_v15, %v5773_v56  ;;  %v6614_v15 = vld [vmem:[#allocation4 + $0x56c] sm:$0xf]  ;;  %v5677_v54 = vld [vmem:[#allocation4 + $0x3f8] sm:$0xf0] }
 0x201   :  { %4018 = vmatpush.bf16.msra.mxu1 %v5344_v62  ;;  %3978 = vmatpush.bf16.msrb.mxu2 %v5948_v31  ;;  %v6156_v62 = vor.u32 %v6688_v49, %v6155_v61  ;;  %v3742_v11 = vpop.f32.mrf.mxu1  ;;  %v5869_v31 = vld [vmem:[#allocation4 + $0x578] sm:$0xf0]  ;;  %v6606_v61 = vld [vmem:[#allocation4 + $0x52c] sm:$0xf] }
 0x202   :  { %3936 = vmatpush.bf16.msra.mxu3 %v5564_v34  ;;  %v5712_v34 = vor.u32 %v6574_v53, %v5709_v37  ;;  %v5837_v49 = vld [vmem:[#allocation4 + $0x538] sm:$0xf0] }
 0x203   :  { %4005 = vmatpush.bf16.msra.mxu0 %v5200_v43  ;;  %v6586_v43 = vld [vmem:[#allocation4 + $0x48c] sm:$0xf] }
 0x204   :  { %v5760_v51 = vor.u32 %v6586_v43, %v5757_v45  ;;  %3979 = vmatmul.bf16.vlgmr.msrb.gmra.mxu2 %v7051_v48  ;;  %v5472_v43 = vor.u32 %v6514_v44, %v5469_v33 }
 0x205   :  { %4019 = vmatpush.bf16.msra.mxu1 %v5328_v18  ;;  %4027 = vmatpush.bf16.msra.mxu2 %v5552_v35  ;;  %v5485_v18 = vld [vmem:[#allocation4 + $0x278] sm:$0xf0]  ;;  %v5872_v35 = vor.u32 %v6614_v15, %v5869_v31 }
 0x206   :  { %3985 = vmatpush.bf16.msrb.mxu3 %v6188_v47  ;;  %v5488_v56 = vor.u32 %v6518_v7, %v5485_v18  ;;  %v6676_v47 = vld [vmem:[#allocation4 + $0x754] sm:$0xf0]  ;;  %v6658_v7 = vld [vmem:[#allocation4 + $0x6cc] sm:$0xf]  ;;  %v6045_v18 = vld [vmem:[#allocation4 + $0x6d8] sm:$0xf0] }
 0x207   :  { %4006 = vmatpush.bf16.msra.mxu0 %v5184_v59  ;;  %3937 = vmatmul.bf16.vlgmr.msra.gmra.mxu3 %v7031_v9  ;;  %v5520_v59 = vor.u32 %v6526_v41, %v5517_v50  ;;  %v3784_v45 = vpop.f32.mrf.mxu0  ;;  %v6029_v15 = vld [vmem:[#allocation4 + $0x6b8] sm:$0xf0] }
 0x209   :  { %4020 = vmatpush.bf16.msra.mxu1 %v5312_v16  ;;  %v6107_v16 = vld [vmem:[#allocation4 + $0x748] sm:$0xf] }
 0x20a   :  { %4007 = vmatmul.bf16.vlgmr.msra.gmra.mxu0 %v7021_v39  ;;  %v5536_v39 = vor.u32 %v6530_v57, %v5533_v27  ;;  %3986 = vmatpush.bf16.msrb.mxu3 %v6172_v12  ;;  %v6570_v57 = vld [vmem:[#allocation4 + $0x40c] sm:$0xf]  ;;  %v3744_v27 = vpop.f32.mrf.mxu1  ;;  %v6108_v36 = vor.u32 %v6676_v47, %v6107_v16  ;;  %v2376_v12 = vperm.slane %v7061_v22, 1  ;;  %v5840_v22 = vor.u32 %v6606_v61, %v5837_v49  ;;  %v6013_v16 = vld [vmem:[#allocation4 + $0x698] sm:$0xf0] }
 0x20b   :  { %4055 = vmatpush.bf16.msrb.mxu0 %v5808_v10  ;;  %v5744_v10 = vor.u32 %v6582_v55, %v5741_v17  ;;  %v7092_v42 = vadd.f32 %v3744_v27, %v7082_v28  ;;  %v6075_v28 = vld [vmem:[#allocation4 + $0x708] sm:$0xf]  ;;  %v6554_v47 = vld [vmem:[#allocation4 + $0x38c] sm:$0xf]  ;;  %v5965_v49 = vld [vmem:[#allocation4 + $0x638] sm:$0xf0] }
 0x20c   :  { %4021 = vmatmul.bf16.vlgmr.msra.gmra.mxu1 %v7023_v60  ;;  %4028 = vmatpush.bf16.msra.mxu2 %v5536_v39  ;;  %v7089_v60 = vadd.f32 %v3742_v11, %v7079_v23  ;;  %v5453_v39 = vld [vmem:[#allocation4 + $0x238] sm:$0xf0]  ;;  %v6076_v14 = vor.u32 %v6668_v5, %v6075_v28  ;;  %v6638_v61 = vld [vmem:[#allocation4 + $0x62c] sm:$0xf] }
 0x20d   :  { %4069 = vmatpush.bf16.msrb.mxu1 %v5936_v38  ;;  %v6610_v38 = vld [vmem:[#allocation4 + $0x54c] sm:$0xf]  ;;  %v5456_v55 = vor.u32 %v6510_v63, %v5453_v39  ;;  %v5981_v63 = vld [vmem:[#allocation4 + $0x658] sm:$0xf0] }
 0x20e   :  { %3987 = vmatpush.bf16.msrb.mxu3 %v6156_v62  ;;  %v5856_v50 = vor.u32 %v6610_v38, %v5853_v0  ;;  %v3785_v62 = vadd.f32 %v3784_v45, %v2376_v12  ;;  %v5997_v38 = vld [vmem:[#allocation4 + $0x678] sm:$0xf0]  ;;  %v6550_v0 = vld [vmem:[#allocation4 + $0x36c] sm:$0xf] }
 0x20f   :  { %4056 = vmatpush.bf16.msrb.mxu0 %v5792_v29  ;;  %v6680_v29 = vld [vmem:[#allocation4 + $0x774] sm:$0xf0]  ;;  %v5581_v28 = vld [vmem:[#allocation4 + $0x338] sm:$0xf0] }
 0x210   :  { %4029 = vmatpush.bf16.msra.mxu2 %v5520_v59  ;;  %v6124_v23 = vor.u32 %v6680_v29, %v6123_v25  ;;  %v5437_v59 = vld [vmem:[#allocation4 + $0x218] sm:$0xf0]  ;;  %v6048_v29 = vor.u32 %v6658_v7, %v6045_v18  ;;  %v6682_v18 = vld [vmem:[#allocation4 + $0x78c] sm:$0xf] }
 0x211   :  { %4070 = vmatpush.bf16.msrb.mxu1 %v5920_v52  ;;  %v6672_v52 = vld [vmem:[#allocation4 + $0x734] sm:$0xf0]  ;;  %v5440_v13 = vor.u32 %v6506_v58, %v5437_v59  ;;  %v5661_v25 = vld [vmem:[#allocation4 + $0x3d8] sm:$0xf0]  ;;  %v6634_v58 = vld [vmem:[#allocation4 + $0x60c] sm:$0xf] }
 0x212   :  { %3988 = vmatpush.bf16.msrb.mxu3 %v6140_v21  ;;  %v5680_v21 = vor.u32 %v6566_v8, %v5677_v54  ;;  %v5949_v59 = vld [vmem:[#allocation4 + $0x618] sm:$0xf0]  ;;  %v6690_v54 = vld [vmem:[#allocation4 + $0x7cc] sm:$0xf] }
 0x213   :  { %4057 = vmatpush.bf16.msrb.mxu0 %v5776_v24  ;;  %v5693_v24 = vld [vmem:[#allocation4 + $0x418] sm:$0xf0] }
 0x214   :  { %4030 = vmatpush.bf16.msra.mxu2 %v5504_v20  ;;  %v5696_v41 = vor.u32 %v6570_v57, %v5693_v24  ;;  %v5824_v20 = vor.u32 %v6602_v1, %v5821_v4  ;;  %v5629_v57 = vld [vmem:[#allocation4 + $0x398] sm:$0xf0]  ;;  %v6646_v24 = vld [vmem:[#allocation4 + $0x66c] sm:$0xf] }
 0x215   :  { %4071 = vmatpush.bf16.msrb.mxu1 %v5904_v3  ;;  %v3798_v3 = vpop.f32.mrf.mxu1  ;;  %v6000_v45 = vor.u32 %v6646_v24, %v5997_v38  ;;  %v5565_v1 = vld [vmem:[#allocation4 + $0x318] sm:$0xf0] }
 0x216   :  { %3989 = vmatpush.bf16.msrb.mxu3 %v6124_v23  ;;  %v7095_v11 = vadd.f32 %v3798_v3, %v3785_v62  ;;  %v5645_v23 = vld [vmem:[#allocation4 + $0x3b8] sm:$0xf0]  ;;  %v5952_v3 = vor.u32 %v6634_v58, %v5949_v59 }
 0x217   :  { %4058 = vmatpush.bf16.msrb.mxu0 %v5760_v51  ;;  %v6091_v51 = vld [vmem:[#allocation4 + $0x728] sm:$0xf] }
 0x218   :  { %4031 = vmatpush.bf16.msra.mxu2 %v5488_v56  ;;  %v6092_v17 = vor.u32 %v6672_v52, %v6091_v51  ;;  %v6558_v56 = vld [vmem:[#allocation4 + $0x3ac] sm:$0xf] }
 0x219   :  { %4072 = vmatpush.bf16.msrb.mxu1 %v5888_v30  ;;  %v6562_v30 = vld [vmem:[#allocation4 + $0x3cc] sm:$0xf] }
 0x21a   :  { %3990 = vmatpush.bf16.msrb.mxu3 %v6108_v36  ;;  %v5664_v37 = vor.u32 %v6562_v30, %v5661_v25  ;;  %v6642_v36 = vld [vmem:[#allocation4 + $0x64c] sm:$0xf] }
 0x21b   :  { %4059 = vmatpush.bf16.msrb.mxu0 %v5744_v10  ;;  %v6061_v10 = vld [vmem:[#allocation4 + $0x6f8] sm:$0xf0]  ;;  %v5984_v51 = vor.u32 %v6642_v36, %v5981_v63 }
 0x21c   :  { %4032 = vmatpush.bf16.msra.mxu2 %v5472_v43  ;;  %v6064_v46 = vor.u32 %v6662_v2, %v6061_v10  ;;  %v5613_v43 = vld [vmem:[#allocation4 + $0x378] sm:$0xf0] }
 0x21d   :  { %4073 = vmatpush.bf16.msrb.mxu1 %v5872_v35  ;;  %v3800_v31 = vpop.f32.mrf.mxu1  ;;  %v6650_v35 = vld [vmem:[#allocation4 + $0x68c] sm:$0xf]  ;;  %v6189_v10 = vld [vmem:[#allocation4 + $0x7f8] sm:$0xf0] }
 0x21e   :  { %3991 = vmatpush.bf16.msrb.mxu3 %v6092_v17  ;;  %v6016_v27 = vor.u32 %v6650_v35, %v6013_v16  ;;  %v5968_v17 = vor.u32 %v6638_v61, %v5965_v49  ;;  %v6077_v35 = vld [vmem:[#allocation4 + $0x718] sm:$0xf0] }
 0x21f   :  { %4060 = vmatpush.bf16.msrb.mxu0 %v5728_v19  ;;  %v3786_v19 = vpop.f32.mrf.mxu0 }
 0x220   :  { %4033 = vmatpush.bf16.msra.mxu2 %v5456_v55  ;;  %v3787_v53 = vadd.f32 %v3786_v19, %v2376_v12  ;;  %v6546_v12 = vld [vmem:[#allocation4 + $0x34c] sm:$0xf]  ;;  %v6141_v19 = vld [vmem:[#allocation4 + $0x798] sm:$0xf0] }
 0x221   :  { %4074 = vmatpush.bf16.msrb.mxu1 %v5856_v50  ;;  %v6542_v55 = vld [vmem:[#allocation4 + $0x32c] sm:$0xf]  ;;  %v6144_v25 = vor.u32 %v6682_v18, %v6141_v19 }
 0x222   :  { %3992 = vmatpush.bf16.msrb.mxu3 %v6076_v14  ;;  %v7100_v44 = vadd.f32 %v3800_v31, %v3787_v53  ;;  %v5584_v5 = vor.u32 %v6542_v55, %v5581_v28  ;;  %v6678_v53 = vld [vmem:[#allocation4 + $0x76c] sm:$0xf] }
 0x223   :  { %4061 = vmatpush.bf16.msrb.mxu0 %v5712_v34  ;;  %v5648_v34 = vor.u32 %v6558_v56, %v5645_v23  ;;  %v6093_v23 = vld [vmem:[#allocation4 + $0x738] sm:$0xf0] }
 0x224   :  { %4034 = vmatpush.bf16.msra.mxu2 %v5440_v13  ;;  %v6173_v13 = vld [vmem:[#allocation4 + $0x7d8] sm:$0xf0] }
 0x225   :  { %4075 = vmatpush.bf16.msrb.mxu1 %v5840_v22  ;;  %3993 = vmatmul.bf16.vlgmr.msrb.gmra.mxu3 %v7063_v6  ;;  %v6538_v22 = vld [vmem:[#allocation4 + $0x30c] sm:$0xf] }
 0x226   :  { %4041 = vmatpush.bf16.msra.mxu3 %v5680_v21  ;;  %v5568_v4 = vor.u32 %v6538_v22, %v5565_v1  ;;  %v6686_v21 = vld [vmem:[#allocation4 + $0x7ac] sm:$0xf] }
 0x227   :  { %4062 = vmatpush.bf16.msrb.mxu0 %v5696_v41  ;;  %4035 = vmatmul.bf16.vlgmr.msra.gmra.mxu2 %v7026_v40  ;;  %v5632_v40 = vor.u32 %v6554_v47, %v5629_v57  ;;  %v3756_v39 = vpop.f32.mrf.mxu2  ;;  %v5597_v41 = vld [vmem:[#allocation4 + $0x358] sm:$0xf0] }
 0x228   :  { %4083 = vmatpush.bf16.msrb.mxu2 %v6064_v46  ;;  %v3757_v50 = vadd.f32 %v3756_v39, %v7089_v60  ;;  %v5600_v52 = vor.u32 %v6546_v12, %v5597_v41  ;;  %v6694_v60 = vld [vmem:[#allocation4 + $0x7ec] sm:$0xf]  ;;  %v6176_v46 = vor.u32 %v6690_v54, %v6173_v13  ;;  %v7113_v39 = vld [vmem:[%s7142_s5] sm:$0xf] }
 0x229   :  { %4076 = vmatpush.bf16.msrb.mxu1 %v5824_v20  ;;  %v6192_v8 = vor.u32 %v6694_v60, %v6189_v10  ;;  %v3854_v38 = vpop.f32.mrf.mxu1  ;;  %v4130_v55 = vperm.slane %v7113_v39, 1 }
 0x22a   :  { %4063 = vmatmul.bf16.vlgmr.msrb.gmra.mxu0 %v7035_v32  ;;  %v6654_v32 = vld [vmem:[#allocation4 + $0x6ac] sm:$0xf]  ;;  %4042 = vmatpush.bf16.msra.mxu3 %v5664_v37  ;;  %v6125_v37 = vld [vmem:[#allocation4 + $0x778] sm:$0xf0] }
 0x22b   :  { %v6032_v33 = vor.u32 %v6654_v32, %v6029_v15  ;;  %v6128_v32 = vor.u32 %v6678_v53, %v6125_v37  ;;  %v6109_v15 = vld [vmem:[#allocation4 + $0x758] sm:$0xf0] }
 0x22c   :  { %4077 = vmatmul.bf16.vlgmr.msrb.gmra.mxu1 %v7040_v26  ;;  %4084 = vmatpush.bf16.msrb.mxu2 %v6048_v29  ;;  %v5616_v26 = vor.u32 %v6550_v0, %v5613_v43 }
 0x22e   :  { %4043 = vmatpush.bf16.msra.mxu3 %v5648_v34  ;;  %v6666_v34 = vld [vmem:[#allocation4 + $0x70c] sm:$0xf] }
 0x22f   :  { %v3758_v62 = vpop.f32.mrf.mxu2 }
 0x230   :  { %4085 = vmatpush.bf16.msrb.mxu2 %v6032_v33  ;;  %v3759_v2 = vadd.f32 %v3758_v62, %v7092_v42  ;;  %v6157_v42 = vld [vmem:[#allocation4 + $0x7b8] sm:$0xf0] }
 0x231   :  { %v6160_v7 = vor.u32 %v6686_v21, %v6157_v42 }
 0x232   :  { %4044 = vmatpush.bf16.msra.mxu3 %v5632_v40  ;;  %v3840_v40 = vpop.f32.mrf.mxu0 }
 0x234   :  { %4086 = vmatpush.bf16.msrb.mxu2 %v6016_v27 }
 0x236   :  { %4045 = vmatpush.bf16.msra.mxu3 %v5616_v26 }
 0x237   :  { %v3812_v14 = vpop.f32.mrf.mxu2 }
 0x238   :  { %4087 = vmatpush.bf16.msrb.mxu2 %v6000_v45  ;;  %v3813_v20 = vadd.f32 %v3812_v14, %v7095_v11  ;;  %v6674_v11 = vld [vmem:[#allocation4 + $0x74c] sm:$0xf] }
 0x239   :  { %v6112_v56 = vor.u32 %v6674_v11, %v6109_v15 }
 0x23a   :  { %4046 = vmatpush.bf16.msra.mxu3 %v5600_v52  ;;  %v3842_v36 = vpop.f32.mrf.mxu0  ;;  %v3856_v52 = vpop.f32.mrf.mxu1 }
 0x23c   :  { %4088 = vmatpush.bf16.msrb.mxu2 %v5984_v51 }
 0x23e   :  { %4047 = vmatpush.bf16.msra.mxu3 %v5584_v5 }
 0x23f   :  { %v3814_v30 = vpop.f32.mrf.mxu2 }
 0x240   :  { %4089 = vmatpush.bf16.msrb.mxu2 %v5968_v17  ;;  %v3815_v29 = vadd.f32 %v3814_v30, %v7100_v44  ;;  %v6080_v44 = vor.u32 %v6666_v34, %v6077_v35 }
 0x242   :  { %4048 = vmatpush.bf16.msra.mxu3 %v5568_v4 }
 0x244   :  { %4090 = vmatpush.bf16.msrb.mxu2 %v5952_v3 }
 0x245   :  { %4049 = vmatmul.bf16.vlgmr.msra.gmra.mxu3 %v7031_v9  ;;  %v6670_v9 = vld [vmem:[#allocation4 + $0x72c] sm:$0xf] }
 0x246   :  { %4097 = vmatpush.bf16.msrb.mxu3 %v6192_v8  ;;  %v6096_v33 = vor.u32 %v6670_v9, %v6093_v23 }
 0x247   :  { %4091 = vmatmul.bf16.vlgmr.msrb.gmra.mxu2 %v7051_v48  ;;  %v3770_v48 = vpop.f32.mrf.mxu3  ;;  %v3868_v26 = vpop.f32.mrf.mxu2 }
 0x248   :  { %v3771_v31 = vadd.f32 %v3770_v48, %v3757_v50  ;;  %v3896_v14 = vpop.f32.mrf.mxu0 }
 0x24a   :  { %4098 = vmatpush.bf16.msrb.mxu3 %v6176_v46  ;;  %v4111_v63 = vmul.f32 0.01, %v3771_v31  ;;  %v3910_v46 = vpop.f32.mrf.mxu1 }
 0x24c   :  { %v4119_v61 = vmax.f32 %v3771_v31, %v4111_v63 }
 0x24e   :  { %4099 = vmatpush.bf16.msrb.mxu3 %v6160_v7 }
 0x24f   :  { %v3772_v16 = vpop.f32.mrf.mxu3  ;;  %v3870_v5 = vpop.f32.mrf.mxu2 }
 0x250   :  { %v3773_v47 = vadd.f32 %v3772_v16, %v3759_v2  ;;  %v3898_v21 = vpop.f32.mrf.mxu0 }
 0x252   :  { %4100 = vmatpush.bf16.msrb.mxu3 %v6144_v25  ;;  %v4115_v59 = vmul.f32 0.01, %v3773_v47  ;;  %v3912_v7 = vpop.f32.mrf.mxu1 }
 0x254   :  { %v4123_v10 = vmax.f32 %v3773_v47, %v4115_v59 }
 0x256   :  { %4101 = vmatpush.bf16.msrb.mxu3 %v6128_v32  ;;  %v6705_v32 = vld [vmem:[%s7141_s4] sm:$0xf] }
 0x257   :  { %v3826_v57 = vpop.f32.mrf.mxu3  ;;  %v2377_v11 = vperm.slane %v6705_v32, 2  ;;  %v2378_v16 = vperm.slane %v6705_v32, 3 }
 0x258   :  { %v3827_v27 = vadd.f32 %v3826_v57, %v3813_v20 }
 0x259   :  { %v3897_v48 = vadd.f32 %v3896_v14, %v2377_v11 }
 0x25a   :  { %4102 = vmatpush.bf16.msrb.mxu3 %v6112_v56  ;;  %v3841_v24 = vadd.f32 %v3840_v40, %v3827_v27 }
 0x25b   :  { %v3911_v9 = vadd.f32 %v3910_v46, %v3897_v48 }
 0x25c   :  { %v3855_v45 = vadd.f32 %v3854_v38, %v3841_v24 }
 0x25e   :  { %4103 = vmatpush.bf16.msrb.mxu3 %v6096_v33  ;;  %v3869_v41 = vadd.f32 %v3868_v26, %v3855_v45 }
 0x25f   :  { %v3828_v0 = vpop.f32.mrf.mxu3 }
 0x260   :  { %v3829_v43 = vadd.f32 %v3828_v0, %v3815_v29 }
 0x262   :  { %4104 = vmatpush.bf16.msrb.mxu3 %v6080_v44  ;;  %v3843_v12 = vadd.f32 %v3842_v36, %v3829_v43  ;;  %v3899_v44 = vadd.f32 %v3898_v21, %v2377_v11 }
 0x264   :  { %v3857_v28 = vadd.f32 %v3856_v52, %v3843_v12  ;;  %v3913_v40 = vadd.f32 %v3912_v7, %v3899_v44 }
 0x265   :  { %4105 = vmatmul.bf16.vlgmr.msrb.gmra.mxu3 %v7063_v6  ;;  %v4129_v6 = vperm.slane %v7113_v39, 0 }
 0x266   :  { %v3871_v22 = vadd.f32 %v3870_v5, %v3857_v28 }
 0x267   :  { %v4137_v58 = vmul.f32 %v4129_v6, %v4119_v61  ;;  %v4141_v8 = vmul.f32 %v4129_v6, %v4123_v10  ;;  %v3924_v20 = vpop.f32.mrf.mxu2  ;;  %v3952_v18 = vpop.f32.mrf.mxu0 }
 0x268   :  { %v3925_v23 = vadd.f32 %v3924_v20, %v3911_v9 }
 0x269   :  { %v3966_v30 = vpop.f32.mrf.mxu1 }
 0x26a   :  { %v3882_v50 = vpop.f32.mrf.mxu3 }
 0x26b   :  { %v3883_v51 = vadd.f32 %v3882_v50, %v3869_v41 }
 0x26d   :  { %v4112_v49 = vmul.f32 0.01, %v3883_v51 }
 0x26f   :  { %v4120_v17 = vmax.f32 %v3883_v51, %v4112_v49  ;;  %v3926_v19 = vpop.f32.mrf.mxu2  ;;  %v3954_v53 = vpop.f32.mrf.mxu0 }
 0x270   :  { %v3927_v0 = vadd.f32 %v3926_v19, %v3913_v40 }
 0x271   :  { %v4138_v62 = vmul.f32 %v4130_v55, %v4120_v17  ;;  %v3968_v15 = vpop.f32.mrf.mxu1 }
 0x272   :  { %v3884_v1 = vpop.f32.mrf.mxu3 }
 0x273   :  { %v3885_v2 = vadd.f32 %v3884_v1, %v3871_v22  ;;  %v7117_v60 = vadd.f32 %v4138_v62, %v4137_v58 }
 0x275   :  { %v4116_v3 = vmul.f32 0.01, %v3885_v2 }
 0x277   :  { %v4124_v4 = vmax.f32 %v3885_v2, %v4116_v3 }
 0x279   :  { %v4142_v54 = vmul.f32 %v4130_v55, %v4124_v4  ;;  %v4131_v4 = vperm.slane %v7113_v39, 2 }
 0x27b   :  { %v7119_v13 = vadd.f32 %v4142_v54, %v4141_v8 }
 0x287   :  { %v3980_v29 = vpop.f32.mrf.mxu2  ;;  %v4008_v31 = vpop.f32.mrf.mxu0 }
 0x288   :  { %v4009_v24 = vadd.f32 %v4008_v31, %v2378_v16 }
 0x289   :  { %v4022_v33 = vpop.f32.mrf.mxu1 }
 0x28a   :  { %v3938_v42 = vpop.f32.mrf.mxu3  ;;  %v4023_v43 = vadd.f32 %v4022_v33, %v4009_v24 }
 0x28b   :  { %v3939_v35 = vadd.f32 %v3938_v42, %v3925_v23 }
 0x28d   :  { %v3953_v27 = vadd.f32 %v3952_v18, %v3939_v35 }
 0x28f   :  { %v3982_v56 = vpop.f32.mrf.mxu2  ;;  %v4010_v57 = vpop.f32.mrf.mxu0  ;;  %v3967_v45 = vadd.f32 %v3966_v30, %v3953_v27  ;;  %v4132_v30 = vperm.slane %v7113_v39, 3  ;;  %v6703_v39 = vld [vmem:[%s7143_s6] ss:$0 sm:$0xff] }
 0x290   :  { %v4011_v52 = vadd.f32 %v4010_v57, %v2378_v16 }
 0x291   :  { %v4024_v26 = vpop.f32.mrf.mxu1  ;;  %v3981_v41 = vadd.f32 %v3980_v29, %v3967_v45 }
 0x292   :  { %v3940_v25 = vpop.f32.mrf.mxu3  ;;  %v4025_v49 = vadd.f32 %v4024_v26, %v4011_v52 }
 0x293   :  { %v3941_v36 = vadd.f32 %v3940_v25, %v3927_v0 }
 0x295   :  { %v3955_v6 = vadd.f32 %v3954_v53, %v3941_v36 }
 0x297   :  { %v3969_v5 = vadd.f32 %v3968_v15, %v3955_v6 }
 0x299   :  { %v3983_v2 = vadd.f32 %v3982_v56, %v3969_v5 }
 0x2a7   :  { %v4064_v50 = vpop.f32.mrf.mxu0 }
 0x2a8   :  { %v3994_v37 = vpop.f32.mrf.mxu3 }
 0x2a9   :  { %v3995_v61 = vadd.f32 %v3994_v37, %v3981_v41  ;;  %v4078_v28 = vpop.f32.mrf.mxu1 }
 0x2aa   :  { %v4036_v47 = vpop.f32.mrf.mxu2 }
 0x2ab   :  { %v4037_v63 = vadd.f32 %v4036_v47, %v4023_v43  ;;  %v4113_v59 = vmul.f32 0.01, %v3995_v61 }
 0x2ad   :  { %v4121_v3 = vmax.f32 %v3995_v61, %v4113_v59 }
 0x2af   :  { %v4066_v10 = vpop.f32.mrf.mxu0  ;;  %v4139_v42 = vmul.f32 %v4131_v4, %v4121_v3 }
 0x2b0   :  { %v3996_v34 = vpop.f32.mrf.mxu3 }
 0x2b1   :  { %v3997_v8 = vadd.f32 %v3996_v34, %v3983_v2  ;;  %v4080_v21 = vpop.f32.mrf.mxu1  ;;  %v4146_v11 = vadd.f32 %v7117_v60, %v4139_v42 }
 0x2b2   :  { %v4038_v51 = vpop.f32.mrf.mxu2 }
 0x2b3   :  { %v4039_v58 = vadd.f32 %v4038_v51, %v4025_v49  ;;  %v4117_v7 = vmul.f32 0.01, %v3997_v8 }
 0x2b5   :  { %v4125_v53 = vmax.f32 %v3997_v8, %v4117_v7 }
 0x2b7   :  { %v4143_v56 = vmul.f32 %v4131_v4, %v4125_v53 }
 0x2b9   :  { %v4151_v34 = vadd.f32 %v7119_v13, %v4143_v56 }
 0x2c8   :  { %v4050_v38 = vpop.f32.mrf.mxu3 }
 0x2c9   :  { %v4051_v12 = vadd.f32 %v4050_v38, %v4037_v63 }
 0x2ca   :  { %v4092_v1 = vpop.f32.mrf.mxu2 }
 0x2cb   :  { %v4065_v55 = vadd.f32 %v4064_v50, %v4051_v12 }
 0x2cd   :  { %v4079_v62 = vadd.f32 %v4078_v28, %v4065_v55 }
 0x2cf   :  { %v4093_v54 = vadd.f32 %v4092_v1, %v4079_v62 }
 0x2d0   :  { %v4052_v17 = vpop.f32.mrf.mxu3 }
 0x2d1   :  { %v4053_v22 = vadd.f32 %v4052_v17, %v4039_v58 }
 0x2d2   :  { %v4094_v29 = vpop.f32.mrf.mxu2 }
 0x2d3   :  { %v4067_v14 = vadd.f32 %v4066_v10, %v4053_v22 }
 0x2d5   :  { %v4081_v18 = vadd.f32 %v4080_v21, %v4067_v14 }
 0x2d7   :  { %v4095_v37 = vadd.f32 %v4094_v29, %v4081_v18 }
 0x2e8   :  { %v4106_v46 = vpop.f32.mrf.mxu3 }
 0x2e9   :  { %v4107_v20 = vadd.f32 %v4106_v46, %v4093_v54 }
 0x2eb   :  { %v4114_v19 = vmul.f32 0.01, %v4107_v20 }
 0x2ed   :  { %v4122_v25 = vmax.f32 %v4107_v20, %v4114_v19 }
 0x2ef   :  { %v4140_v32 = vmul.f32 %v4132_v30, %v4122_v25 }
 0x2f0   :  { %v4108_v15 = vpop.f32.mrf.mxu3 }
 0x2f1   :  { %v4109_v48 = vadd.f32 %v4108_v15, %v4095_v37  ;;  %v4147_v31 = vadd.f32 %v4146_v11, %v4140_v32 }
 0x2f3   :  { %v4118_v9 = vmul.f32 0.01, %v4109_v48  ;;  %4148 = vadd.xlane.f32.xlu0 %v4147_v31 }
 0x2f5   :  { %v4126_v23 = vmax.f32 %v4109_v48, %v4118_v9 }
 0x2f7   :  { %v4144_v33 = vmul.f32 %v4132_v30, %v4126_v23 }
 0x2f9   :  { %v4152_v35 = vadd.f32 %v4151_v34, %v4144_v33 }
 0x2fb   :  { %4153 = vadd.xlane.f32.xlu0 %v4152_v35 }
 0x366   :  { %v4149_v16 = vpop.xlane.xlu0 %4148 }
 0x367   :  { %v4159_v47 = vadd.f32 %v6703_v39, %v4149_v16 }
 0x369   :  { %4161 = vst [vmem:[%s7144_s7] sm:$0xff] %v4159_v47 }
 0x36e   :  { %v4154_v60 = vpop.xlane.xlu0 %4153 }
 0x36f   :  { %v4160_v44 = vadd.f32 %v6703_v39, %v4154_v60 }
 0x371   :  { %4162 = vst [vmem:[%s7144_s7 + $0x8] sm:$0xff] %v4160_v44 }
 0x372   :  { %4167 = vsyncpa [#allocation3], 1 }
 0x373   :  { %4168 = vsyncpa [#allocation5], 1 }

</bundles_post_ra>
